<compile_context>
chip_gen: v6e
topology: v6e:2x2x1
jax: 0.10.0
libtpu: 0.0.40
codegen_flags: <defaults>
</compile_context>

<pallas_src>
import jax
import jax.numpy as jnp
from jax import lax
from jax.experimental import pallas as pl
from jax.experimental.pallas import tpu as pltpu


_VMEM = pl.BlockSpec(memory_space=pltpu.MemorySpace.VMEM)
_MXU_DTYPE = jnp.bfloat16     # MXU operand dtype (accumulation is always f32)
_LANES = 128                  # lane width of the lane-dense output slab
_BN_EPS = 1e-5
_LRELU_SLOPE = 0.01


# ----------------------------------------------------------------------------
# In-kernel helpers (traced inside the fused Pallas kernel)
# ----------------------------------------------------------------------------
def _shift(x, axis, d):
    """out[..., i, ...] = x[..., i + d, ...], zero-filled out of range."""
    if d == 0:
        return x
    n = x.shape[axis]
    pad_shape = list(x.shape)
    pad_shape[axis] = abs(d)
    zeros = jnp.zeros(pad_shape, x.dtype)
    idx = [slice(None)] * x.ndim
    if d > 0:
        idx[axis] = slice(d, n)
        return jnp.concatenate([x[tuple(idx)], zeros], axis=axis)
    idx[axis] = slice(0, n + d)
    return jnp.concatenate([zeros, x[tuple(idx)]], axis=axis)


def _interleave(a, b, axis):
    """out[..., 2i, ...] = a[..., i, ...]; out[..., 2i+1, ...] = b[..., i, ...].

    Built from static width-1 slices + a single concatenate so it lowers
    robustly (no sublane-dim reshapes).  Cheap at the small spatial sizes of
    this module (spatial starts at 2x2).
    # TODO(synk): switch to a stack+reshape interleave for large spatial dims.
    """
    n = a.shape[axis]
    parts = []
    for i in range(n):
        idx = [slice(None)] * a.ndim
        idx[axis] = slice(i, i + 1)
        parts.append(a[tuple(idx)])
        parts.append(b[tuple(idx)])
    return jnp.concatenate(parts, axis=axis)


def _convt_bn_lrelu(x, w_ref, gamma_ref, beta_ref):
    """ConvTranspose2d(k3,s2,p1,op1) + BatchNorm2d(batch stats) + LeakyReLU.

    Sub-pixel (phase) decomposition: the four output phases (even/odd row x
    even/odd col) come straight from the undilated input with 1/2/2/4 MXU taps
    (9 quarter-size matmuls ~= 4x fewer FLOPs than dilate-then-conv) and are
    then interleaved.  The transposed-conv bias is omitted: it cancels exactly
    in the BatchNorm mean subtraction.
    """
    B, H, W, Cin = x.shape
    Cout = w_ref.shape[-1]

    xb = x.astype(_MXU_DTYPE)            # bf16 operands on the MXU, f32 acc
    xw = _shift(xb, 2, 1)                # x[m,   n+1]
    xh = _shift(xb, 1, 1)                # x[m+1, n  ]  (outer-axis shift: cheap)
    xhw = _shift(xh, 2, 1)               # x[m+1, n+1]

    rows = B * H * W
    X = xb.reshape(rows, Cin)
    Xw = xw.reshape(rows, Cin)
    Xh = xh.reshape(rows, Cin)
    Xhw = xhw.reshape(rows, Cin)

    def tap(a, kh, kw):
        return jnp.dot(a, w_ref[kh, kw], preferred_element_type=jnp.float32)

    y_ee = tap(X, 1, 1)                                   # out[2m,   2n  ]
    y_eo = tap(X, 1, 2) + tap(Xw, 1, 0)                   # out[2m,   2n+1]
    y_oe = tap(X, 2, 1) + tap(Xh, 0, 1)                   # out[2m+1, 2n  ]
    y_oo = (tap(X, 2, 2) + tap(Xw, 2, 0)
            + tap(Xh, 0, 2) + tap(Xhw, 0, 0))             # out[2m+1, 2n+1]

    def unflat(t):
        return t.reshape(B, H, W, Cout)

    row_e = _interleave(unflat(y_ee), unflat(y_eo), axis=2)   # even output rows
    row_o = _interleave(unflat(y_oe), unflat(y_oo), axis=2)   # odd output rows
    y = _interleave(row_e, row_o, axis=1)                     # (B, 2H, 2W, Cout)

    # BatchNorm2d (training-mode batch statistics) + LeakyReLU, f32 epilogue.
    yf = y.reshape(rows * 4, Cout)
    mean = jnp.mean(yf, axis=0, keepdims=True)
    var = jnp.mean(jnp.square(yf - mean), axis=0, keepdims=True)
    yf = (yf - mean) * lax.rsqrt(var + _BN_EPS)
    yf = yf * gamma_ref[...] + beta_ref[...]
    yf = jnp.where(yf >= 0, yf, _LRELU_SLOPE * yf)
    return yf.reshape(B, 2 * H, 2 * W, Cout)


def _conv3x3_bias_tanh(x, w_ref, b_ref):
    """Conv2d(k3, s1, p1) + bias + tanh.  Cout is pre-padded to 128 lanes so
    the output store is lane-dense; real channels are sliced in the wrapper."""
    B, H, W, Cin = x.shape
    Cout = w_ref.shape[-1]
    rows = B * H * W
    acc = jnp.zeros((rows, Cout), jnp.float32)
    for kh in range(3):
        xh = _shift(x, 1, kh - 1)                   # outer-axis shift: cheap
        for kw in range(3):
            xs = _shift(xh, 2, kw - 1)
            acc = acc + jnp.dot(xs.reshape(rows, Cin), w_ref[kh, kw],
                                preferred_element_type=jnp.float32)
    acc = jnp.tanh(acc + b_ref[...])
    return acc.reshape(B, H, W, Cout)


def _make_decoder_kernel(n_convt):
    """Whole decoder forward fused into a single gridless kernel invocation:
    all activations/weights of this config fit comfortably in VMEM, so every
    intermediate stays on-chip and there is exactly one kernel launch.
    # TODO(synk): for large hidden_dims/batch, tile over output rows with a
    # grid + BlockSpecs (v7x has only 64 MiB VMEM)."""

    def kernel(*refs):
        it = iter(refs)
        z_ref = next(it)
        lin_w_ref = next(it)
        lin_b_ref = next(it)
        conv_refs = [(next(it), next(it), next(it)) for _ in range(n_convt)]
        wc_ref = next(it)
        cb_ref = next(it)
        o_ref = next(it)

        C0 = lin_w_ref.shape[1] // 4

        # decoder_input: Linear(latent_dim, 4*C0), bf16 operands on the MXU.
        h = jnp.dot(z_ref[...].astype(_MXU_DTYPE), lin_w_ref[...],
                    preferred_element_type=jnp.float32) + lin_b_ref[...]

        # view(-1, 512, 2, 2) in NHWC.  The Linear columns were pre-permuted to
        # (spatial position, channel) order, so each of the 4 positions is a
        # lane-aligned slice of width C0.
        p = [h[:, k * C0:(k + 1) * C0] for k in range(4)]
        row0 = jnp.stack([p[0], p[1]], axis=1)        # (B, 2, C0)   h_ = 0
        row1 = jnp.stack([p[2], p[3]], axis=1)        #              h_ = 1
        x = jnp.stack([row0, row1], axis=1)           # (B, 2, 2, C0)  NHWC

        # decoder blocks + the final layer's ConvTranspose2d block.
        for w_ref, g_ref, bt_ref in conv_refs:
            x = _convt_bn_lrelu(x, w_ref, g_ref, bt_ref)

        # final Conv2d(-> 3 channels, lane-padded to 128) + Tanh.
        o_ref[...] = _conv3x3_bias_tanh(x, wc_ref, cb_ref)

    return kernel


# ----------------------------------------------------------------------------
# Parameters: init (PyTorch-shaped) and one-time prep (hoisted relayouts)
# ----------------------------------------------------------------------------
def init_decoder_params(key, latent_dim, hidden_dims):
    """Deterministic synthetic parameters with nn.Module.__init__'s shapes."""
    hd = list(hidden_dims)
    keys = list(jax.random.split(key, 4 + 4 * len(hd)))
    nk = iter(keys).__next__

    params = {}
    dout = hd[-1] * 4
    params["lin_w"] = 0.05 * jax.random.normal(nk(), (latent_dim, dout), jnp.float32)
    params["lin_b"] = 0.01 * jax.random.normal(nk(), (dout,), jnp.float32)

    hd = hd[::-1]                                   # hidden_dims.reverse()
    dec = []
    for i in range(len(hd) - 1):
        dec.append(dict(
            wt=0.05 * jax.random.normal(nk(), (hd[i], hd[i + 1], 3, 3), jnp.float32),
            b=0.01 * jax.random.normal(nk(), (hd[i + 1],), jnp.float32),
            gamma=jnp.ones((hd[i + 1],), jnp.float32),
            beta=jnp.zeros((hd[i + 1],), jnp.float32),
        ))
    params["decoder"] = dec

    params["final"] = dict(
        wt=0.05 * jax.random.normal(nk(), (hd[-1], hd[-1], 3, 3), jnp.float32),
        b=0.01 * jax.random.normal(nk(), (hd[-1],), jnp.float32),
        gamma=jnp.ones((hd[-1],), jnp.float32),
        beta=jnp.zeros((hd[-1],), jnp.float32),
        wc=0.05 * jax.random.normal(nk(), (3, hd[-1], 3, 3), jnp.float32),
        cb=0.01 * jax.random.normal(nk(), (3,), jnp.float32),
    )
    return params


def prepare_decoder_params(params):
    """One-time parameter prep (hoisted out of the forward pass):
       * permute Linear columns to (spatial position, channel) order,
       * ConvT weights -> (kh, kw, Cin, Cout) taps in bf16,
       * final Conv2d weight -> (kh, kw, Cin, 128) lane-padded f32,
       * drop the conv biases that cancel under BatchNorm."""
    lin_w, lin_b = params["lin_w"], params["lin_b"]
    dz, dout = lin_w.shape
    c0 = dout // 4                                   # == 512 (view(-1,512,2,2))
    lin_w_p = lin_w.reshape(dz, c0, 2, 2).transpose(0, 2, 3, 1).reshape(dz, dout)
    lin_b_p = lin_b.reshape(c0, 2, 2).transpose(1, 2, 0).reshape(1, dout)

    convt_blocks = [(b["wt"], b["gamma"], b["beta"]) for b in params["decoder"]]
    fl = params["final"]
    convt_blocks.append((fl["wt"], fl["gamma"], fl["beta"]))

    convs = []
    for wt, g, bt in convt_blocks:
        convs.append(dict(
            w=jnp.transpose(wt, (2, 3, 0, 1)).astype(_MXU_DTYPE),   # (3,3,Cin,Cout)
            gamma=g.reshape(1, -1).astype(jnp.float32),
            beta=bt.reshape(1, -1).astype(jnp.float32),
        ))

    wc = fl["wc"]                                     # (3, Cin, 3, 3)  OIHW
    n_out, _ = wc.shape[0], wc.shape[1]
    wc_taps = jnp.transpose(wc, (2, 3, 1, 0))         # (3, 3, Cin, 3)  HWIO
    wc_taps = jnp.pad(wc_taps, ((0, 0), (0, 0), (0, 0), (0, _LANES - n_out)))
    cb = jnp.pad(fl["cb"], (0, _LANES - n_out)).reshape(1, _LANES)

    return dict(lin_w=lin_w_p.astype(_MXU_DTYPE),
                lin_b=lin_b_p.astype(jnp.float32),
                convs=convs,
                wc=wc_taps.astype(jnp.float32),
                cb=cb.astype(jnp.float32))


# ----------------------------------------------------------------------------
# Forward (single fused pallas_call)
# ----------------------------------------------------------------------------
@jax.jit
def decoder_forward(prep, z, c=None):
    """z: [B, latent_dim]; c is unused (as in the PyTorch forward).
    Returns NCHW [B, 3, H, W]."""
    del c
    B = z.shape[0]
    n_convt = len(prep["convs"])
    hf = 2 * (2 ** n_convt)                          # 2x2 doubled per ConvT

    args = [z, prep["lin_w"], prep["lin_b"]]
    for blk in prep["convs"]:
        args += [blk["w"], blk["gamma"], blk["beta"]]
    args += [prep["wc"], prep["cb"]]

    out = pl.pallas_call(
        _make_decoder_kernel(n_convt),
        out_shape=jax.ShapeDtypeStruct((B, hf, hf, _LANES), jnp.float32),
        in_specs=[_VMEM] * len(args),
        out_specs=_VMEM,
    )(*args)

    # lane-dense kernel output -> real channels, NHWC -> NCHW
    return out[:, :, :, :3].transpose(0, 3, 1, 2)


# ----------------------------------------------------------------------------
# Pure-JAX references (correctness checks)
# ----------------------------------------------------------------------------
def reference_forward(params, z, mxu_dtype=None):
    """Pure-XLA reference.  mxu_dtype=None -> exact f32 PyTorch semantics;
    mxu_dtype=bf16 -> same MXU-operand rounding as the kernel (f32 accum)."""
    cast = (lambda t: t) if mxu_dtype is None else (lambda t: t.astype(mxu_dtype))

    def bn(x, g, bt):
        m = x.mean(axis=(0, 2, 3), keepdims=True)
        v = ((x - m) ** 2).mean(axis=(0, 2, 3), keepdims=True)
        return (x - m) / jnp.sqrt(v + _BN_EPS) * g[None, :, None, None] \
            + bt[None, :, None, None]

    def lrelu(x):
        return jnp.where(x >= 0, x, _LRELU_SLOPE * x)

    def convT(x, wt, b):
        wc = jnp.flip(wt, (2, 3)).transpose(1, 0, 2, 3)   # (Cout, Cin, k, k)
        y = lax.conv_general_dilated(
            cast(x), cast(wc), (1, 1), ((1, 2), (1, 2)), lhs_dilation=(2, 2),
            dimension_numbers=("NCHW", "OIHW", "NCHW"),
            preferred_element_type=jnp.float32)
        return y + b[None, :, None, None]

    B = z.shape[0]
    h = jnp.dot(cast(z), cast(params["lin_w"]),
                preferred_element_type=jnp.float32) + params["lin_b"]
    h = h.reshape(B, 512, 2, 2)
    for blk in params["decoder"]:
        h = lrelu(bn(convT(h, blk["wt"], blk["b"]), blk["gamma"], blk["beta"]))
    fl = params["final"]
    h = lrelu(bn(convT(h, fl["wt"], fl["b"]), fl["gamma"], fl["beta"]))
    h = lax.conv_general_dilated(                         # final conv in f32
        h, fl["wc"], (1, 1), ((1, 1), (1, 1)),
        dimension_numbers=("NCHW", "OIHW", "NCHW"),
        preferred_element_type=jnp.float32) + fl["cb"][None, :, None, None]
    return jnp.tanh(h)


# ----------------------------------------------------------------------------
if __name__ == "__main__":
    import numpy as np

    latent_dim = 16
    c_dim = 4
    hidden_dims = [32, 512]   # reversed inside -> [512, 32]; view uses 512
    B = 2

    root = jax.random.PRNGKey(0)
    k_param, k_z, k_c = jax.random.split(root, 3)
    params = init_decoder_params(k_param, latent_dim, hidden_dims)
    prep = prepare_decoder_params(params)

    z = jax.random.normal(k_z, (B, latent_dim), jnp.float32)
    c = jax.random.normal(k_c, (B, c_dim), jnp.float32)    # unused (PyTorch too)

    out = jax.block_until_ready(decoder_forward(prep, z, c))
    assert out.shape == (B, 3, 8, 8), out.shape
    assert bool(jnp.all(jnp.isfinite(out)))

    # 1) logic check: matched-precision (same bf16 MXU-operand rounding) ref
    ref_matched = jax.block_until_ready(
        reference_forward(params, z, mxu_dtype=_MXU_DTYPE))
    np.testing.assert_allclose(np.asarray(out), np.asarray(ref_matched),
                               rtol=1e-3, atol=1e-3)

    # 2) numerical sanity vs. the exact f32 PyTorch semantics
    ref_f32 = jax.block_until_ready(reference_forward(params, z))
    np.testing.assert_allclose(np.asarray(out), np.asarray(ref_f32),
                               rtol=5e-2, atol=5e-2)

    print("KERNEL_OK")
</pallas_src>

<mosaic_0001>
module attributes {stable_mosaic.version = 11 : i64} {
  func.func @kernel(%arg0: memref<2x16xf32, #tpu.memory_space<vmem>>, %arg1: memref<16x2048xbf16, #tpu.memory_space<vmem>>, %arg2: memref<1x2048xf32, #tpu.memory_space<vmem>>, %arg3: memref<3x3x512x32xbf16, #tpu.memory_space<vmem>>, %arg4: memref<1x32xf32, #tpu.memory_space<vmem>>, %arg5: memref<1x32xf32, #tpu.memory_space<vmem>>, %arg6: memref<3x3x32x32xbf16, #tpu.memory_space<vmem>>, %arg7: memref<1x32xf32, #tpu.memory_space<vmem>>, %arg8: memref<1x32xf32, #tpu.memory_space<vmem>>, %arg9: memref<3x3x32x128xf32, #tpu.memory_space<vmem>>, %arg10: memref<1x128xf32, #tpu.memory_space<vmem>>, %arg11: memref<2x8x8x128xf32, #tpu.memory_space<vmem>>) attributes {dimension_semantics = [], scalar_prefetch = 0 : i64, scratch_operands = 0 : i64, tpu.core_type = #tpu.core_type<tc>} {
    %c0 = arith.constant 0 : index
    %c0_0 = arith.constant 0 : index
    %0 = vector.load %arg0[%c0, %c0_0] : memref<2x16xf32, #tpu.memory_space<vmem>>, vector<2x16xf32>
    %1 = arith.truncf %0 : vector<2x16xf32> to vector<2x16xbf16>
    %c0_1 = arith.constant 0 : index
    %c0_2 = arith.constant 0 : index
    %2 = vector.load %arg1[%c0_1, %c0_2] : memref<16x2048xbf16, #tpu.memory_space<vmem>>, vector<16x2048xbf16>
    %cst = arith.constant dense<0.000000e+00> : vector<2x2048xf32>
    %3 = tpu.matmul %1, %2, %cst {dimension_numbers = #tpu.dot_dimension_numbers<[1], [0], [0], [1], [0, 0, 1, 1], [], []>} : vector<2x16xbf16>, vector<16x2048xbf16>, vector<2x2048xf32> -> vector<2x2048xf32>
    %c0_3 = arith.constant 0 : index
    %c0_4 = arith.constant 0 : index
    %4 = vector.load %arg2[%c0_3, %c0_4] : memref<1x2048xf32, #tpu.memory_space<vmem>>, vector<1x2048xf32>
    %5 = vector.broadcast %4 : vector<1x2048xf32> to vector<2x2048xf32>
    %6 = arith.addf %3, %5 : vector<2x2048xf32>
    %7 = vector.extract_strided_slice %6 {offsets = [0, 0], sizes = [2, 512], strides = [1, 1]} : vector<2x2048xf32> to vector<2x512xf32>
    %8 = vector.extract_strided_slice %6 {offsets = [0, 512], sizes = [2, 512], strides = [1, 1]} : vector<2x2048xf32> to vector<2x512xf32>
    %9 = vector.extract_strided_slice %6 {offsets = [0, 1024], sizes = [2, 512], strides = [1, 1]} : vector<2x2048xf32> to vector<2x512xf32>
    %10 = vector.extract_strided_slice %6 {offsets = [0, 1536], sizes = [2, 512], strides = [1, 1]} : vector<2x2048xf32> to vector<2x512xf32>
    %11 = vector.shape_cast %7 : vector<2x512xf32> to vector<2x1x512xf32>
    %12 = vector.shape_cast %8 : vector<2x512xf32> to vector<2x1x512xf32>
    %13 = tpu.concatenate %11, %12 in 1 : vector<2x1x512xf32>, vector<2x1x512xf32> -> vector<2x2x512xf32>
    %14 = vector.shape_cast %9 : vector<2x512xf32> to vector<2x1x512xf32>
    %15 = vector.shape_cast %10 : vector<2x512xf32> to vector<2x1x512xf32>
    %16 = tpu.concatenate %14, %15 in 1 : vector<2x1x512xf32>, vector<2x1x512xf32> -> vector<2x2x512xf32>
    %17 = vector.shape_cast %13 : vector<2x2x512xf32> to vector<2x1x2x512xf32>
    %18 = vector.shape_cast %16 : vector<2x2x512xf32> to vector<2x1x2x512xf32>
    %19 = tpu.concatenate %17, %18 in 1 : vector<2x1x2x512xf32>, vector<2x1x2x512xf32> -> vector<2x2x2x512xf32>
    %20 = arith.truncf %19 : vector<2x2x2x512xf32> to vector<2x2x2x512xbf16>
    %cst_5 = arith.constant 0.000000e+00 : bf16
    %21 = vector.broadcast %cst_5 : bf16 to vector<2x2x1x512xbf16>
    %22 = vector.extract_strided_slice %20 {offsets = [0, 0, 1, 0], sizes = [2, 2, 1, 512], strides = [1, 1, 1, 1]} : vector<2x2x2x512xbf16> to vector<2x2x1x512xbf16>
    %23 = tpu.concatenate %22, %21 in 2 : vector<2x2x1x512xbf16>, vector<2x2x1x512xbf16> -> vector<2x2x2x512xbf16>
    %cst_6 = arith.constant 0.000000e+00 : bf16
    %24 = vector.broadcast %cst_6 : bf16 to vector<2x1x2x512xbf16>
    %25 = vector.extract_strided_slice %20 {offsets = [0, 1, 0, 0], sizes = [2, 1, 2, 512], strides = [1, 1, 1, 1]} : vector<2x2x2x512xbf16> to vector<2x1x2x512xbf16>
    %26 = tpu.concatenate %25, %24 in 1 : vector<2x1x2x512xbf16>, vector<2x1x2x512xbf16> -> vector<2x2x2x512xbf16>
    %cst_7 = arith.constant 0.000000e+00 : bf16
    %27 = vector.broadcast %cst_7 : bf16 to vector<2x2x1x512xbf16>
    %28 = vector.extract_strided_slice %26 {offsets = [0, 0, 1, 0], sizes = [2, 2, 1, 512], strides = [1, 1, 1, 1]} : vector<2x2x2x512xbf16> to vector<2x2x1x512xbf16>
    %29 = tpu.concatenate %28, %27 in 2 : vector<2x2x1x512xbf16>, vector<2x2x1x512xbf16> -> vector<2x2x2x512xbf16>
    %30 = vector.shape_cast %20 : vector<2x2x2x512xbf16> to vector<8x512xbf16>
    %31 = vector.shape_cast %23 : vector<2x2x2x512xbf16> to vector<8x512xbf16>
    %32 = vector.shape_cast %26 : vector<2x2x2x512xbf16> to vector<8x512xbf16>
    %33 = vector.shape_cast %29 : vector<2x2x2x512xbf16> to vector<8x512xbf16>
    %c1 = arith.constant 1 : index
    %c1_8 = arith.constant 1 : index
    %c0_9 = arith.constant 0 : index
    %c0_10 = arith.constant 0 : index
    %34 = vector.load %arg3[%c1, %c1_8, %c0_9, %c0_10] : memref<3x3x512x32xbf16, #tpu.memory_space<vmem>>, vector<1x1x512x32xbf16>
    %35 = vector.shape_cast %34 : vector<1x1x512x32xbf16> to vector<512x32xbf16>
    %cst_11 = arith.constant dense<0.000000e+00> : vector<8x32xf32>
    %36 = tpu.matmul %30, %35, %cst_11 {dimension_numbers = #tpu.dot_dimension_numbers<[1], [0], [0], [1], [0, 0, 1, 1], [], []>} : vector<8x512xbf16>, vector<512x32xbf16>, vector<8x32xf32> -> vector<8x32xf32>
    %c1_12 = arith.constant 1 : index
    %c2 = arith.constant 2 : index
    %c0_13 = arith.constant 0 : index
    %c0_14 = arith.constant 0 : index
    %37 = vector.load %arg3[%c1_12, %c2, %c0_13, %c0_14] : memref<3x3x512x32xbf16, #tpu.memory_space<vmem>>, vector<1x1x512x32xbf16>
    %38 = vector.shape_cast %37 : vector<1x1x512x32xbf16> to vector<512x32xbf16>
    %cst_15 = arith.constant dense<0.000000e+00> : vector<8x32xf32>
    %39 = tpu.matmul %30, %38, %cst_15 {dimension_numbers = #tpu.dot_dimension_numbers<[1], [0], [0], [1], [0, 0, 1, 1], [], []>} : vector<8x512xbf16>, vector<512x32xbf16>, vector<8x32xf32> -> vector<8x32xf32>
    %c1_16 = arith.constant 1 : index
    %c0_17 = arith.constant 0 : index
    %c0_18 = arith.constant 0 : index
    %c0_19 = arith.constant 0 : index
    %40 = vector.load %arg3[%c1_16, %c0_17, %c0_18, %c0_19] : memref<3x3x512x32xbf16, #tpu.memory_space<vmem>>, vector<1x1x512x32xbf16>
    %41 = vector.shape_cast %40 : vector<1x1x512x32xbf16> to vector<512x32xbf16>
    %cst_20 = arith.constant dense<0.000000e+00> : vector<8x32xf32>
    %42 = tpu.matmul %31, %41, %cst_20 {dimension_numbers = #tpu.dot_dimension_numbers<[1], [0], [0], [1], [0, 0, 1, 1], [], []>} : vector<8x512xbf16>, vector<512x32xbf16>, vector<8x32xf32> -> vector<8x32xf32>
    %43 = arith.addf %39, %42 : vector<8x32xf32>
    %c2_21 = arith.constant 2 : index
    %c1_22 = arith.constant 1 : index
    %c0_23 = arith.constant 0 : index
    %c0_24 = arith.constant 0 : index
    %44 = vector.load %arg3[%c2_21, %c1_22, %c0_23, %c0_24] : memref<3x3x512x32xbf16, #tpu.memory_space<vmem>>, vector<1x1x512x32xbf16>
    %45 = vector.shape_cast %44 : vector<1x1x512x32xbf16> to vector<512x32xbf16>
    %cst_25 = arith.constant dense<0.000000e+00> : vector<8x32xf32>
    %46 = tpu.matmul %30, %45, %cst_25 {dimension_numbers = #tpu.dot_dimension_numbers<[1], [0], [0], [1], [0, 0, 1, 1], [], []>} : vector<8x512xbf16>, vector<512x32xbf16>, vector<8x32xf32> -> vector<8x32xf32>
    %c0_26 = arith.constant 0 : index
    %c1_27 = arith.constant 1 : index
    %c0_28 = arith.constant 0 : index
    %c0_29 = arith.constant 0 : index
    %47 = vector.load %arg3[%c0_26, %c1_27, %c0_28, %c0_29] : memref<3x3x512x32xbf16, #tpu.memory_space<vmem>>, vector<1x1x512x32xbf16>
    %48 = vector.shape_cast %47 : vector<1x1x512x32xbf16> to vector<512x32xbf16>
    %cst_30 = arith.constant dense<0.000000e+00> : vector<8x32xf32>
    %49 = tpu.matmul %32, %48, %cst_30 {dimension_numbers = #tpu.dot_dimension_numbers<[1], [0], [0], [1], [0, 0, 1, 1], [], []>} : vector<8x512xbf16>, vector<512x32xbf16>, vector<8x32xf32> -> vector<8x32xf32>
    %50 = arith.addf %46, %49 : vector<8x32xf32>
    %c2_31 = arith.constant 2 : index
    %c2_32 = arith.constant 2 : index
    %c0_33 = arith.constant 0 : index
    %c0_34 = arith.constant 0 : index
    %51 = vector.load %arg3[%c2_31, %c2_32, %c0_33, %c0_34] : memref<3x3x512x32xbf16, #tpu.memory_space<vmem>>, vector<1x1x512x32xbf16>
    %52 = vector.shape_cast %51 : vector<1x1x512x32xbf16> to vector<512x32xbf16>
    %cst_35 = arith.constant dense<0.000000e+00> : vector<8x32xf32>
    %53 = tpu.matmul %30, %52, %cst_35 {dimension_numbers = #tpu.dot_dimension_numbers<[1], [0], [0], [1], [0, 0, 1, 1], [], []>} : vector<8x512xbf16>, vector<512x32xbf16>, vector<8x32xf32> -> vector<8x32xf32>
    %c2_36 = arith.constant 2 : index
    %c0_37 = arith.constant 0 : index
    %c0_38 = arith.constant 0 : index
    %c0_39 = arith.constant 0 : index
    %54 = vector.load %arg3[%c2_36, %c0_37, %c0_38, %c0_39] : memref<3x3x512x32xbf16, #tpu.memory_space<vmem>>, vector<1x1x512x32xbf16>
    %55 = vector.shape_cast %54 : vector<1x1x512x32xbf16> to vector<512x32xbf16>
    %cst_40 = arith.constant dense<0.000000e+00> : vector<8x32xf32>
    %56 = tpu.matmul %31, %55, %cst_40 {dimension_numbers = #tpu.dot_dimension_numbers<[1], [0], [0], [1], [0, 0, 1, 1], [], []>} : vector<8x512xbf16>, vector<512x32xbf16>, vector<8x32xf32> -> vector<8x32xf32>
    %57 = arith.addf %53, %56 : vector<8x32xf32>
    %c0_41 = arith.constant 0 : index
    %c2_42 = arith.constant 2 : index
    %c0_43 = arith.constant 0 : index
    %c0_44 = arith.constant 0 : index
    %58 = vector.load %arg3[%c0_41, %c2_42, %c0_43, %c0_44] : memref<3x3x512x32xbf16, #tpu.memory_space<vmem>>, vector<1x1x512x32xbf16>
    %59 = vector.shape_cast %58 : vector<1x1x512x32xbf16> to vector<512x32xbf16>
    %cst_45 = arith.constant dense<0.000000e+00> : vector<8x32xf32>
    %60 = tpu.matmul %32, %59, %cst_45 {dimension_numbers = #tpu.dot_dimension_numbers<[1], [0], [0], [1], [0, 0, 1, 1], [], []>} : vector<8x512xbf16>, vector<512x32xbf16>, vector<8x32xf32> -> vector<8x32xf32>
    %61 = arith.addf %57, %60 : vector<8x32xf32>
    %c0_46 = arith.constant 0 : index
    %c0_47 = arith.constant 0 : index
    %c0_48 = arith.constant 0 : index
    %c0_49 = arith.constant 0 : index
    %62 = vector.load %arg3[%c0_46, %c0_47, %c0_48, %c0_49] : memref<3x3x512x32xbf16, #tpu.memory_space<vmem>>, vector<1x1x512x32xbf16>
    %63 = vector.shape_cast %62 : vector<1x1x512x32xbf16> to vector<512x32xbf16>
    %cst_50 = arith.constant dense<0.000000e+00> : vector<8x32xf32>
    %64 = tpu.matmul %33, %63, %cst_50 {dimension_numbers = #tpu.dot_dimension_numbers<[1], [0], [0], [1], [0, 0, 1, 1], [], []>} : vector<8x512xbf16>, vector<512x32xbf16>, vector<8x32xf32> -> vector<8x32xf32>
    %65 = arith.addf %61, %64 : vector<8x32xf32>
    %66 = vector.shape_cast %36 : vector<8x32xf32> to vector<2x2x2x32xf32>
    %67 = vector.shape_cast %43 : vector<8x32xf32> to vector<2x2x2x32xf32>
    %68 = vector.extract_strided_slice %66 {offsets = [0, 0, 0, 0], sizes = [2, 2, 1, 32], strides = [1, 1, 1, 1]} : vector<2x2x2x32xf32> to vector<2x2x1x32xf32>
    %69 = vector.extract_strided_slice %67 {offsets = [0, 0, 0, 0], sizes = [2, 2, 1, 32], strides = [1, 1, 1, 1]} : vector<2x2x2x32xf32> to vector<2x2x1x32xf32>
    %70 = vector.extract_strided_slice %66 {offsets = [0, 0, 1, 0], sizes = [2, 2, 1, 32], strides = [1, 1, 1, 1]} : vector<2x2x2x32xf32> to vector<2x2x1x32xf32>
    %71 = vector.extract_strided_slice %67 {offsets = [0, 0, 1, 0], sizes = [2, 2, 1, 32], strides = [1, 1, 1, 1]} : vector<2x2x2x32xf32> to vector<2x2x1x32xf32>
    %72 = tpu.concatenate %68, %69, %70, %71 in 2 : vector<2x2x1x32xf32>, vector<2x2x1x32xf32>, vector<2x2x1x32xf32>, vector<2x2x1x32xf32> -> vector<2x2x4x32xf32>
    %73 = vector.shape_cast %50 : vector<8x32xf32> to vector<2x2x2x32xf32>
    %74 = vector.shape_cast %65 : vector<8x32xf32> to vector<2x2x2x32xf32>
    %75 = vector.extract_strided_slice %73 {offsets = [0, 0, 0, 0], sizes = [2, 2, 1, 32], strides = [1, 1, 1, 1]} : vector<2x2x2x32xf32> to vector<2x2x1x32xf32>
    %76 = vector.extract_strided_slice %74 {offsets = [0, 0, 0, 0], sizes = [2, 2, 1, 32], strides = [1, 1, 1, 1]} : vector<2x2x2x32xf32> to vector<2x2x1x32xf32>
    %77 = vector.extract_strided_slice %73 {offsets = [0, 0, 1, 0], sizes = [2, 2, 1, 32], strides = [1, 1, 1, 1]} : vector<2x2x2x32xf32> to vector<2x2x1x32xf32>
    %78 = vector.extract_strided_slice %74 {offsets = [0, 0, 1, 0], sizes = [2, 2, 1, 32], strides = [1, 1, 1, 1]} : vector<2x2x2x32xf32> to vector<2x2x1x32xf32>
    %79 = tpu.concatenate %75, %76, %77, %78 in 2 : vector<2x2x1x32xf32>, vector<2x2x1x32xf32>, vector<2x2x1x32xf32>, vector<2x2x1x32xf32> -> vector<2x2x4x32xf32>
    %80 = vector.extract_strided_slice %72 {offsets = [0, 0, 0, 0], sizes = [2, 1, 4, 32], strides = [1, 1, 1, 1]} : vector<2x2x4x32xf32> to vector<2x1x4x32xf32>
    %81 = vector.extract_strided_slice %79 {offsets = [0, 0, 0, 0], sizes = [2, 1, 4, 32], strides = [1, 1, 1, 1]} : vector<2x2x4x32xf32> to vector<2x1x4x32xf32>
    %82 = vector.extract_strided_slice %72 {offsets = [0, 1, 0, 0], sizes = [2, 1, 4, 32], strides = [1, 1, 1, 1]} : vector<2x2x4x32xf32> to vector<2x1x4x32xf32>
    %83 = vector.extract_strided_slice %79 {offsets = [0, 1, 0, 0], sizes = [2, 1, 4, 32], strides = [1, 1, 1, 1]} : vector<2x2x4x32xf32> to vector<2x1x4x32xf32>
    %84 = tpu.concatenate %80, %81, %82, %83 in 1 : vector<2x1x4x32xf32>, vector<2x1x4x32xf32>, vector<2x1x4x32xf32>, vector<2x1x4x32xf32> -> vector<2x4x4x32xf32>
    %85 = vector.shape_cast %84 : vector<2x4x4x32xf32> to vector<32x32xf32>
    %cst_51 = arith.constant dense<0.000000e+00> : vector<32xf32>
    %86 = vector.multi_reduction <add>, %85, %cst_51 [0] : vector<32x32xf32> to vector<32xf32>
    %87 = vector.shape_cast %86 : vector<32xf32> to vector<1x32xf32>
    %cst_52 = arith.constant 3.200000e+01 : f32
    %88 = vector.broadcast %cst_52 : f32 to vector<1x32xf32>
    %89 = arith.divf %87, %88 : vector<1x32xf32>
    %90 = vector.broadcast %89 : vector<1x32xf32> to vector<32x32xf32>
    %91 = arith.subf %85, %90 : vector<32x32xf32>
    %92 = arith.mulf %91, %91 : vector<32x32xf32>
    %cst_53 = arith.constant dense<0.000000e+00> : vector<32xf32>
    %93 = vector.multi_reduction <add>, %92, %cst_53 [0] : vector<32x32xf32> to vector<32xf32>
    %94 = vector.shape_cast %93 : vector<32xf32> to vector<1x32xf32>
    %cst_54 = arith.constant 3.200000e+01 : f32
    %95 = vector.broadcast %cst_54 : f32 to vector<1x32xf32>
    %96 = arith.divf %94, %95 : vector<1x32xf32>
    %97 = vector.broadcast %89 : vector<1x32xf32> to vector<32x32xf32>
    %98 = arith.subf %85, %97 : vector<32x32xf32>
    %cst_55 = arith.constant 9.99999974E-6 : f32
    %99 = vector.broadcast %cst_55 : f32 to vector<1x32xf32>
    %100 = arith.addf %96, %99 : vector<1x32xf32>
    %101 = math.rsqrt %100 : vector<1x32xf32>
    %102 = vector.broadcast %101 : vector<1x32xf32> to vector<32x32xf32>
    %103 = arith.mulf %98, %102 : vector<32x32xf32>
    %c0_56 = arith.constant 0 : index
    %c0_57 = arith.constant 0 : index
    %104 = vector.load %arg4[%c0_56, %c0_57] : memref<1x32xf32, #tpu.memory_space<vmem>>, vector<1x32xf32>
    %105 = vector.broadcast %104 : vector<1x32xf32> to vector<32x32xf32>
    %106 = arith.mulf %103, %105 : vector<32x32xf32>
    %c0_58 = arith.constant 0 : index
    %c0_59 = arith.constant 0 : index
    %107 = vector.load %arg5[%c0_58, %c0_59] : memref<1x32xf32, #tpu.memory_space<vmem>>, vector<1x32xf32>
    %108 = vector.broadcast %107 : vector<1x32xf32> to vector<32x32xf32>
    %109 = arith.addf %106, %108 : vector<32x32xf32>
    %cst_60 = arith.constant 0.000000e+00 : f32
    %110 = vector.broadcast %cst_60 : f32 to vector<32x32xf32>
    %111 = arith.cmpf oge, %109, %110 : vector<32x32xf32>
    %cst_61 = arith.constant 0.00999999977 : f32
    %112 = vector.broadcast %cst_61 : f32 to vector<32x32xf32>
    %113 = arith.mulf %112, %109 : vector<32x32xf32>
    %114 = arith.select %111, %109, %113 : vector<32x32xi1>, vector<32x32xf32>
    %115 = vector.shape_cast %114 : vector<32x32xf32> to vector<2x4x4x32xf32>
    %116 = arith.truncf %115 : vector<2x4x4x32xf32> to vector<2x4x4x32xbf16>
    %cst_62 = arith.constant 0.000000e+00 : bf16
    %117 = vector.broadcast %cst_62 : bf16 to vector<2x4x1x32xbf16>
    %118 = vector.extract_strided_slice %116 {offsets = [0, 0, 1, 0], sizes = [2, 4, 3, 32], strides = [1, 1, 1, 1]} : vector<2x4x4x32xbf16> to vector<2x4x3x32xbf16>
    %119 = tpu.concatenate %118, %117 in 2 : vector<2x4x3x32xbf16>, vector<2x4x1x32xbf16> -> vector<2x4x4x32xbf16>
    %cst_63 = arith.constant 0.000000e+00 : bf16
    %120 = vector.broadcast %cst_63 : bf16 to vector<2x1x4x32xbf16>
    %121 = vector.extract_strided_slice %116 {offsets = [0, 1, 0, 0], sizes = [2, 3, 4, 32], strides = [1, 1, 1, 1]} : vector<2x4x4x32xbf16> to vector<2x3x4x32xbf16>
    %122 = tpu.concatenate %121, %120 in 1 : vector<2x3x4x32xbf16>, vector<2x1x4x32xbf16> -> vector<2x4x4x32xbf16>
    %cst_64 = arith.constant 0.000000e+00 : bf16
    %123 = vector.broadcast %cst_64 : bf16 to vector<2x4x1x32xbf16>
    %124 = vector.extract_strided_slice %122 {offsets = [0, 0, 1, 0], sizes = [2, 4, 3, 32], strides = [1, 1, 1, 1]} : vector<2x4x4x32xbf16> to vector<2x4x3x32xbf16>
    %125 = tpu.concatenate %124, %123 in 2 : vector<2x4x3x32xbf16>, vector<2x4x1x32xbf16> -> vector<2x4x4x32xbf16>
    %126 = vector.shape_cast %116 : vector<2x4x4x32xbf16> to vector<32x32xbf16>
    %127 = vector.shape_cast %119 : vector<2x4x4x32xbf16> to vector<32x32xbf16>
    %128 = vector.shape_cast %122 : vector<2x4x4x32xbf16> to vector<32x32xbf16>
    %129 = vector.shape_cast %125 : vector<2x4x4x32xbf16> to vector<32x32xbf16>
    %c1_65 = arith.constant 1 : index
    %c1_66 = arith.constant 1 : index
    %c0_67 = arith.constant 0 : index
    %c0_68 = arith.constant 0 : index
    %130 = vector.load %arg6[%c1_65, %c1_66, %c0_67, %c0_68] : memref<3x3x32x32xbf16, #tpu.memory_space<vmem>>, vector<1x1x32x32xbf16>
    %131 = vector.shape_cast %130 : vector<1x1x32x32xbf16> to vector<32x32xbf16>
    %cst_69 = arith.constant dense<0.000000e+00> : vector<32x32xf32>
    %132 = tpu.matmul %126, %131, %cst_69 {dimension_numbers = #tpu.dot_dimension_numbers<[1], [0], [0], [1], [0, 0, 1, 1], [], []>} : vector<32x32xbf16>, vector<32x32xbf16>, vector<32x32xf32> -> vector<32x32xf32>
    %c1_70 = arith.constant 1 : index
    %c2_71 = arith.constant 2 : index
    %c0_72 = arith.constant 0 : index
    %c0_73 = arith.constant 0 : index
    %133 = vector.load %arg6[%c1_70, %c2_71, %c0_72, %c0_73] : memref<3x3x32x32xbf16, #tpu.memory_space<vmem>>, vector<1x1x32x32xbf16>
    %134 = vector.shape_cast %133 : vector<1x1x32x32xbf16> to vector<32x32xbf16>
    %cst_74 = arith.constant dense<0.000000e+00> : vector<32x32xf32>
    %135 = tpu.matmul %126, %134, %cst_74 {dimension_numbers = #tpu.dot_dimension_numbers<[1], [0], [0], [1], [0, 0, 1, 1], [], []>} : vector<32x32xbf16>, vector<32x32xbf16>, vector<32x32xf32> -> vector<32x32xf32>
    %c1_75 = arith.constant 1 : index
    %c0_76 = arith.constant 0 : index
    %c0_77 = arith.constant 0 : index
    %c0_78 = arith.constant 0 : index
    %136 = vector.load %arg6[%c1_75, %c0_76, %c0_77, %c0_78] : memref<3x3x32x32xbf16, #tpu.memory_space<vmem>>, vector<1x1x32x32xbf16>
    %137 = vector.shape_cast %136 : vector<1x1x32x32xbf16> to vector<32x32xbf16>
    %cst_79 = arith.constant dense<0.000000e+00> : vector<32x32xf32>
    %138 = tpu.matmul %127, %137, %cst_79 {dimension_numbers = #tpu.dot_dimension_numbers<[1], [0], [0], [1], [0, 0, 1, 1], [], []>} : vector<32x32xbf16>, vector<32x32xbf16>, vector<32x32xf32> -> vector<32x32xf32>
    %139 = arith.addf %135, %138 : vector<32x32xf32>
    %c2_80 = arith.constant 2 : index
    %c1_81 = arith.constant 1 : index
    %c0_82 = arith.constant 0 : index
    %c0_83 = arith.constant 0 : index
    %140 = vector.load %arg6[%c2_80, %c1_81, %c0_82, %c0_83] : memref<3x3x32x32xbf16, #tpu.memory_space<vmem>>, vector<1x1x32x32xbf16>
    %141 = vector.shape_cast %140 : vector<1x1x32x32xbf16> to vector<32x32xbf16>
    %cst_84 = arith.constant dense<0.000000e+00> : vector<32x32xf32>
    %142 = tpu.matmul %126, %141, %cst_84 {dimension_numbers = #tpu.dot_dimension_numbers<[1], [0], [0], [1], [0, 0, 1, 1], [], []>} : vector<32x32xbf16>, vector<32x32xbf16>, vector<32x32xf32> -> vector<32x32xf32>
    %c0_85 = arith.constant 0 : index
    %c1_86 = arith.constant 1 : index
    %c0_87 = arith.constant 0 : index
    %c0_88 = arith.constant 0 : index
    %143 = vector.load %arg6[%c0_85, %c1_86, %c0_87, %c0_88] : memref<3x3x32x32xbf16, #tpu.memory_space<vmem>>, vector<1x1x32x32xbf16>
    %144 = vector.shape_cast %143 : vector<1x1x32x32xbf16> to vector<32x32xbf16>
    %cst_89 = arith.constant dense<0.000000e+00> : vector<32x32xf32>
    %145 = tpu.matmul %128, %144, %cst_89 {dimension_numbers = #tpu.dot_dimension_numbers<[1], [0], [0], [1], [0, 0, 1, 1], [], []>} : vector<32x32xbf16>, vector<32x32xbf16>, vector<32x32xf32> -> vector<32x32xf32>
    %146 = arith.addf %142, %145 : vector<32x32xf32>
    %c2_90 = arith.constant 2 : index
    %c2_91 = arith.constant 2 : index
    %c0_92 = arith.constant 0 : index
    %c0_93 = arith.constant 0 : index
    %147 = vector.load %arg6[%c2_90, %c2_91, %c0_92, %c0_93] : memref<3x3x32x32xbf16, #tpu.memory_space<vmem>>, vector<1x1x32x32xbf16>
    %148 = vector.shape_cast %147 : vector<1x1x32x32xbf16> to vector<32x32xbf16>
    %cst_94 = arith.constant dense<0.000000e+00> : vector<32x32xf32>
    %149 = tpu.matmul %126, %148, %cst_94 {dimension_numbers = #tpu.dot_dimension_numbers<[1], [0], [0], [1], [0, 0, 1, 1], [], []>} : vector<32x32xbf16>, vector<32x32xbf16>, vector<32x32xf32> -> vector<32x32xf32>
    %c2_95 = arith.constant 2 : index
    %c0_96 = arith.constant 0 : index
    %c0_97 = arith.constant 0 : index
    %c0_98 = arith.constant 0 : index
    %150 = vector.load %arg6[%c2_95, %c0_96, %c0_97, %c0_98] : memref<3x3x32x32xbf16, #tpu.memory_space<vmem>>, vector<1x1x32x32xbf16>
    %151 = vector.shape_cast %150 : vector<1x1x32x32xbf16> to vector<32x32xbf16>
    %cst_99 = arith.constant dense<0.000000e+00> : vector<32x32xf32>
    %152 = tpu.matmul %127, %151, %cst_99 {dimension_numbers = #tpu.dot_dimension_numbers<[1], [0], [0], [1], [0, 0, 1, 1], [], []>} : vector<32x32xbf16>, vector<32x32xbf16>, vector<32x32xf32> -> vector<32x32xf32>
    %153 = arith.addf %149, %152 : vector<32x32xf32>
    %c0_100 = arith.constant 0 : index
    %c2_101 = arith.constant 2 : index
    %c0_102 = arith.constant 0 : index
    %c0_103 = arith.constant 0 : index
    %154 = vector.load %arg6[%c0_100, %c2_101, %c0_102, %c0_103] : memref<3x3x32x32xbf16, #tpu.memory_space<vmem>>, vector<1x1x32x32xbf16>
    %155 = vector.shape_cast %154 : vector<1x1x32x32xbf16> to vector<32x32xbf16>
    %cst_104 = arith.constant dense<0.000000e+00> : vector<32x32xf32>
    %156 = tpu.matmul %128, %155, %cst_104 {dimension_numbers = #tpu.dot_dimension_numbers<[1], [0], [0], [1], [0, 0, 1, 1], [], []>} : vector<32x32xbf16>, vector<32x32xbf16>, vector<32x32xf32> -> vector<32x32xf32>
    %157 = arith.addf %153, %156 : vector<32x32xf32>
    %c0_105 = arith.constant 0 : index
    %c0_106 = arith.constant 0 : index
    %c0_107 = arith.constant 0 : index
    %c0_108 = arith.constant 0 : index
    %158 = vector.load %arg6[%c0_105, %c0_106, %c0_107, %c0_108] : memref<3x3x32x32xbf16, #tpu.memory_space<vmem>>, vector<1x1x32x32xbf16>
    %159 = vector.shape_cast %158 : vector<1x1x32x32xbf16> to vector<32x32xbf16>
    %cst_109 = arith.constant dense<0.000000e+00> : vector<32x32xf32>
    %160 = tpu.matmul %129, %159, %cst_109 {dimension_numbers = #tpu.dot_dimension_numbers<[1], [0], [0], [1], [0, 0, 1, 1], [], []>} : vector<32x32xbf16>, vector<32x32xbf16>, vector<32x32xf32> -> vector<32x32xf32>
    %161 = arith.addf %157, %160 : vector<32x32xf32>
    %162 = vector.shape_cast %132 : vector<32x32xf32> to vector<2x4x4x32xf32>
    %163 = vector.shape_cast %139 : vector<32x32xf32> to vector<2x4x4x32xf32>
    %164 = vector.extract_strided_slice %162 {offsets = [0, 0, 0, 0], sizes = [2, 4, 1, 32], strides = [1, 1, 1, 1]} : vector<2x4x4x32xf32> to vector<2x4x1x32xf32>
    %165 = vector.extract_strided_slice %163 {offsets = [0, 0, 0, 0], sizes = [2, 4, 1, 32], strides = [1, 1, 1, 1]} : vector<2x4x4x32xf32> to vector<2x4x1x32xf32>
    %166 = vector.extract_strided_slice %162 {offsets = [0, 0, 1, 0], sizes = [2, 4, 1, 32], strides = [1, 1, 1, 1]} : vector<2x4x4x32xf32> to vector<2x4x1x32xf32>
    %167 = vector.extract_strided_slice %163 {offsets = [0, 0, 1, 0], sizes = [2, 4, 1, 32], strides = [1, 1, 1, 1]} : vector<2x4x4x32xf32> to vector<2x4x1x32xf32>
    %168 = vector.extract_strided_slice %162 {offsets = [0, 0, 2, 0], sizes = [2, 4, 1, 32], strides = [1, 1, 1, 1]} : vector<2x4x4x32xf32> to vector<2x4x1x32xf32>
    %169 = vector.extract_strided_slice %163 {offsets = [0, 0, 2, 0], sizes = [2, 4, 1, 32], strides = [1, 1, 1, 1]} : vector<2x4x4x32xf32> to vector<2x4x1x32xf32>
    %170 = vector.extract_strided_slice %162 {offsets = [0, 0, 3, 0], sizes = [2, 4, 1, 32], strides = [1, 1, 1, 1]} : vector<2x4x4x32xf32> to vector<2x4x1x32xf32>
    %171 = vector.extract_strided_slice %163 {offsets = [0, 0, 3, 0], sizes = [2, 4, 1, 32], strides = [1, 1, 1, 1]} : vector<2x4x4x32xf32> to vector<2x4x1x32xf32>
    %172 = tpu.concatenate %164, %165, %166, %167, %168, %169, %170, %171 in 2 : vector<2x4x1x32xf32>, vector<2x4x1x32xf32>, vector<2x4x1x32xf32>, vector<2x4x1x32xf32>, vector<2x4x1x32xf32>, vector<2x4x1x32xf32>, vector<2x4x1x32xf32>, vector<2x4x1x32xf32> -> vector<2x4x8x32xf32>
    %173 = vector.shape_cast %146 : vector<32x32xf32> to vector<2x4x4x32xf32>
    %174 = vector.shape_cast %161 : vector<32x32xf32> to vector<2x4x4x32xf32>
    %175 = vector.extract_strided_slice %173 {offsets = [0, 0, 0, 0], sizes = [2, 4, 1, 32], strides = [1, 1, 1, 1]} : vector<2x4x4x32xf32> to vector<2x4x1x32xf32>
    %176 = vector.extract_strided_slice %174 {offsets = [0, 0, 0, 0], sizes = [2, 4, 1, 32], strides = [1, 1, 1, 1]} : vector<2x4x4x32xf32> to vector<2x4x1x32xf32>
    %177 = vector.extract_strided_slice %173 {offsets = [0, 0, 1, 0], sizes = [2, 4, 1, 32], strides = [1, 1, 1, 1]} : vector<2x4x4x32xf32> to vector<2x4x1x32xf32>
    %178 = vector.extract_strided_slice %174 {offsets = [0, 0, 1, 0], sizes = [2, 4, 1, 32], strides = [1, 1, 1, 1]} : vector<2x4x4x32xf32> to vector<2x4x1x32xf32>
    %179 = vector.extract_strided_slice %173 {offsets = [0, 0, 2, 0], sizes = [2, 4, 1, 32], strides = [1, 1, 1, 1]} : vector<2x4x4x32xf32> to vector<2x4x1x32xf32>
    %180 = vector.extract_strided_slice %174 {offsets = [0, 0, 2, 0], sizes = [2, 4, 1, 32], strides = [1, 1, 1, 1]} : vector<2x4x4x32xf32> to vector<2x4x1x32xf32>
    %181 = vector.extract_strided_slice %173 {offsets = [0, 0, 3, 0], sizes = [2, 4, 1, 32], strides = [1, 1, 1, 1]} : vector<2x4x4x32xf32> to vector<2x4x1x32xf32>
    %182 = vector.extract_strided_slice %174 {offsets = [0, 0, 3, 0], sizes = [2, 4, 1, 32], strides = [1, 1, 1, 1]} : vector<2x4x4x32xf32> to vector<2x4x1x32xf32>
    %183 = tpu.concatenate %175, %176, %177, %178, %179, %180, %181, %182 in 2 : vector<2x4x1x32xf32>, vector<2x4x1x32xf32>, vector<2x4x1x32xf32>, vector<2x4x1x32xf32>, vector<2x4x1x32xf32>, vector<2x4x1x32xf32>, vector<2x4x1x32xf32>, vector<2x4x1x32xf32> -> vector<2x4x8x32xf32>
    %184 = vector.extract_strided_slice %172 {offsets = [0, 0, 0, 0], sizes = [2, 1, 8, 32], strides = [1, 1, 1, 1]} : vector<2x4x8x32xf32> to vector<2x1x8x32xf32>
    %185 = vector.extract_strided_slice %183 {offsets = [0, 0, 0, 0], sizes = [2, 1, 8, 32], strides = [1, 1, 1, 1]} : vector<2x4x8x32xf32> to vector<2x1x8x32xf32>
    %186 = vector.extract_strided_slice %172 {offsets = [0, 1, 0, 0], sizes = [2, 1, 8, 32], strides = [1, 1, 1, 1]} : vector<2x4x8x32xf32> to vector<2x1x8x32xf32>
    %187 = vector.extract_strided_slice %183 {offsets = [0, 1, 0, 0], sizes = [2, 1, 8, 32], strides = [1, 1, 1, 1]} : vector<2x4x8x32xf32> to vector<2x1x8x32xf32>
    %188 = vector.extract_strided_slice %172 {offsets = [0, 2, 0, 0], sizes = [2, 1, 8, 32], strides = [1, 1, 1, 1]} : vector<2x4x8x32xf32> to vector<2x1x8x32xf32>
    %189 = vector.extract_strided_slice %183 {offsets = [0, 2, 0, 0], sizes = [2, 1, 8, 32], strides = [1, 1, 1, 1]} : vector<2x4x8x32xf32> to vector<2x1x8x32xf32>
    %190 = vector.extract_strided_slice %172 {offsets = [0, 3, 0, 0], sizes = [2, 1, 8, 32], strides = [1, 1, 1, 1]} : vector<2x4x8x32xf32> to vector<2x1x8x32xf32>
    %191 = vector.extract_strided_slice %183 {offsets = [0, 3, 0, 0], sizes = [2, 1, 8, 32], strides = [1, 1, 1, 1]} : vector<2x4x8x32xf32> to vector<2x1x8x32xf32>
    %192 = tpu.concatenate %184, %185, %186, %187, %188, %189, %190, %191 in 1 : vector<2x1x8x32xf32>, vector<2x1x8x32xf32>, vector<2x1x8x32xf32>, vector<2x1x8x32xf32>, vector<2x1x8x32xf32>, vector<2x1x8x32xf32>, vector<2x1x8x32xf32>, vector<2x1x8x32xf32> -> vector<2x8x8x32xf32>
    %193 = vector.shape_cast %192 : vector<2x8x8x32xf32> to vector<128x32xf32>
    %cst_110 = arith.constant dense<0.000000e+00> : vector<32xf32>
    %194 = vector.multi_reduction <add>, %193, %cst_110 [0] : vector<128x32xf32> to vector<32xf32>
    %195 = vector.shape_cast %194 : vector<32xf32> to vector<1x32xf32>
    %cst_111 = arith.constant 1.280000e+02 : f32
    %196 = vector.broadcast %cst_111 : f32 to vector<1x32xf32>
    %197 = arith.divf %195, %196 : vector<1x32xf32>
    %198 = vector.broadcast %197 : vector<1x32xf32> to vector<128x32xf32>
    %199 = arith.subf %193, %198 : vector<128x32xf32>
    %200 = arith.mulf %199, %199 : vector<128x32xf32>
    %cst_112 = arith.constant dense<0.000000e+00> : vector<32xf32>
    %201 = vector.multi_reduction <add>, %200, %cst_112 [0] : vector<128x32xf32> to vector<32xf32>
    %202 = vector.shape_cast %201 : vector<32xf32> to vector<1x32xf32>
    %cst_113 = arith.constant 1.280000e+02 : f32
    %203 = vector.broadcast %cst_113 : f32 to vector<1x32xf32>
    %204 = arith.divf %202, %203 : vector<1x32xf32>
    %205 = vector.broadcast %197 : vector<1x32xf32> to vector<128x32xf32>
    %206 = arith.subf %193, %205 : vector<128x32xf32>
    %cst_114 = arith.constant 9.99999974E-6 : f32
    %207 = vector.broadcast %cst_114 : f32 to vector<1x32xf32>
    %208 = arith.addf %204, %207 : vector<1x32xf32>
    %209 = math.rsqrt %208 : vector<1x32xf32>
    %210 = vector.broadcast %209 : vector<1x32xf32> to vector<128x32xf32>
    %211 = arith.mulf %206, %210 : vector<128x32xf32>
    %c0_115 = arith.constant 0 : index
    %c0_116 = arith.constant 0 : index
    %212 = vector.load %arg7[%c0_115, %c0_116] : memref<1x32xf32, #tpu.memory_space<vmem>>, vector<1x32xf32>
    %213 = vector.broadcast %212 : vector<1x32xf32> to vector<128x32xf32>
    %214 = arith.mulf %211, %213 : vector<128x32xf32>
    %c0_117 = arith.constant 0 : index
    %c0_118 = arith.constant 0 : index
    %215 = vector.load %arg8[%c0_117, %c0_118] : memref<1x32xf32, #tpu.memory_space<vmem>>, vector<1x32xf32>
    %216 = vector.broadcast %215 : vector<1x32xf32> to vector<128x32xf32>
    %217 = arith.addf %214, %216 : vector<128x32xf32>
    %cst_119 = arith.constant 0.000000e+00 : f32
    %218 = vector.broadcast %cst_119 : f32 to vector<128x32xf32>
    %219 = arith.cmpf oge, %217, %218 : vector<128x32xf32>
    %cst_120 = arith.constant 0.00999999977 : f32
    %220 = vector.broadcast %cst_120 : f32 to vector<128x32xf32>
    %221 = arith.mulf %220, %217 : vector<128x32xf32>
    %222 = arith.select %219, %217, %221 : vector<128x32xi1>, vector<128x32xf32>
    %223 = vector.shape_cast %222 : vector<128x32xf32> to vector<2x8x8x32xf32>
    %cst_121 = arith.constant 0.000000e+00 : f32
    %224 = vector.broadcast %cst_121 : f32 to vector<128x128xf32>
    %cst_122 = arith.constant 0.000000e+00 : f32
    %225 = vector.broadcast %cst_122 : f32 to vector<2x1x8x32xf32>
    %226 = vector.extract_strided_slice %223 {offsets = [0, 0, 0, 0], sizes = [2, 7, 8, 32], strides = [1, 1, 1, 1]} : vector<2x8x8x32xf32> to vector<2x7x8x32xf32>
    %227 = tpu.concatenate %225, %226 in 1 : vector<2x1x8x32xf32>, vector<2x7x8x32xf32> -> vector<2x8x8x32xf32>
    %cst_123 = arith.constant 0.000000e+00 : f32
    %228 = vector.broadcast %cst_123 : f32 to vector<2x8x1x32xf32>
    %229 = vector.extract_strided_slice %227 {offsets = [0, 0, 0, 0], sizes = [2, 8, 7, 32], strides = [1, 1, 1, 1]} : vector<2x8x8x32xf32> to vector<2x8x7x32xf32>
    %230 = tpu.concatenate %228, %229 in 2 : vector<2x8x1x32xf32>, vector<2x8x7x32xf32> -> vector<2x8x8x32xf32>
    %231 = vector.shape_cast %230 : vector<2x8x8x32xf32> to vector<128x32xf32>
    %c0_124 = arith.constant 0 : index
    %c0_125 = arith.constant 0 : index
    %c0_126 = arith.constant 0 : index
    %c0_127 = arith.constant 0 : index
    %232 = vector.load %arg9[%c0_124, %c0_125, %c0_126, %c0_127] : memref<3x3x32x128xf32, #tpu.memory_space<vmem>>, vector<1x1x32x128xf32>
    %233 = vector.shape_cast %232 : vector<1x1x32x128xf32> to vector<32x128xf32>
    %cst_128 = arith.constant dense<0.000000e+00> : vector<128x128xf32>
    %234 = tpu.matmul %231, %233, %cst_128 {dimension_numbers = #tpu.dot_dimension_numbers<[1], [0], [0], [1], [0, 0, 1, 1], [], []>} : vector<128x32xf32>, vector<32x128xf32>, vector<128x128xf32> -> vector<128x128xf32>
    %235 = arith.addf %224, %234 : vector<128x128xf32>
    %236 = vector.shape_cast %227 : vector<2x8x8x32xf32> to vector<128x32xf32>
    %c0_129 = arith.constant 0 : index
    %c1_130 = arith.constant 1 : index
    %c0_131 = arith.constant 0 : index
    %c0_132 = arith.constant 0 : index
    %237 = vector.load %arg9[%c0_129, %c1_130, %c0_131, %c0_132] : memref<3x3x32x128xf32, #tpu.memory_space<vmem>>, vector<1x1x32x128xf32>
    %238 = vector.shape_cast %237 : vector<1x1x32x128xf32> to vector<32x128xf32>
    %cst_133 = arith.constant dense<0.000000e+00> : vector<128x128xf32>
    %239 = tpu.matmul %236, %238, %cst_133 {dimension_numbers = #tpu.dot_dimension_numbers<[1], [0], [0], [1], [0, 0, 1, 1], [], []>} : vector<128x32xf32>, vector<32x128xf32>, vector<128x128xf32> -> vector<128x128xf32>
    %240 = arith.addf %235, %239 : vector<128x128xf32>
    %cst_134 = arith.constant 0.000000e+00 : f32
    %241 = vector.broadcast %cst_134 : f32 to vector<2x8x1x32xf32>
    %242 = vector.extract_strided_slice %227 {offsets = [0, 0, 1, 0], sizes = [2, 8, 7, 32], strides = [1, 1, 1, 1]} : vector<2x8x8x32xf32> to vector<2x8x7x32xf32>
    %243 = tpu.concatenate %242, %241 in 2 : vector<2x8x7x32xf32>, vector<2x8x1x32xf32> -> vector<2x8x8x32xf32>
    %244 = vector.shape_cast %243 : vector<2x8x8x32xf32> to vector<128x32xf32>
    %c0_135 = arith.constant 0 : index
    %c2_136 = arith.constant 2 : index
    %c0_137 = arith.constant 0 : index
    %c0_138 = arith.constant 0 : index
    %245 = vector.load %arg9[%c0_135, %c2_136, %c0_137, %c0_138] : memref<3x3x32x128xf32, #tpu.memory_space<vmem>>, vector<1x1x32x128xf32>
    %246 = vector.shape_cast %245 : vector<1x1x32x128xf32> to vector<32x128xf32>
    %cst_139 = arith.constant dense<0.000000e+00> : vector<128x128xf32>
    %247 = tpu.matmul %244, %246, %cst_139 {dimension_numbers = #tpu.dot_dimension_numbers<[1], [0], [0], [1], [0, 0, 1, 1], [], []>} : vector<128x32xf32>, vector<32x128xf32>, vector<128x128xf32> -> vector<128x128xf32>
    %248 = arith.addf %240, %247 : vector<128x128xf32>
    %cst_140 = arith.constant 0.000000e+00 : f32
    %249 = vector.broadcast %cst_140 : f32 to vector<2x8x1x32xf32>
    %250 = vector.extract_strided_slice %223 {offsets = [0, 0, 0, 0], sizes = [2, 8, 7, 32], strides = [1, 1, 1, 1]} : vector<2x8x8x32xf32> to vector<2x8x7x32xf32>
    %251 = tpu.concatenate %249, %250 in 2 : vector<2x8x1x32xf32>, vector<2x8x7x32xf32> -> vector<2x8x8x32xf32>
    %252 = vector.shape_cast %251 : vector<2x8x8x32xf32> to vector<128x32xf32>
    %c1_141 = arith.constant 1 : index
    %c0_142 = arith.constant 0 : index
    %c0_143 = arith.constant 0 : index
    %c0_144 = arith.constant 0 : index
    %253 = vector.load %arg9[%c1_141, %c0_142, %c0_143, %c0_144] : memref<3x3x32x128xf32, #tpu.memory_space<vmem>>, vector<1x1x32x128xf32>
    %254 = vector.shape_cast %253 : vector<1x1x32x128xf32> to vector<32x128xf32>
    %cst_145 = arith.constant dense<0.000000e+00> : vector<128x128xf32>
    %255 = tpu.matmul %252, %254, %cst_145 {dimension_numbers = #tpu.dot_dimension_numbers<[1], [0], [0], [1], [0, 0, 1, 1], [], []>} : vector<128x32xf32>, vector<32x128xf32>, vector<128x128xf32> -> vector<128x128xf32>
    %256 = arith.addf %248, %255 : vector<128x128xf32>
    %257 = vector.shape_cast %223 : vector<2x8x8x32xf32> to vector<128x32xf32>
    %c1_146 = arith.constant 1 : index
    %c1_147 = arith.constant 1 : index
    %c0_148 = arith.constant 0 : index
    %c0_149 = arith.constant 0 : index
    %258 = vector.load %arg9[%c1_146, %c1_147, %c0_148, %c0_149] : memref<3x3x32x128xf32, #tpu.memory_space<vmem>>, vector<1x1x32x128xf32>
    %259 = vector.shape_cast %258 : vector<1x1x32x128xf32> to vector<32x128xf32>
    %cst_150 = arith.constant dense<0.000000e+00> : vector<128x128xf32>
    %260 = tpu.matmul %257, %259, %cst_150 {dimension_numbers = #tpu.dot_dimension_numbers<[1], [0], [0], [1], [0, 0, 1, 1], [], []>} : vector<128x32xf32>, vector<32x128xf32>, vector<128x128xf32> -> vector<128x128xf32>
    %261 = arith.addf %256, %260 : vector<128x128xf32>
    %cst_151 = arith.constant 0.000000e+00 : f32
    %262 = vector.broadcast %cst_151 : f32 to vector<2x8x1x32xf32>
    %263 = vector.extract_strided_slice %223 {offsets = [0, 0, 1, 0], sizes = [2, 8, 7, 32], strides = [1, 1, 1, 1]} : vector<2x8x8x32xf32> to vector<2x8x7x32xf32>
    %264 = tpu.concatenate %263, %262 in 2 : vector<2x8x7x32xf32>, vector<2x8x1x32xf32> -> vector<2x8x8x32xf32>
    %265 = vector.shape_cast %264 : vector<2x8x8x32xf32> to vector<128x32xf32>
    %c1_152 = arith.constant 1 : index
    %c2_153 = arith.constant 2 : index
    %c0_154 = arith.constant 0 : index
    %c0_155 = arith.constant 0 : index
    %266 = vector.load %arg9[%c1_152, %c2_153, %c0_154, %c0_155] : memref<3x3x32x128xf32, #tpu.memory_space<vmem>>, vector<1x1x32x128xf32>
    %267 = vector.shape_cast %266 : vector<1x1x32x128xf32> to vector<32x128xf32>
    %cst_156 = arith.constant dense<0.000000e+00> : vector<128x128xf32>
    %268 = tpu.matmul %265, %267, %cst_156 {dimension_numbers = #tpu.dot_dimension_numbers<[1], [0], [0], [1], [0, 0, 1, 1], [], []>} : vector<128x32xf32>, vector<32x128xf32>, vector<128x128xf32> -> vector<128x128xf32>
    %269 = arith.addf %261, %268 : vector<128x128xf32>
    %cst_157 = arith.constant 0.000000e+00 : f32
    %270 = vector.broadcast %cst_157 : f32 to vector<2x1x8x32xf32>
    %271 = vector.extract_strided_slice %223 {offsets = [0, 1, 0, 0], sizes = [2, 7, 8, 32], strides = [1, 1, 1, 1]} : vector<2x8x8x32xf32> to vector<2x7x8x32xf32>
    %272 = tpu.concatenate %271, %270 in 1 : vector<2x7x8x32xf32>, vector<2x1x8x32xf32> -> vector<2x8x8x32xf32>
    %cst_158 = arith.constant 0.000000e+00 : f32
    %273 = vector.broadcast %cst_158 : f32 to vector<2x8x1x32xf32>
    %274 = vector.extract_strided_slice %272 {offsets = [0, 0, 0, 0], sizes = [2, 8, 7, 32], strides = [1, 1, 1, 1]} : vector<2x8x8x32xf32> to vector<2x8x7x32xf32>
    %275 = tpu.concatenate %273, %274 in 2 : vector<2x8x1x32xf32>, vector<2x8x7x32xf32> -> vector<2x8x8x32xf32>
    %276 = vector.shape_cast %275 : vector<2x8x8x32xf32> to vector<128x32xf32>
    %c2_159 = arith.constant 2 : index
    %c0_160 = arith.constant 0 : index
    %c0_161 = arith.constant 0 : index
    %c0_162 = arith.constant 0 : index
    %277 = vector.load %arg9[%c2_159, %c0_160, %c0_161, %c0_162] : memref<3x3x32x128xf32, #tpu.memory_space<vmem>>, vector<1x1x32x128xf32>
    %278 = vector.shape_cast %277 : vector<1x1x32x128xf32> to vector<32x128xf32>
    %cst_163 = arith.constant dense<0.000000e+00> : vector<128x128xf32>
    %279 = tpu.matmul %276, %278, %cst_163 {dimension_numbers = #tpu.dot_dimension_numbers<[1], [0], [0], [1], [0, 0, 1, 1], [], []>} : vector<128x32xf32>, vector<32x128xf32>, vector<128x128xf32> -> vector<128x128xf32>
    %280 = arith.addf %269, %279 : vector<128x128xf32>
    %281 = vector.shape_cast %272 : vector<2x8x8x32xf32> to vector<128x32xf32>
    %c2_164 = arith.constant 2 : index
    %c1_165 = arith.constant 1 : index
    %c0_166 = arith.constant 0 : index
    %c0_167 = arith.constant 0 : index
    %282 = vector.load %arg9[%c2_164, %c1_165, %c0_166, %c0_167] : memref<3x3x32x128xf32, #tpu.memory_space<vmem>>, vector<1x1x32x128xf32>
    %283 = vector.shape_cast %282 : vector<1x1x32x128xf32> to vector<32x128xf32>
    %cst_168 = arith.constant dense<0.000000e+00> : vector<128x128xf32>
    %284 = tpu.matmul %281, %283, %cst_168 {dimension_numbers = #tpu.dot_dimension_numbers<[1], [0], [0], [1], [0, 0, 1, 1], [], []>} : vector<128x32xf32>, vector<32x128xf32>, vector<128x128xf32> -> vector<128x128xf32>
    %285 = arith.addf %280, %284 : vector<128x128xf32>
    %cst_169 = arith.constant 0.000000e+00 : f32
    %286 = vector.broadcast %cst_169 : f32 to vector<2x8x1x32xf32>
    %287 = vector.extract_strided_slice %272 {offsets = [0, 0, 1, 0], sizes = [2, 8, 7, 32], strides = [1, 1, 1, 1]} : vector<2x8x8x32xf32> to vector<2x8x7x32xf32>
    %288 = tpu.concatenate %287, %286 in 2 : vector<2x8x7x32xf32>, vector<2x8x1x32xf32> -> vector<2x8x8x32xf32>
    %289 = vector.shape_cast %288 : vector<2x8x8x32xf32> to vector<128x32xf32>
    %c2_170 = arith.constant 2 : index
    %c2_171 = arith.constant 2 : index
    %c0_172 = arith.constant 0 : index
    %c0_173 = arith.constant 0 : index
    %290 = vector.load %arg9[%c2_170, %c2_171, %c0_172, %c0_173] : memref<3x3x32x128xf32, #tpu.memory_space<vmem>>, vector<1x1x32x128xf32>
    %291 = vector.shape_cast %290 : vector<1x1x32x128xf32> to vector<32x128xf32>
    %cst_174 = arith.constant dense<0.000000e+00> : vector<128x128xf32>
    %292 = tpu.matmul %289, %291, %cst_174 {dimension_numbers = #tpu.dot_dimension_numbers<[1], [0], [0], [1], [0, 0, 1, 1], [], []>} : vector<128x32xf32>, vector<32x128xf32>, vector<128x128xf32> -> vector<128x128xf32>
    %293 = arith.addf %285, %292 : vector<128x128xf32>
    %c0_175 = arith.constant 0 : index
    %c0_176 = arith.constant 0 : index
    %294 = vector.load %arg10[%c0_175, %c0_176] : memref<1x128xf32, #tpu.memory_space<vmem>>, vector<1x128xf32>
    %295 = vector.broadcast %294 : vector<1x128xf32> to vector<128x128xf32>
    %296 = arith.addf %293, %295 : vector<128x128xf32>
    %297 = math.tanh %296 : vector<128x128xf32>
    %298 = vector.shape_cast %297 : vector<128x128xf32> to vector<2x8x8x128xf32>
    %c0_177 = arith.constant 0 : index
    %c0_178 = arith.constant 0 : index
    %c0_179 = arith.constant 0 : index
    %c0_180 = arith.constant 0 : index
    %299 = vector.load %arg11[%c0_177, %c0_178, %c0_179, %c0_180] : memref<2x8x8x128xf32, #tpu.memory_space<vmem>>, vector<2x8x8x128xf32>
    tpu.vector_store %arg11[%c0_177, %c0_178, %c0_179, %c0_180], %298 {strides = array<i32>} : memref<2x8x8x128xf32, #tpu.memory_space<vmem>>, vector<2x8x8x128xf32>,
    return
  }
}

</mosaic_0001>

<bundles_post_ra>
// kernel: decoder_forward.1
= control target key start
LH: loop header
LB: loop body
LE: loop exit
PB: predicated region body
PF: predicated region fallthrough
CT: control target
= control target key end

     0   :  { %v10788_v3 = vmov 0   ;;  %vm221_vm0 = vcmask 130048   ;;  %vm705_vm1 = vcmask 1040384   ;;  %vm955_vm2 = vsmask.f32 256  ;;  %s13993_s1 = inlined_call_operand.vmem [shape: bf16[16,2048], index: 1, kind: input, shape index: {}]   ;;  %s13994_s0 = inlined_call_operand.vmem [shape: f32[2,16], index: 0, kind: input, shape index: {}]   ;;  %s13995_s3 = inlined_call_operand.vmem [shape: bf16[3,3,512,32], index: 3, kind: input, shape index: {}]   ;;  %s13996_s2 = inlined_call_operand.vmem [shape: f32[1,2048], index: 2, kind: input, shape index: {}]   ;;  %s13997_s6 = inlined_call_operand.vmem [shape: bf16[3,3,32,32], index: 6, kind: input, shape index: {}]   ;;  %s13998_s4 = inlined_call_operand.vmem [shape: f32[1,32], index: 4, kind: input, shape index: {}]   ;;  %s13999_s5 = inlined_call_operand.vmem [shape: f32[1,32], index: 5, kind: input, shape index: {}]   ;;  %s14000_s9 = inlined_call_operand.vmem [shape: f32[3,3,32,128], index: 9, kind: input, shape index: {}]   ;;  %s14001_s7 = inlined_call_operand.vmem [shape: f32[1,32], index: 7, kind: input, shape index: {}]   ;;  %s14002_s8 = inlined_call_operand.vmem [shape: f32[1,32], index: 8, kind: input, shape index: {}]   ;;  %s14003_s10 = inlined_call_operand.vmem [shape: f32[1,128], index: 10, kind: input, shape index: {}]   ;;  %s14004_s11 = inlined_call_operand.vmem [shape: f32[2,8,8,128], index: 11, kind: output, shape index: {}]  }
   0x1   :  { %v41_v0 = vld [vmem:[%s13993_s1] sm:$0xff]  ;;  %v42_v2 = vld [vmem:[%s13993_s1 + $0x8] sm:$0xff]  ;;  %257 = vmatprep.mubr.bf16.mxu0 %v10788_v3  ;;  %298 = vmatprep.mubr.bf16.mxu1 %v10788_v3  ;;  %v43_v8 = vld [vmem:[%s13993_s1 + $0x10] sm:$0xff]  ;;  %vm4526_vm4 = vcmask 1041408   ;;  %vm4531_vm5 = vcmask 1042432   ;;  %vm4664_vm6 = vcmask 261120  }
   0x2   :  { %v49_v1 = vld [vmem:[%s13993_s1 + $0x40] sm:$0xff]  ;;  %v50_v5 = vld [vmem:[%s13993_s1 + $0x48] sm:$0xff]  ;;  %v51_v11 = vld [vmem:[%s13993_s1 + $0x50] sm:$0xff]  ;;  %vm4873_vm7 = vsmask.f32 1280 }
   0x3   :  { %v8380_v4 = vcombine.high %v41_v0, %v49_v1  ;;  %v8379_v6 = vcombine.low %v41_v0, %v49_v1  ;;  %v39_v7 = vld [vmem:[%s13994_s0] sm:$0x3]  ;;  %v8382_v9 = vcombine.high %v42_v2, %v50_v5  ;;  %v8381_v10 = vcombine.low %v42_v2, %v50_v5  ;;  %v44_v12 = vld [vmem:[%s13993_s1 + $0x18] sm:$0xff]  ;;  %v46_v20 = vld [vmem:[%s13993_s1 + $0x28] sm:$0xff] }
   0x4   :  { %v52_v13 = vld [vmem:[%s13993_s1 + $0x58] sm:$0xff]  ;;  %v40_v14 = vpack.c.bf16 %v39_v7, %v39_v7  ;;  %v8384_v15 = vcombine.high %v43_v8, %v51_v11  ;;  %v45_v17 = vld [vmem:[%s13993_s1 + $0x20] sm:$0xff]  ;;  %v8383_v19 = vcombine.low %v43_v8, %v51_v11  ;;  %v54_v21 = vld [vmem:[%s13993_s1 + $0x68] sm:$0xff] }
   0x5   :  { %239 = vmatprep.subr.bf16.mxu0 %v8380_v4  ;;  %v8386_v16 = vcombine.high %v44_v12, %v52_v13  ;;  %v53_v18 = vld [vmem:[%s13993_s1 + $0x60] sm:$0xff]  ;;  %280 = vmatprep.subr.bf16.mxu1 %v8382_v9  ;;  %v8385_v22 = vcombine.low %v44_v12, %v52_v13  ;;  %v8390_v24 = vcombine.high %v46_v20, %v54_v21  ;;  %v47_v25 = vld [vmem:[%s13993_s1 + $0x30] sm:$0xff]  ;;  %v48_v28 = vld [vmem:[%s13993_s1 + $0x38] sm:$0xff]  ;;  %v10789_v9 = vmov 1966171168  }
   0x6   :  { %240 = vmatpush1.bf16.msra.mxu0 %v8379_v6  ;;  %281 = vmatpush1.bf16.msra.mxu1 %v8381_v10  ;;  %v8388_v23 = vcombine.high %v45_v17, %v53_v18  ;;  %v55_v26 = vld [vmem:[%s13993_s1 + $0x70] sm:$0xff]  ;;  %v8387_v27 = vcombine.low %v45_v17, %v53_v18  ;;  %v56_v29 = vld [vmem:[%s13993_s1 + $0x78] sm:$0xff]  ;;  %v8389_v30 = vcombine.low %v46_v20, %v54_v21  ;;  %v10454_v43 = vld [vmem:[%s13995_s3 + $0x468] sm:$0xff]   ;;  %v61_v6 = vlaneseq }
   0x7   :  { %321 = vmatprep.subr.bf16.mxu0 %v8384_v15  ;;  %362 = vmatprep.subr.bf16.mxu1 %v8386_v16  ;;  %v8392_v31 = vcombine.high %v47_v25, %v55_v26  ;;  %v8394_v32 = vcombine.high %v48_v28, %v56_v29  ;;  %v8391_v33 = vcombine.low %v47_v25, %v55_v26  ;;  %v10446_v35 = vld [vmem:[%s13995_s3 + $0x478] sm:$0xff]   ;;  %v10450_v39 = vld [vmem:[%s13995_s3 + $0x470] sm:$0xff]   ;;  %v10455_v44 = vld [vmem:[%s13995_s3 + $0x428] sm:$0xff]   ;;  %v560_v10 = vunpack.c.l.s4 %v10789_v9 }
   0x8   :  { %v8393_v34 = vcombine.low %v48_v28, %v56_v29  ;;  %v10447_v36 = vld [vmem:[%s13995_s3 + $0x438] sm:$0xff]   ;;  %v10451_v40 = vld [vmem:[%s13995_s3 + $0x430] sm:$0xff]   ;;  %v10456_v45 = vld [vmem:[%s13995_s3 + $0x4e8] sm:$0xff]   ;;  %v11021_v7 = vshrl.u32 %v61_v6, 7 }
   0x9   :  { %8395 = vmatmul.mubr.msk.bf16.vlgmr.msra.gmra.mxu0 %vm221_vm0, %v40_v14  ;;  %8396 = vmatmul.mubr.msk.bf16.vlgmr.msra.gmra.mxu1 %vm221_vm0, %v40_v14  ;;  %v10448_v37 = vld [vmem:[%s13995_s3 + $0x4f8] sm:$0xff]   ;;  %v10452_v41 = vld [vmem:[%s13995_s3 + $0x4f0] sm:$0xff]   ;;  %v10457_v46 = vld [vmem:[%s13995_s3 + $0x4a8] sm:$0xff]   ;;  %v561_v15 = vunpack.c.0.s8 %v560_v10 }
   0xa   :  { %322 = vmatpush1.bf16.msra.mxu0 %v8383_v19  ;;  %363 = vmatpush1.bf16.msra.mxu1 %v8385_v22  ;;  %v10449_v38 = vld [vmem:[%s13995_s3 + $0x4b8] sm:$0xff]   ;;  %v10453_v42 = vld [vmem:[%s13995_s3 + $0x4b0] sm:$0xff]   ;;  %v10458_v47 = vld [vmem:[%s13995_s3 + $0x460] sm:$0xff]   ;;  %v11024_v8 = vsub.s32 0, %v11021_v7  ;;  %v11030_v12 = vsub.s32 1, %v11021_v7  ;;  %v11033_v13 = vsub.s32 2, %v11021_v7 }
   0xb   :  { %339 = vmatprep.mubr.bf16.mxu0 %v10788_v3  ;;  %380 = vmatprep.mubr.bf16.mxu1 %v10788_v3  ;;  %v10459_v48 = vld [vmem:[%s13995_s3 + $0x420] sm:$0xff]   ;;  %v10462_v51 = vld [vmem:[%s13995_s3 + $0x458] sm:$0xff]   ;;  %v10466_v55 = vld [vmem:[%s13995_s3 + $0x450] sm:$0xff]   ;;  %v83_v28 = vsub.s32 5, %v11021_v7 }
   0xc   :  { %403 = vmatprep.subr.bf16.mxu0 %v8388_v23  ;;  %444 = vmatprep.subr.bf16.mxu1 %v8390_v24  ;;  %v10460_v49 = vld [vmem:[%s13995_s3 + $0x4e0] sm:$0xff]   ;;  %v10463_v52 = vld [vmem:[%s13995_s3 + $0x418] sm:$0xff]   ;;  %v10467_v56 = vld [vmem:[%s13995_s3 + $0x410] sm:$0xff]   ;;  %v11043_v23 = vsub.s32 %v561_v15, %v11021_v7 }
   0xd   :  { %v10461_v50 = vld [vmem:[%s13995_s3 + $0x4a0] sm:$0xff]   ;;  %v10464_v53 = vld [vmem:[%s13995_s3 + $0x4d8] sm:$0xff]   ;;  %v10468_v57 = vld [vmem:[%s13995_s3 + $0x4d0] sm:$0xff]  }
   0xe   :  { %v10465_v54 = vld [vmem:[%s13995_s3 + $0x498] sm:$0xff]   ;;  %v10469_v58 = vld [vmem:[%s13995_s3 + $0x490] sm:$0xff]   ;;  %v10470_v59 = vld [vmem:[%s13995_s3 + $0x448] sm:$0xff]  }
   0xf   :  { %v10471_v60 = vld [vmem:[%s13995_s3 + $0x408] sm:$0xff]   ;;  %v10474_v63 = vld [vmem:[%s13995_s3 + $0x440] sm:$0xff]   ;;  %v10478_v4 = vld [vmem:[%s13995_s3 + $0x378] sm:$0xff]  }
  0x10   :  { %v10472_v61 = vld [vmem:[%s13995_s3 + $0x4c8] sm:$0xff]   ;;  %v10475_v0 = vld [vmem:[%s13995_s3 + $0x400] sm:$0xff]   ;;  %v10480_v5 = vld [vmem:[%s13995_s3 + $0x3f8] sm:$0xff]  }
  0x11   :  { %8397 = vmatmul.mubr.msk.bf16.vlgmr.msra.gmra.mxu0 %vm221_vm0, %v40_v14  ;;  %8398 = vmatmul.mubr.msk.bf16.vlgmr.msra.gmra.mxu1 %vm221_vm0, %v40_v14  ;;  %v10473_v62 = vld [vmem:[%s13995_s3 + $0x488] sm:$0xff]   ;;  %v10476_v1 = vld [vmem:[%s13995_s3 + $0x4c0] sm:$0xff]   ;;  %vm11161_vm3 = vmand %vm705_vm1, %vm955_vm2  ;;  %vm5991_vm2 = vcmask 1043456  }
  0x12   :  { %404 = vmatpush1.bf16.msra.mxu0 %v8387_v27  ;;  %445 = vmatpush1.bf16.msra.mxu1 %v8389_v30  ;;  %v10477_v2 = vld [vmem:[%s13995_s3 + $0x480] sm:$0xff]   ;;  %v79_v27 = vsub.s32 4, %v11021_v7  ;;  %vm12231_vm8 = vmand %vm4526_vm4, %vm4873_vm7  ;;  %vm6009_vm7 = vcmask 1045504  }
  0x13   :  { %421 = vmatprep.mubr.bf16.mxu0 %v10788_v3  ;;  %462 = vmatprep.mubr.bf16.mxu1 %v10788_v3  ;;  %v57_v11 = vld [vmem:[%s13996_s2] sm:$0xff] }
  0x14   :  { %485 = vmatprep.subr.bf16.mxu0 %v8392_v31  ;;  %526 = vmatprep.subr.bf16.mxu1 %v8394_v32  ;;  %v64_v16 = vrot.slane %v57_v11, %v11024_v8  ;;  %v68_v17 = vrot.slane %v57_v11, %v11030_v12  ;;  %v72_v19 = vrot.slane %v57_v11, %v11033_v13  ;;  %v91_v32 = vsub.s32 7, %v11021_v7 }
  0x19   :  { %8399 = vmatmul.mubr.msk.bf16.vlgmr.msra.gmra.mxu0 %vm221_vm0, %v40_v14  ;;  %8400 = vmatmul.mubr.msk.bf16.vlgmr.msra.gmra.mxu1 %vm221_vm0, %v40_v14 }
  0x1a   :  { %486 = vmatpush1.bf16.msra.mxu0 %v8391_v33  ;;  %527 = vmatpush1.bf16.msra.mxu1 %v8393_v34 }
  0x1b   :  { %503 = vmatprep.mubr.bf16.mxu0 %v10788_v3  ;;  %544 = vmatprep.mubr.bf16.mxu1 %v10788_v3 }
  0x1c   :  { %9462 = vmatprep.subr.bf16.mxu0 %v10446_v35  ;;  %9484 = vmatprep.subr.bf16.mxu1 %v10448_v37  ;;  %v87_v37 = vsub.s32 6, %v11021_v7 }
  0x21   :  { %8401 = vmatmul.mubr.msk.bf16.vlgmr.msra.gmra.mxu0 %vm221_vm0, %v40_v14  ;;  %8402 = vmatmul.mubr.msk.bf16.vlgmr.msra.gmra.mxu1 %vm221_vm0, %v40_v14  ;;  %v11036_v14 = vsub.s32 3, %v11021_v7 }
  0x22   :  { %9463 = vmatpush3.bf16.msra.mxu0 %v10447_v36  ;;  %9485 = vmatpush3.bf16.msra.mxu1 %v10449_v38 }
  0x23   :  { %9464 = vmatprep.subr.bf16.mxu0 %v10450_v39  ;;  %9486 = vmatprep.subr.bf16.mxu1 %v10452_v41  ;;  %v76_v20 = vrot.slane %v57_v11, %v11036_v14  ;;  %v84_v41 = vrot.slane %v57_v11, %v83_v28 }
  0x26   :  { %9465 = vmatpush3.bf16.msra.mxu0 %v10451_v40  ;;  %9487 = vmatpush3.bf16.msra.mxu1 %v10453_v42  ;;  %v80_v40 = vrot.slane %v57_v11, %v79_v27  ;;  %v1203_v42 = vcombine.low %v10788_v3, %v10788_v3 }
  0x27   :  { %9466 = vmatprep.subr.bf16.mxu0 %v10454_v43  ;;  %9488 = vmatprep.subr.bf16.mxu1 %v10456_v45  ;;  %v92_v45 = vrot.slane %v57_v11, %v91_v32 }
  0x2a   :  { %9467 = vmatpush3.bf16.msra.mxu0 %v10455_v44  ;;  %9489 = vmatpush3.bf16.msra.mxu1 %v10457_v46 }
  0x2b   :  { %9468 = vmatprep.subr.bf16.mxu0 %v10458_v47  ;;  %9490 = vmatprep.subr.bf16.mxu1 %v10460_v49  ;;  %v88_v47 = vrot.slane %v57_v11, %v87_v37 }
  0x2e   :  { %9469 = vmatpush3.bf16.msra.mxu0 %v10459_v48  ;;  %9491 = vmatpush3.bf16.msra.mxu1 %v10461_v50 }
  0x2f   :  { %9470 = vmatprep.subr.bf16.mxu0 %v10462_v51  ;;  %9492 = vmatprep.subr.bf16.mxu1 %v10464_v53  ;;  %v1210_v53 = vrot.slane %v1203_v42, %v11043_v23 }
  0x32   :  { %9471 = vmatpush3.bf16.msra.mxu0 %v10463_v52  ;;  %9493 = vmatpush3.bf16.msra.mxu1 %v10465_v54 }
  0x33   :  { %9472 = vmatprep.subr.bf16.mxu0 %v10466_v55  ;;  %9494 = vmatprep.subr.bf16.mxu1 %v10468_v57 }
  0x36   :  { %9473 = vmatpush3.bf16.msra.mxu0 %v10467_v56  ;;  %9495 = vmatpush3.bf16.msra.mxu1 %v10469_v58  ;;  %v58_v56 = vld [vmem:[%s13996_s2 + $0x8] sm:$0xff] }
  0x37   :  { %9474 = vmatprep.subr.bf16.mxu0 %v10470_v59  ;;  %9496 = vmatprep.subr.bf16.mxu1 %v10472_v61  ;;  %v108_v9 = vrot.slane %v58_v56, %v11036_v14  ;;  %v104_v10 = vrot.slane %v58_v56, %v11033_v13  ;;  %v112_v15 = vrot.slane %v58_v56, %v79_v27 }
  0x3a   :  { %9475 = vmatpush3.bf16.msra.mxu0 %v10471_v60  ;;  %9497 = vmatpush3.bf16.msra.mxu1 %v10473_v62 }
  0x3b   :  { %9476 = vmatprep.subr.bf16.mxu0 %v10474_v63  ;;  %9498 = vmatprep.subr.bf16.mxu1 %v10476_v1  ;;  %v100_v1 = vrot.slane %v58_v56, %v11030_v12 }
  0x3e   :  { %9477 = vmatpush3.bf16.msra.mxu0 %v10475_v0  ;;  %9499 = vmatpush3.bf16.msra.mxu1 %v10477_v2  ;;  %v96_v0 = vrot.slane %v58_v56, %v11024_v8  ;;  %v1211_v2 = vcombine.low %v1210_v53, %v1210_v53 }
  0x3f   :  { %9506 = vmatprep.subr.bf16.mxu0 %v10478_v4  ;;  %9528 = vmatprep.subr.bf16.mxu1 %v10480_v5 }
  0xc9   :  { %v259_v18 = vpop.f32.mrf.mxu0  ;;  %v300_v21 = vpop.f32.mrf.mxu1 }
  0xca   :  { %v260_v24 = vadd.f32 %v259_v18, %v64_v16  ;;  %v301_v29 = vadd.f32 %v300_v21, %v72_v19  ;;  %v120_v16 = vrot.slane %v58_v56, %v87_v37  ;;  %v124_v21 = vrot.slane %v58_v56, %v91_v32 }
  0xcb   :  { %v261_v22 = vpop.f32.mrf.mxu0  ;;  %v302_v26 = vpop.f32.mrf.mxu1 }
  0xcc   :  { %v262_v25 = vadd.f32 %v261_v22, %v68_v17  ;;  %v303_v30 = vadd.f32 %v302_v26, %v76_v20  ;;  %v116_v20 = vrot.slane %v58_v56, %v83_v28 }
  0xcd   :  { %v263_v31 = vpop.f32.mrf.mxu0  ;;  %v304_v34 = vpop.f32.mrf.mxu1 }
  0xce   :  { %v557_v33 = vcombine.low %v260_v24, %v262_v25  ;;  %v558_v35 = vcombine.low %v301_v29, %v303_v30  ;;  %v11067_v29 = vrot.slane %v1211_v2, %v11043_v23 }
  0xcf   :  { %v264_v36 = vpop.f32.mrf.mxu0  ;;  %v305_v39 = vpop.f32.mrf.mxu1 }
  0xd0   :  { %v565_v38 = vrot.slane %v557_v33, %v11043_v23  ;;  %v572_v43 = vrot.slane %v558_v35, %v11043_v23 }
  0xd1   :  { %v341_v44 = vpop.f32.mrf.mxu0  ;;  %v382_v46 = vpop.f32.mrf.mxu1 }
  0xd2   :  { %v573_v49 = vcombine.low %v565_v38, %v572_v43  ;;  %v342_v50 = vadd.f32 %v341_v44, %v80_v40  ;;  %v574_v59 = vcombine.high %v565_v38, %v572_v43  ;;  %v383_v60 = vadd.f32 %v382_v46, %v88_v47 }
  0xd3   :  { %v343_v48 = vpop.f32.mrf.mxu0  ;;  %v384_v52 = vpop.f32.mrf.mxu1 }
  0xd4   :  { %v344_v51 = vadd.f32 %v343_v48, %v84_v41  ;;  %v385_v54 = vadd.f32 %v384_v52, %v92_v45  ;;  %v581_v62 = vrot.slane %v573_v49, %v11043_v23  ;;  %v588_v17 = vrot.slane %v574_v59, %v11043_v23 }
  0xd5   :  { %v345_v55 = vpop.f32.mrf.mxu0  ;;  %v386_v58 = vpop.f32.mrf.mxu1 }
  0xd6   :  { %v593_v57 = vcombine.low %v342_v50, %v344_v51  ;;  %v594_v5 = vcombine.low %v383_v60, %v385_v54  ;;  %v628_v22 = vrot.slane %v581_v62, %v11024_v8  ;;  %v632_v30 = vrot.slane %v581_v62, %v11030_v12 }
  0xd7   :  { %v346_v61 = vpop.f32.mrf.mxu0  ;;  %v387_v63 = vpop.f32.mrf.mxu1  ;;  %v636_v35 = vrot.slane %v581_v62, %v11033_v13  ;;  %v640_v36 = vrot.slane %v581_v62, %v11036_v14  ;;  %v644_v38 = vrot.slane %v588_v17, %v11024_v8  ;;  %v648_v39 = vrot.slane %v588_v17, %v11030_v12 }
  0xd8   :  { %v601_v4 = vrot.slane %v593_v57, %v11043_v23  ;;  %v608_v18 = vrot.slane %v594_v5, %v11043_v23  ;;  %v652_v43 = vrot.slane %v588_v17, %v11033_v13  ;;  %v656_v44 = vrot.slane %v588_v17, %v11036_v14 }
  0xd9   :  { %v423_v6 = vpop.f32.mrf.mxu0  ;;  %v464_v11 = vpop.f32.mrf.mxu1 }
  0xda   :  { %v424_v24 = vadd.f32 %v423_v6, %v96_v0  ;;  %v609_v31 = vcombine.low %v601_v4, %v608_v18  ;;  %v610_v27 = vcombine.high %v601_v4, %v608_v18  ;;  %v465_v28 = vadd.f32 %v464_v11, %v104_v10 }
  0xdb   :  { %v425_v19 = vpop.f32.mrf.mxu0  ;;  %v466_v26 = vpop.f32.mrf.mxu1 }
  0xdc   :  { %v426_v25 = vadd.f32 %v425_v19, %v100_v1  ;;  %v467_v33 = vadd.f32 %v466_v26, %v108_v9  ;;  %v617_v40 = vrot.slane %v609_v31, %v11043_v23  ;;  %v624_v41 = vrot.slane %v610_v27, %v11043_v23 }
  0xdd   :  { %v427_v34 = vpop.f32.mrf.mxu0  ;;  %v468_v37 = vpop.f32.mrf.mxu1 }
  0xde   :  { %v718_v32 = vcombine.low %v424_v24, %v426_v25  ;;  %v719_v46 = vcombine.low %v465_v28, %v467_v33  ;;  %v668_v48 = vrot.slane %v617_v40, %v11024_v8  ;;  %v672_v49 = vrot.slane %v617_v40, %v11030_v12 }
  0xdf   :  { %v428_v42 = vpop.f32.mrf.mxu0  ;;  %v469_v47 = vpop.f32.mrf.mxu1  ;;  %v676_v50 = vrot.slane %v617_v40, %v11033_v13  ;;  %v680_v51 = vrot.slane %v617_v40, %v11036_v14  ;;  %v684_v53 = vrot.slane %v624_v41, %v11024_v8  ;;  %v688_v54 = vrot.slane %v624_v41, %v11030_v12 }
  0xe0   :  { %v726_v45 = vrot.slane %v718_v32, %v11043_v23  ;;  %v692_v55 = vrot.slane %v624_v41, %v11033_v13  ;;  %v696_v56 = vrot.slane %v624_v41, %v11036_v14  ;;  %v706_v58 = vsel %vm705_vm1, %v628_v22, %v668_v48 }
  0xe1   :  { %v505_v52 = vpop.f32.mrf.mxu0  ;;  %v546_v57 = vpop.f32.mrf.mxu1  ;;  %v707_v59 = vsel %vm705_vm1, %v632_v30, %v672_v49  ;;  %v708_v60 = vsel %vm705_vm1, %v636_v35, %v676_v50  ;;  %v709_v61 = vsel %vm705_vm1, %v640_v36, %v680_v51  ;;  %v710_v63 = vsel %vm705_vm1, %v644_v38, %v684_v53 }
  0xe2   :  { %v711_v0 = vsel %vm705_vm1, %v648_v39, %v688_v54  ;;  %v712_v1 = vsel %vm705_vm1, %v652_v43, %v692_v55  ;;  %v11095_v2 = vsel %vm705_vm1, %v656_v44, %v696_v56  ;;  %v8403_v5 = vpack.c.bf16 %v707_v59, %v706_v58 }
  0xe3   :  { %v507_v62 = vpop.f32.mrf.mxu0  ;;  %v548_v4 = vpop.f32.mrf.mxu1  ;;  %v8404_v6 = vpack.c.bf16 %v709_v61, %v708_v60  ;;  %v8407_v9 = vpack.c.bf16 %v711_v0, %v710_v63  ;;  %v8408_v10 = vpack.c.bf16 %v11095_v2, %v712_v1  ;;  %v733_v17 = vrot.slane %v719_v46, %v11043_v23 }
  0xe4   :  { %v506_v18 = vadd.f32 %v505_v52, %v112_v15  ;;  %v547_v19 = vadd.f32 %v546_v57, %v120_v16  ;;  %v508_v22 = vadd.f32 %v507_v62, %v116_v20  ;;  %v549_v25 = vadd.f32 %v548_v4, %v124_v21 }
  0xe5   :  { %v509_v11 = vpop.f32.mrf.mxu0  ;;  %v550_v24 = vpop.f32.mrf.mxu1  ;;  %v1002_v30 = vrot.slane %v8403_v5, %v11043_v23  ;;  %v1009_v31 = vrot.slane %v8404_v6, %v11043_v23  ;;  %v1050_v27 = vrot.slane %v8407_v9, %v11043_v23  ;;  %v734_v33 = vcombine.low %v726_v45, %v733_v17 }
  0xe6   :  { %v735_v34 = vcombine.high %v726_v45, %v733_v17  ;;  %v754_v35 = vcombine.low %v506_v18, %v508_v22  ;;  %v1057_v28 = vrot.slane %v8408_v10, %v11043_v23  ;;  %v755_v32 = vcombine.low %v547_v19, %v549_v25 }
  0xe7   :  { %v510_v26 = vpop.f32.mrf.mxu0  ;;  %v551_v36 = vpop.f32.mrf.mxu1  ;;  %v1010_v37 = vcombine.low %v1002_v30, %v1009_v31  ;;  %v874_v15 = vpack.c.bf16 %v706_v58, %v706_v58  ;;  %v875_v16 = vpack.c.bf16 %v707_v59, %v707_v59  ;;  %v742_v20 = vrot.slane %v734_v33, %v11043_v23 }
  0xe8   :  { %v749_v21 = vrot.slane %v735_v34, %v11043_v23  ;;  %v762_v38 = vrot.slane %v754_v35, %v11043_v23  ;;  %v1058_v39 = vcombine.low %v1050_v27, %v1057_v28  ;;  %v769_v40 = vrot.slane %v755_v32, %v11043_v23 }
  0xe9   :  { %v11108_v41 = vrot.slane %v1010_v37, %v11043_v23  ;;  %v876_v42 = vpack.c.bf16 %v708_v60, %v708_v60  ;;  %v877_v43 = vpack.c.bf16 %v709_v61, %v709_v61  ;;  %v789_v44 = vrot.slane %v742_v20, %v11024_v8 }
  0xea   :  { %v793_v45 = vrot.slane %v742_v20, %v11030_v12  ;;  %v797_v46 = vrot.slane %v742_v20, %v11033_v13  ;;  %v801_v47 = vrot.slane %v742_v20, %v11036_v14  ;;  %v805_v48 = vrot.slane %v749_v21, %v11024_v8 }
  0xeb   :  { %v809_v49 = vrot.slane %v749_v21, %v11030_v12  ;;  %v813_v50 = vrot.slane %v749_v21, %v11033_v13  ;;  %v817_v51 = vrot.slane %v749_v21, %v11036_v14  ;;  %v770_v52 = vcombine.low %v762_v38, %v769_v40 }
  0xec   :  { %v771_v53 = vcombine.high %v762_v38, %v769_v40  ;;  %v11119_v54 = vrot.slane %v1058_v39, %v11043_v23  ;;  %v882_v55 = vpack.c.bf16 %v710_v63, %v710_v63  ;;  %v883_v56 = vpack.c.bf16 %v711_v0, %v711_v0 }
  0xed   :  { %v884_v57 = vpack.c.bf16 %v712_v1, %v712_v1  ;;  %v885_v58 = vpack.c.bf16 %v11095_v2, %v11095_v2  ;;  %v11123_v59 = vshrl.u32 %v874_v15, 16  ;;  %v778_v60 = vrot.slane %v770_v52, %v11043_v23 }
  0xee   :  { %v785_v61 = vrot.slane %v771_v53, %v11043_v23  ;;  %v11127_v62 = vshrl.u32 %v875_v16, 16  ;;  %v11129_v4 = vshrl.u32 %v876_v42, 16  ;;  %v11131_v5 = vshrl.u32 %v877_v43, 16 }
  0xef   :  { %v11133_v6 = vshrl.u32 %v882_v55, 16  ;;  %v11135_v63 = vshrl.u32 %v883_v56, 16  ;;  %v11137_v0 = vshrl.u32 %v884_v57, 16  ;;  %v829_v1 = vrot.slane %v778_v60, %v11024_v8 }
  0xf0   :  { %v833_v2 = vrot.slane %v778_v60, %v11030_v12  ;;  %v837_v9 = vrot.slane %v778_v60, %v11033_v13  ;;  %v841_v10 = vrot.slane %v778_v60, %v11036_v14  ;;  %v845_v11 = vrot.slane %v785_v61, %v11024_v8 }
  0xf1   :  { %v849_v17 = vrot.slane %v785_v61, %v11030_v12  ;;  %v853_v18 = vrot.slane %v785_v61, %v11033_v13  ;;  %v857_v19 = vrot.slane %v785_v61, %v11036_v14  ;;  %v866_v22 = vsel %vm705_vm1, %v789_v44, %v829_v1 }
  0xf2   :  { %v867_v24 = vsel %vm705_vm1, %v793_v45, %v833_v2  ;;  %v868_v25 = vsel %vm705_vm1, %v797_v46, %v837_v9  ;;  %v869_v26 = vsel %vm705_vm1, %v801_v47, %v841_v10  ;;  %v870_v30 = vsel %vm705_vm1, %v805_v48, %v845_v11 }
  0xf3   :  { %v871_v31 = vsel %vm705_vm1, %v809_v49, %v849_v17  ;;  %v872_v27 = vsel %vm705_vm1, %v813_v50, %v853_v18  ;;  %v873_v33 = vsel %vm705_vm1, %v817_v51, %v857_v19  ;;  %v8405_v34 = vpack.c.bf16 %v867_v24, %v866_v22  ;;  %v10484_v49 = vld [vmem:[%s13995_s3 + $0x3f0] sm:$0xff]  }
  0xf4   :  { %v8406_v35 = vpack.c.bf16 %v869_v26, %v868_v25  ;;  %v8409_v36 = vpack.c.bf16 %v871_v31, %v870_v30  ;;  %v8410_v28 = vpack.c.bf16 %v873_v33, %v872_v27  ;;  %v878_v32 = vpack.c.bf16 %v866_v22, %v866_v22 }
  0xf5   :  { %v879_v37 = vpack.c.bf16 %v867_v24, %v867_v24  ;;  %v880_v15 = vpack.c.bf16 %v868_v25, %v868_v25  ;;  %v881_v16 = vpack.c.bf16 %v869_v26, %v869_v26  ;;  %v1026_v20 = vrot.slane %v8405_v34, %v11043_v23 }
  0xf6   :  { %v1033_v21 = vrot.slane %v8406_v35, %v11043_v23  ;;  %v1074_v38 = vrot.slane %v8409_v36, %v11043_v23  ;;  %v1081_v39 = vrot.slane %v8410_v28, %v11043_v23  ;;  %v886_v40 = vpack.c.bf16 %v870_v30, %v870_v30 }
  0xf7   :  { %v887_v42 = vpack.c.bf16 %v871_v31, %v871_v31  ;;  %v888_v43 = vpack.c.bf16 %v872_v27, %v872_v27  ;;  %v889_v44 = vpack.c.bf16 %v873_v33, %v873_v33  ;;  %v903_v47 = vshrl.u32 %v878_v32, 16  ;;  %v10481_v32 = vld [vmem:[%s13995_s3 + $0x3b8] sm:$0xff]  }
  0xf8   :  { %v1034_v45 = vcombine.low %v1026_v20, %v1033_v21  ;;  %v1082_v46 = vcombine.low %v1074_v38, %v1081_v39  ;;  %v906_v48 = vshrl.u32 %v879_v37, 16  ;;  %v909_v50 = vshrl.u32 %v880_v15, 16 }
  0xf9   :  { %v912_v51 = vshrl.u32 %v881_v16, 16  ;;  %v924_v52 = vshrl.u32 %v885_v58, 16  ;;  %v927_v53 = vshrl.u32 %v886_v40, 16  ;;  %v930_v57 = vshrl.u32 %v887_v42, 16  ;;  %v10482_v16 = vld [vmem:[%s13995_s3 + $0x370] sm:$0xff]  }
  0xfa   :  { %v11166_v55 = vrot.slane %v1034_v45, %v11043_v23  ;;  %v11169_v56 = vrot.slane %v1082_v46, %v11043_v23  ;;  %v933_v60 = vshrl.u32 %v888_v43, 16  ;;  %v936_v61 = vshrl.u32 %v889_v44, 16  ;;  %v10483_v43 = vld [vmem:[%s13995_s3 + $0x330] sm:$0xff]  }
  0xfb   :  { %v957_v1 = vsel %vm11161_vm3, %v11123_v59, 0  ;;  %v958_v2 = vsel %vm11161_vm3, %v11127_v62, 0  ;;  %v959_v58 = vsel %vm11161_vm3, %v11129_v4, 0  ;;  %v960_v11 = vsel %vm11161_vm3, %v11131_v5, 0 }
  0xfc   :  { %v1301_v9 = vcombine.low %v11108_v41, %v11166_v55  ;;  %v1302_v10 = vcombine.low %v11119_v54, %v11169_v56  ;;  %v961_v59 = vsel %vm11161_vm3, %v903_v47, 0  ;;  %v962_v62 = vsel %vm11161_vm3, %v906_v48, 0 }
  0xfd   :  { %v963_v17 = vsel %vm11161_vm3, %v909_v50, 0  ;;  %v964_v4 = vsel %vm11161_vm3, %v912_v51, 0  ;;  %v965_v41 = vsel %vm11161_vm3, %v11133_v6, 0  ;;  %v966_v18 = vsel %vm11161_vm3, %v11135_v63, 0  ;;  %v10479_v63 = vld [vmem:[%s13995_s3 + $0x338] sm:$0xff]  }
  0xfe   :  { %v1309_v54 = vrot.slane %v1301_v9, %v11043_v23  ;;  %v1316_v5 = vrot.slane %v1302_v10, %v11043_v23  ;;  %v967_v19 = vsel %vm11161_vm3, %v11137_v0, 0  ;;  %v968_v22 = vsel %vm11161_vm3, %v924_v52, 0 }
  0xff   :  { %v969_v24 = vsel %vm11161_vm3, %v927_v53, 0  ;;  %v970_v6 = vsel %vm11161_vm3, %v930_v57, 0  ;;  %v971_v25 = vsel %vm11161_vm3, %v933_v60, 0  ;;  %v972_v0 = vsel %vm11161_vm3, %v936_v61, 0  ;;  %v10485_v53 = vld [vmem:[%s13995_s3 + $0x3b0] sm:$0xff]  }
 0x100   :  { %v1318_v26 = vcombine.high %v1309_v54, %v1316_v5  ;;  %v1317_v30 = vcombine.low %v1309_v54, %v1316_v5  ;;  %v1106_v31 = vcombine.low %v957_v1, %v958_v2  ;;  %v1107_v27 = vcombine.low %v959_v58, %v960_v11  ;;  %v10486_v1 = vld [vmem:[%s13995_s3 + $0x368] sm:$0xff]   ;;  %v10490_v5 = vld [vmem:[%s13995_s3 + $0x360] sm:$0xff]  }
 0x101   :  { %v1130_v33 = vcombine.low %v961_v59, %v962_v62  ;;  %v1131_v34 = vcombine.low %v963_v17, %v964_v4  ;;  %v1154_v35 = vcombine.low %v965_v41, %v966_v18  ;;  %v1155_v15 = vcombine.low %v967_v19, %v968_v22  ;;  %v10487_v2 = vld [vmem:[%s13995_s3 + $0x328] sm:$0xff]   ;;  %v10491_v18 = vld [vmem:[%s13995_s3 + $0x320] sm:$0xff]  }
 0x102   :  { %v11220_v36 = vrot.slane %v1318_v26, %v11043_v23  ;;  %v11223_v28 = vrot.slane %v1317_v30, %v11043_v23  ;;  %v1114_v37 = vrot.slane %v1106_v31, %v11043_v23  ;;  %v1121_v20 = vrot.slane %v1107_v27, %v11043_v23  ;;  %v10488_v11 = vld [vmem:[%s13995_s3 + $0x3e8] sm:$0xff]   ;;  %v10493_v26 = vld [vmem:[%s13995_s3 + $0x3a0] sm:$0xff]   ;;  %v10496_v27 = vld [vmem:[%s13995_s3 + $0x3d8] sm:$0xff]  }
 0x103   :  { %v1138_v21 = vrot.slane %v1130_v33, %v11043_v23  ;;  %v1145_v38 = vrot.slane %v1131_v34, %v11043_v23  ;;  %v1162_v39 = vrot.slane %v1154_v35, %v11043_v23  ;;  %v1169_v44 = vrot.slane %v1155_v15, %v11043_v23  ;;  %v10489_v62 = vld [vmem:[%s13995_s3 + $0x3a8] sm:$0xff]   ;;  %v10497_v35 = vld [vmem:[%s13995_s3 + $0x398] sm:$0xff]   ;;  %v10499_v15 = vld [vmem:[%s13995_s3 + $0x310] sm:$0xff]  }
 0x104   :  { %1563 = vmatprep.mubr.bf16.mxu0 %v11220_v36  ;;  %v11239_v40 = vcombine.high %v11220_v36, %v11220_v36  ;;  %v11243_v42 = vcombine.high %v11223_v28, %v11223_v28  ;;  %v1178_v45 = vcombine.low %v969_v24, %v970_v6  ;;  %v1122_v46 = vcombine.low %v1114_v37, %v1121_v20  ;;  %v10492_v24 = vld [vmem:[%s13995_s3 + $0x3e0] sm:$0xff]   ;;  %v10498_v37 = vld [vmem:[%s13995_s3 + $0x350] sm:$0xff]  }
 0x105   :  { %1564 = vmatmul.mubr.bf16.vlgmr.msra.gmra.mxu0 %v11223_v28  ;;  %v1146_v47 = vcombine.low %v1138_v21, %v1145_v38  ;;  %v1179_v48 = vcombine.low %v971_v25, %v972_v0  ;;  %v2453_v50 = vcombine.low %v11166_v55, %v11067_v29  ;;  %v1170_v51 = vcombine.low %v1162_v39, %v1169_v44  ;;  %v10500_v20 = vld [vmem:[%s13995_s3 + $0x3d0] sm:$0xff]   ;;  %v10502_v38 = vld [vmem:[%s13995_s3 + $0x348] sm:$0xff]  }
 0x106   :  { %9507 = vmatpush3.bf16.msra.mxu0 %v10479_v63  ;;  %1603 = vmatprep.mubr.bf16.mxu1 %v11239_v40  ;;  %v1186_v52 = vrot.slane %v1178_v45, %v11043_v23  ;;  %v2454_v57 = vcombine.low %v11169_v56, %v11067_v29  ;;  %v1129_v60 = vrot.slane %v1122_v46, %v11043_v23  ;;  %v10494_v63 = vld [vmem:[%s13995_s3 + $0x358] sm:$0xff]   ;;  %v10501_v21 = vld [vmem:[%s13995_s3 + $0x390] sm:$0xff]   ;;  %v10503_v39 = vld [vmem:[%s13995_s3 + $0x308] sm:$0xff]   ;;  %vm6000_vm3 = vcmask 1044480  }
 0x107   :  { %1604 = vmatmul.mubr.bf16.vlgmr.msra.gmra.mxu1 %v11243_v42  ;;  %9508 = vmatprep.subr.bf16.mxu0 %v10482_v16  ;;  %v1153_v55 = vrot.slane %v1146_v47, %v11043_v23  ;;  %v1193_v61 = vrot.slane %v1179_v48, %v11043_v23  ;;  %v11273_v56 = vrot.slane %v2453_v50, %v11043_v23  ;;  %v10505_v44 = vld [vmem:[%s13995_s3 + $0x388] sm:$0xff]   ;;  %v10506_v45 = vld [vmem:[%s13995_s3 + $0x340] sm:$0xff]   ;;  %v10510_v50 = vld [vmem:[%s13995_s3 + $0x578] sm:$0xff]  }
 0x108   :  { %9529 = vmatpush3.bf16.msra.mxu1 %v10481_v32  ;;  %v11276_v58 = vrot.slane %v2454_v57, %v11043_v23  ;;  %v1177_v41 = vrot.slane %v1170_v51, %v11043_v23  ;;  %v10507_v46 = vld [vmem:[%s13995_s3 + $0x300] sm:$0xff]   ;;  %v10511_v51 = vld [vmem:[%s13995_s3 + $0x538] sm:$0xff]  }
 0x109   :  { %v1194_v9 = vcombine.low %v1186_v52, %v1193_v61  ;;  %v1741_v10 = vcombine.low %v1129_v60, %v1153_v55  ;;  %9530 = vmatprep.subr.bf16.mxu1 %v10484_v49  ;;  %v4111_v59 = vcombine.low %v1153_v55, %v11067_v29  ;;  %v10508_v47 = vld [vmem:[%s13995_s3 + $0x3c0] sm:$0xff]   ;;  %v10513_v57 = vld [vmem:[%s13995_s3 + $0x5b8] sm:$0xff]   ;;  %v10514_v60 = vld [vmem:[%s13995_s3 + $0x570] sm:$0xff]  }
 0x10a   :  { %9509 = vmatpush3.bf16.msra.mxu0 %v10483_v43  ;;  %v2470_v17 = vcombine.high %v11273_v56, %v11276_v58  ;;  %v2469_v4 = vcombine.low %v11273_v56, %v11276_v58  ;;  %v10504_v43 = vld [vmem:[%s13995_s3 + $0x3c8] sm:$0xff]   ;;  %v10509_v49 = vld [vmem:[%s13995_s3 + $0x380] sm:$0xff]   ;;  %v10515_v55 = vld [vmem:[%s13995_s3 + $0x530] sm:$0xff]  }
 0x10b   :  { %v1201_v54 = vrot.slane %v1194_v9, %v11043_v23  ;;  %9510 = vmatprep.subr.bf16.mxu0 %v10486_v1  ;;  %v1749_v22 = vrot.slane %v1741_v10, %v11043_v23  ;;  %v11303_v25 = vrot.slane %v4111_v59, %v11043_v23  ;;  %v10516_v1 = vld [vmem:[%s13995_s3 + $0x5f0] sm:$0xff]   ;;  %v10518_v9 = vld [vmem:[%s13995_s3 + $0x568] sm:$0xff]   ;;  %v10577_v56 = vld [vmem:[%s13995_s3 + $0x7b8] sm:$0xff]  }
 0x10c   :  { %9531 = vmatpush3.bf16.msra.mxu1 %v10485_v53  ;;  %v10512_v53 = vld [vmem:[%s13995_s3 + $0x5f8] sm:$0xff]   ;;  %v10519_v10 = vld [vmem:[%s13995_s3 + $0x528] sm:$0xff]  }
 0x10d   :  { %v1742_v19 = vcombine.low %v1177_v41, %v1201_v54  ;;  %9532 = vmatprep.subr.bf16.mxu1 %v10488_v11  ;;  %v4112_v6 = vcombine.low %v1201_v54, %v11067_v29  ;;  %v10495_v29 = vld [vmem:[%s13995_s3 + $0x318] sm:$0xff]   ;;  %v10520_v11 = vld [vmem:[%s13995_s3 + $0x5e8] sm:$0xff]   ;;  %v10523_v41 = vld [vmem:[%s13995_s3 + $0x520] sm:$0xff]  }
 0x10e   :  { %9511 = vmatpush3.bf16.msra.mxu0 %v10487_v2  ;;  %v10517_v2 = vld [vmem:[%s13995_s3 + $0x5b0] sm:$0xff]   ;;  %v10521_v59 = vld [vmem:[%s13995_s3 + $0x5a8] sm:$0xff]   ;;  %v10524_v54 = vld [vmem:[%s13995_s3 + $0x5e0] sm:$0xff]  }
 0x10f   :  { %v1756_v30 = vrot.slane %v1742_v19, %v11043_v23  ;;  %9512 = vmatprep.subr.bf16.mxu0 %v10490_v5  ;;  %v11313_v0 = vrot.slane %v4112_v6, %v11043_v23  ;;  %v10525_v5 = vld [vmem:[%s13995_s3 + $0x5a0] sm:$0xff]   ;;  %v10527_v19 = vld [vmem:[%s13995_s3 + $0x518] sm:$0xff]   ;;  %v10530_v6 = vld [vmem:[%s13995_s3 + $0x550] sm:$0xff]  }
 0x110   :  { %9533 = vmatpush3.bf16.msra.mxu1 %v10489_v62  ;;  %v10522_v62 = vld [vmem:[%s13995_s3 + $0x560] sm:$0xff]  }
 0x111   :  { %v1758_v31 = vcombine.high %v1749_v22, %v1756_v30  ;;  %9534 = vmatprep.subr.bf16.mxu1 %v10492_v24  ;;  %v4128_v33 = vcombine.high %v11303_v25, %v11313_v0  ;;  %v4127_v34 = vcombine.low %v11303_v25, %v11313_v0  ;;  %v1757_v48 = vcombine.low %v1749_v22, %v1756_v30  ;;  %v10528_v22 = vld [vmem:[%s13995_s3 + $0x5d8] sm:$0xff]   ;;  %v10532_v30 = vld [vmem:[%s13995_s3 + $0x5d0] sm:$0xff]  }
 0x112   :  { %9513 = vmatpush3.bf16.msra.mxu0 %v10491_v18  ;;  %v10526_v18 = vld [vmem:[%s13995_s3 + $0x558] sm:$0xff]  }
 0x113   :  { %v11329_v32 = vrot.slane %v1758_v31, %v11043_v23  ;;  %9514 = vmatprep.subr.bf16.mxu0 %v10494_v63  ;;  %v11380_v52 = vrot.slane %v1757_v48, %v11043_v23  ;;  %v10529_v24 = vld [vmem:[%s13995_s3 + $0x598] sm:$0xff]   ;;  %v10533_v63 = vld [vmem:[%s13995_s3 + $0x590] sm:$0xff]   ;;  %v10535_v31 = vld [vmem:[%s13995_s3 + $0x508] sm:$0xff]  }
 0x114   :  { %9535 = vmatpush3.bf16.msra.mxu1 %v10493_v26  ;;  %v10531_v26 = vld [vmem:[%s13995_s3 + $0x510] sm:$0xff]  }
 0x115   :  { %2003 = vmatprep.mubr.bf16.mxu0 %v11329_v32  ;;  %v11340_v16 = vcombine.high %v11329_v32, %v11329_v32  ;;  %9536 = vmatprep.subr.bf16.mxu1 %v10496_v27  ;;  %v11397_v61 = vcombine.high %v11380_v52, %v11380_v52  ;;  %v10536_v27 = vld [vmem:[%s13995_s3 + $0x5c8] sm:$0xff]  }
 0x116   :  { %9515 = vmatpush3.bf16.msra.mxu0 %v10495_v29  ;;  %v10534_v29 = vld [vmem:[%s13995_s3 + $0x548] sm:$0xff]  }
 0x117   :  { %2043 = vmatprep.mubr.bf16.mxu1 %v11340_v16  ;;  %9516 = vmatprep.subr.bf16.mxu0 %v10498_v37  ;;  %v10538_v37 = vld [vmem:[%s13995_s3 + $0x540] sm:$0xff]  }
 0x118   :  { %9537 = vmatpush3.bf16.msra.mxu1 %v10497_v35  ;;  %v10537_v35 = vld [vmem:[%s13995_s3 + $0x588] sm:$0xff]  }
 0x119   :  { %9538 = vmatprep.subr.bf16.mxu1 %v10500_v20  ;;  %v10540_v20 = vld [vmem:[%s13995_s3 + $0x5c0] sm:$0xff]  }
 0x11a   :  { %9517 = vmatpush3.bf16.msra.mxu0 %v10499_v15  ;;  %v10539_v15 = vld [vmem:[%s13995_s3 + $0x500] sm:$0xff]  }
 0x11b   :  { %9518 = vmatprep.subr.bf16.mxu0 %v10502_v38  ;;  %v10542_v38 = vld [vmem:[%s13995_s3 + $0x178] sm:$0xff]  }
 0x11c   :  { %9539 = vmatpush3.bf16.msra.mxu1 %v10501_v21  ;;  %v10541_v21 = vld [vmem:[%s13995_s3 + $0x580] sm:$0xff]  }
 0x11d   :  { %9540 = vmatprep.subr.bf16.mxu1 %v10504_v43  ;;  %v10544_v43 = vld [vmem:[%s13995_s3 + $0x1f8] sm:$0xff]  }
 0x11e   :  { %9519 = vmatpush3.bf16.msra.mxu0 %v10503_v39  ;;  %v10543_v39 = vld [vmem:[%s13995_s3 + $0x138] sm:$0xff]  }
 0x11f   :  { %9520 = vmatprep.subr.bf16.mxu0 %v10506_v45  ;;  %v10545_v45 = vld [vmem:[%s13995_s3 + $0x1b8] sm:$0xff]  }
 0x120   :  { %9541 = vmatpush3.bf16.msra.mxu1 %v10505_v44  ;;  %v11493_v44 = vrot.slane %v2470_v17, %v11043_v23  ;;  %v10548_v17 = vld [vmem:[%s13995_s3 + $0x1f0] sm:$0xff]  }
 0x121   :  { %9542 = vmatprep.subr.bf16.mxu1 %v10508_v47  ;;  %v10547_v47 = vld [vmem:[%s13995_s3 + $0x130] sm:$0xff]  }
 0x122   :  { %9521 = vmatpush3.bf16.msra.mxu0 %v10507_v46  ;;  %v10546_v46 = vld [vmem:[%s13995_s3 + $0x170] sm:$0xff]   ;;  %v11511_v48 = vcombine.high %v11493_v44, %v11493_v44 }
 0x123   :  { %9550 = vmatprep.subr.bf16.mxu0 %v10510_v50  ;;  %v10550_v50 = vld [vmem:[%s13995_s3 + $0x168] sm:$0xff]  }
 0x124   :  { %9543 = vmatpush3.bf16.msra.mxu1 %v10509_v49  ;;  %v10549_v49 = vld [vmem:[%s13995_s3 + $0x1b0] sm:$0xff]  }
 0x125   :  { %2004 = vmatmul.mubr.bf16.vlgmr.msra.gmra.mxu0 %v11380_v52  ;;  %9572 = vmatprep.subr.bf16.mxu1 %v10512_v53  ;;  %v10552_v53 = vld [vmem:[%s13995_s3 + $0x1e8] sm:$0xff]  }
 0x126   :  { %9551 = vmatpush3.bf16.msra.mxu0 %v10511_v51  ;;  %2275 = vmatprep.mubr.bf16.mxu0 %v11220_v36  ;;  %v10551_v51 = vld [vmem:[%s13995_s3 + $0x128] sm:$0xff]  }
 0x127   :  { %2044 = vmatmul.mubr.bf16.vlgmr.msra.gmra.mxu1 %v11397_v61  ;;  %9552 = vmatprep.subr.bf16.mxu0 %v10514_v60  ;;  %v10554_v60 = vld [vmem:[%s13995_s3 + $0x160] sm:$0xff]  }
 0x128   :  { %9573 = vmatpush3.bf16.msra.mxu1 %v10513_v57  ;;  %2315 = vmatprep.mubr.bf16.mxu1 %v11239_v40  ;;  %v10553_v57 = vld [vmem:[%s13995_s3 + $0x1a8] sm:$0xff]  }
 0x129   :  { %9574 = vmatprep.subr.bf16.mxu1 %v10516_v1  ;;  %v10556_v1 = vld [vmem:[%s13995_s3 + $0x1e0] sm:$0xff]  }
 0x12a   :  { %9553 = vmatpush3.bf16.msra.mxu0 %v10515_v55  ;;  %v10555_v55 = vld [vmem:[%s13995_s3 + $0x120] sm:$0xff]  }
 0x12b   :  { %9554 = vmatprep.subr.bf16.mxu0 %v10518_v9  ;;  %v10557_v9 = vld [vmem:[%s13995_s3 + $0x1a0] sm:$0xff]  }
 0x12c   :  { %9575 = vmatpush3.bf16.msra.mxu1 %v10517_v2  ;;  %v10558_v2 = vld [vmem:[%s13995_s3 + $0x158] sm:$0xff]  }
 0x12d   :  { %9576 = vmatprep.subr.bf16.mxu1 %v10520_v11  ;;  %v10559_v11 = vld [vmem:[%s13995_s3 + $0x118] sm:$0xff]  }
 0x12e   :  { %9555 = vmatpush3.bf16.msra.mxu0 %v10519_v10  ;;  %v10560_v10 = vld [vmem:[%s13995_s3 + $0x1d8] sm:$0xff]  }
 0x12f   :  { %9556 = vmatprep.subr.bf16.mxu0 %v10522_v62  ;;  %v10561_v62 = vld [vmem:[%s13995_s3 + $0x198] sm:$0xff]  }
 0x130   :  { %9577 = vmatpush3.bf16.msra.mxu1 %v10521_v59  ;;  %v10562_v59 = vld [vmem:[%s13995_s3 + $0x150] sm:$0xff]  }
 0x131   :  { %9578 = vmatprep.subr.bf16.mxu1 %v10524_v54  ;;  %v10563_v54 = vld [vmem:[%s13995_s3 + $0x110] sm:$0xff]  }
 0x132   :  { %9557 = vmatpush3.bf16.msra.mxu0 %v10523_v41  ;;  %v10564_v41 = vld [vmem:[%s13995_s3 + $0x1d0] sm:$0xff]  }
 0x133   :  { %9558 = vmatprep.subr.bf16.mxu0 %v10526_v18  ;;  %v10565_v18 = vld [vmem:[%s13995_s3 + $0x190] sm:$0xff]  }
 0x134   :  { %9579 = vmatpush3.bf16.msra.mxu1 %v10525_v5  ;;  %v10566_v5 = vld [vmem:[%s13995_s3 + $0x148] sm:$0xff]  }
 0x135   :  { %9580 = vmatprep.subr.bf16.mxu1 %v10528_v22  ;;  %v10567_v22 = vld [vmem:[%s13995_s3 + $0x108] sm:$0xff]  }
 0x136   :  { %9559 = vmatpush3.bf16.msra.mxu0 %v10527_v19  ;;  %v10568_v19 = vld [vmem:[%s13995_s3 + $0x1c8] sm:$0xff]  }
 0x137   :  { %9560 = vmatprep.subr.bf16.mxu0 %v10530_v6  ;;  %v10569_v6 = vld [vmem:[%s13995_s3 + $0x188] sm:$0xff]  }
 0x138   :  { %9581 = vmatpush3.bf16.msra.mxu1 %v10529_v24  ;;  %v10570_v24 = vld [vmem:[%s13995_s3 + $0x140] sm:$0xff]  }
 0x139   :  { %9582 = vmatprep.subr.bf16.mxu1 %v10532_v30  ;;  %v10571_v30 = vld [vmem:[%s13995_s3 + $0x100] sm:$0xff]  }
 0x13a   :  { %9561 = vmatpush3.bf16.msra.mxu0 %v10531_v26  ;;  %v10572_v26 = vld [vmem:[%s13995_s3 + $0x1c0] sm:$0xff]  }
 0x13b   :  { %9562 = vmatprep.subr.bf16.mxu0 %v10534_v29  ;;  %v10573_v29 = vld [vmem:[%s13995_s3 + $0x180] sm:$0xff]  }
 0x13c   :  { %9583 = vmatpush3.bf16.msra.mxu1 %v10533_v63  ;;  %v10574_v63 = vld [vmem:[%s13995_s3 + $0x778] sm:$0xff]  }
 0x13d   :  { %9584 = vmatprep.subr.bf16.mxu1 %v10536_v27  ;;  %v10576_v27 = vld [vmem:[%s13995_s3 + $0x7f8] sm:$0xff]  }
 0x13e   :  { %9563 = vmatpush3.bf16.msra.mxu0 %v10535_v31  ;;  %v11597_v31 = vrot.slane %v2469_v4, %v11043_v23  ;;  %v10580_v4 = vld [vmem:[%s13995_s3 + $0x7f0] sm:$0xff]  }
 0x13f   :  { %9564 = vmatprep.subr.bf16.mxu0 %v10538_v37  ;;  %v10578_v37 = vld [vmem:[%s13995_s3 + $0x770] sm:$0xff]  }
 0x140   :  { %9585 = vmatpush3.bf16.msra.mxu1 %v10537_v35  ;;  %v10575_v35 = vld [vmem:[%s13995_s3 + $0x738] sm:$0xff]   ;;  %v11614_v58 = vcombine.high %v11597_v31, %v11597_v31 }
 0x141   :  { %9586 = vmatprep.subr.bf16.mxu1 %v10540_v20  ;;  %v10582_v20 = vld [vmem:[%s13995_s3 + $0x768] sm:$0xff]  }
 0x142   :  { %9565 = vmatpush3.bf16.msra.mxu0 %v10539_v15  ;;  %v10579_v15 = vld [vmem:[%s13995_s3 + $0x730] sm:$0xff]  }
 0x143   :  { %9594 = vmatprep.subr.bf16.mxu0 %v10542_v38  ;;  %v10584_v38 = vld [vmem:[%s13995_s3 + $0x7e8] sm:$0xff]  }
 0x144   :  { %9587 = vmatpush3.bf16.msra.mxu1 %v10541_v21  ;;  %v10581_v21 = vld [vmem:[%s13995_s3 + $0x7b0] sm:$0xff]  }
 0x145   :  { %2276 = vmatmul.mubr.bf16.vlgmr.msra.gmra.mxu0 %v11223_v28  ;;  %9616 = vmatprep.subr.bf16.mxu1 %v10544_v43  ;;  %v10586_v43 = vld [vmem:[%s13995_s3 + $0x760] sm:$0xff]  }
 0x146   :  { %9595 = vmatpush3.bf16.msra.mxu0 %v10543_v39  ;;  %2715 = vmatprep.mubr.bf16.mxu0 %v11493_v44  ;;  %v10583_v39 = vld [vmem:[%s13995_s3 + $0x728] sm:$0xff]  }
 0x147   :  { %2316 = vmatmul.mubr.bf16.vlgmr.msra.gmra.mxu1 %v11243_v42  ;;  %9596 = vmatprep.subr.bf16.mxu0 %v10546_v46  ;;  %v10588_v46 = vld [vmem:[%s13995_s3 + $0x7e0] sm:$0xff]  }
 0x148   :  { %9617 = vmatpush3.bf16.msra.mxu1 %v10545_v45  ;;  %2755 = vmatprep.mubr.bf16.mxu1 %v11511_v48  ;;  %v10585_v45 = vld [vmem:[%s13995_s3 + $0x7a8] sm:$0xff]  }
 0x149   :  { %9618 = vmatprep.subr.bf16.mxu1 %v10548_v17  ;;  %v10590_v17 = vld [vmem:[%s13995_s3 + $0x758] sm:$0xff]  }
 0x14a   :  { %9597 = vmatpush3.bf16.msra.mxu0 %v10547_v47  ;;  %v10587_v47 = vld [vmem:[%s13995_s3 + $0x720] sm:$0xff]  }
 0x14b   :  { %9598 = vmatprep.subr.bf16.mxu0 %v10550_v50  ;;  %v10592_v50 = vld [vmem:[%s13995_s3 + $0x7d8] sm:$0xff]  }
 0x14c   :  { %9619 = vmatpush3.bf16.msra.mxu1 %v10549_v49  ;;  %v10589_v49 = vld [vmem:[%s13995_s3 + $0x7a0] sm:$0xff]  }
 0x14d   :  { %9620 = vmatprep.subr.bf16.mxu1 %v10552_v53  ;;  %v10594_v53 = vld [vmem:[%s13995_s3 + $0x750] sm:$0xff]  }
 0x14e   :  { %9599 = vmatpush3.bf16.msra.mxu0 %v10551_v51  ;;  %v10591_v51 = vld [vmem:[%s13995_s3 + $0x718] sm:$0xff]  }
 0x14f   :  { %9600 = vmatprep.subr.bf16.mxu0 %v10554_v60  ;;  %v10596_v60 = vld [vmem:[%s13995_s3 + $0x7d0] sm:$0xff]  }
 0x150   :  { %9621 = vmatpush3.bf16.msra.mxu1 %v10553_v57  ;;  %v10593_v57 = vld [vmem:[%s13995_s3 + $0x798] sm:$0xff]  }
 0x151   :  { %9622 = vmatprep.subr.bf16.mxu1 %v10556_v1  ;;  %v10598_v1 = vld [vmem:[%s13995_s3 + $0x748] sm:$0xff]  }
 0x152   :  { %9601 = vmatpush3.bf16.msra.mxu0 %v10555_v55  ;;  %v10595_v55 = vld [vmem:[%s13995_s3 + $0x710] sm:$0xff]  }
 0x153   :  { %9602 = vmatprep.subr.bf16.mxu0 %v10558_v2  ;;  %v10597_v2 = vld [vmem:[%s13995_s3 + $0x790] sm:$0xff]  }
 0x154   :  { %9623 = vmatpush3.bf16.msra.mxu1 %v10557_v9  ;;  %v10600_v9 = vld [vmem:[%s13995_s3 + $0x7c8] sm:$0xff]  }
 0x155   :  { %9624 = vmatprep.subr.bf16.mxu1 %v10560_v10  ;;  %v10599_v10 = vld [vmem:[%s13995_s3 + $0x708] sm:$0xff]  }
 0x156   :  { %9603 = vmatpush3.bf16.msra.mxu0 %v10559_v11  ;;  %v10602_v11 = vld [vmem:[%s13995_s3 + $0x740] sm:$0xff]  }
 0x157   :  { %9604 = vmatprep.subr.bf16.mxu0 %v10562_v59  ;;  %v10601_v59 = vld [vmem:[%s13995_s3 + $0x788] sm:$0xff]  }
 0x158   :  { %9625 = vmatpush3.bf16.msra.mxu1 %v10561_v62  ;;  %v10604_v62 = vld [vmem:[%s13995_s3 + $0x7c0] sm:$0xff]  }
 0x159   :  { %9626 = vmatprep.subr.bf16.mxu1 %v10564_v41  ;;  %v10603_v41 = vld [vmem:[%s13995_s3 + $0x700] sm:$0xff]  }
 0x15a   :  { %9605 = vmatpush3.bf16.msra.mxu0 %v10563_v54  ;;  %v10606_v54 = vld [vmem:[%s13995_s3 + $0x678] sm:$0xff]  }
 0x15b   :  { %9606 = vmatprep.subr.bf16.mxu0 %v10566_v5  ;;  %v10605_v5 = vld [vmem:[%s13995_s3 + $0x780] sm:$0xff]  }
 0x15c   :  { %9627 = vmatpush3.bf16.msra.mxu1 %v10565_v18  ;;  %v10608_v18 = vld [vmem:[%s13995_s3 + $0x6f8] sm:$0xff]  }
 0x15d   :  { %9628 = vmatprep.subr.bf16.mxu1 %v10568_v19  ;;  %v10607_v19 = vld [vmem:[%s13995_s3 + $0x638] sm:$0xff]  }
 0x15e   :  { %9607 = vmatpush3.bf16.msra.mxu0 %v10567_v22  ;;  %v10610_v22 = vld [vmem:[%s13995_s3 + $0x670] sm:$0xff]  }
 0x15f   :  { %9608 = vmatprep.subr.bf16.mxu0 %v10570_v24  ;;  %v10609_v24 = vld [vmem:[%s13995_s3 + $0x6b8] sm:$0xff]  }
 0x160   :  { %9629 = vmatpush3.bf16.msra.mxu1 %v10569_v6  ;;  %v10612_v6 = vld [vmem:[%s13995_s3 + $0x6f0] sm:$0xff]  }
 0x161   :  { %9630 = vmatprep.subr.bf16.mxu1 %v10572_v26  ;;  %v10611_v26 = vld [vmem:[%s13995_s3 + $0x630] sm:$0xff]  }
 0x162   :  { %9609 = vmatpush3.bf16.msra.mxu0 %v10571_v30  ;;  %v10614_v30 = vld [vmem:[%s13995_s3 + $0x668] sm:$0xff]  }
 0x163   :  { %9638 = vmatprep.subr.bf16.mxu0 %v10574_v63  ;;  %v10613_v63 = vld [vmem:[%s13995_s3 + $0x6b0] sm:$0xff]  }
 0x164   :  { %9631 = vmatpush3.bf16.msra.mxu1 %v10573_v29  ;;  %v10615_v29 = vld [vmem:[%s13995_s3 + $0x628] sm:$0xff]  }
 0x165   :  { %2716 = vmatmul.mubr.bf16.vlgmr.msra.gmra.mxu0 %v11597_v31  ;;  %9660 = vmatprep.subr.bf16.mxu1 %v10576_v27  ;;  %v10618_v27 = vld [vmem:[%s13995_s3 + $0x660] sm:$0xff]  }
 0x166   :  { %9639 = vmatpush3.bf16.msra.mxu0 %v10575_v35  ;;  %2987 = vmatprep.mubr.bf16.mxu0 %v11220_v36  ;;  %v10620_v35 = vld [vmem:[%s13995_s3 + $0x6e0] sm:$0xff]  }
 0x167   :  { %2756 = vmatmul.mubr.bf16.vlgmr.msra.gmra.mxu1 %v11614_v58  ;;  %9640 = vmatprep.subr.bf16.mxu0 %v10578_v37  ;;  %v10619_v37 = vld [vmem:[%s13995_s3 + $0x620] sm:$0xff]  }
 0x168   :  { %9661 = vmatpush3.bf16.msra.mxu1 %v10577_v56  ;;  %3027 = vmatprep.mubr.bf16.mxu1 %v11239_v40  ;;  %v10622_v56 = vld [vmem:[%s13995_s3 + $0x658] sm:$0xff]  }
 0x169   :  { %9662 = vmatprep.subr.bf16.mxu1 %v10580_v4  ;;  %v10621_v4 = vld [vmem:[%s13995_s3 + $0x6a0] sm:$0xff]  }
 0x16a   :  { %9641 = vmatpush3.bf16.msra.mxu0 %v10579_v15  ;;  %v10624_v15 = vld [vmem:[%s13995_s3 + $0x6d8] sm:$0xff]  }
 0x16b   :  { %9642 = vmatprep.subr.bf16.mxu0 %v10582_v20  ;;  %v10623_v20 = vld [vmem:[%s13995_s3 + $0x618] sm:$0xff]  }
 0x16c   :  { %9663 = vmatpush3.bf16.msra.mxu1 %v10581_v21  ;;  %v10626_v21 = vld [vmem:[%s13995_s3 + $0x650] sm:$0xff]  }
 0x16d   :  { %9664 = vmatprep.subr.bf16.mxu1 %v10584_v38  ;;  %v10625_v38 = vld [vmem:[%s13995_s3 + $0x698] sm:$0xff]  }
 0x16e   :  { %9643 = vmatpush3.bf16.msra.mxu0 %v10583_v39  ;;  %v10628_v39 = vld [vmem:[%s13995_s3 + $0x6d0] sm:$0xff]  }
 0x16f   :  { %9644 = vmatprep.subr.bf16.mxu0 %v10586_v43  ;;  %v10627_v43 = vld [vmem:[%s13995_s3 + $0x610] sm:$0xff]  }
 0x170   :  { %9665 = vmatpush3.bf16.msra.mxu1 %v10585_v45  ;;  %v10630_v45 = vld [vmem:[%s13995_s3 + $0x648] sm:$0xff]  }
 0x171   :  { %9666 = vmatprep.subr.bf16.mxu1 %v10588_v46  ;;  %v10629_v46 = vld [vmem:[%s13995_s3 + $0x690] sm:$0xff]  }
 0x172   :  { %9645 = vmatpush3.bf16.msra.mxu0 %v10587_v47  ;;  %v10632_v47 = vld [vmem:[%s13995_s3 + $0x6c8] sm:$0xff]  }
 0x173   :  { %9646 = vmatprep.subr.bf16.mxu0 %v10590_v17  ;;  %v10631_v17 = vld [vmem:[%s13995_s3 + $0x608] sm:$0xff]  }
 0x174   :  { %9667 = vmatpush3.bf16.msra.mxu1 %v10589_v49  ;;  %v10634_v49 = vld [vmem:[%s13995_s3 + $0x640] sm:$0xff]  }
 0x175   :  { %9668 = vmatprep.subr.bf16.mxu1 %v10592_v50  ;;  %v10633_v50 = vld [vmem:[%s13995_s3 + $0x688] sm:$0xff]  }
 0x176   :  { %9647 = vmatpush3.bf16.msra.mxu0 %v10591_v51  ;;  %v10636_v51 = vld [vmem:[%s13995_s3 + $0x6c0] sm:$0xff]  }
 0x177   :  { %9648 = vmatprep.subr.bf16.mxu0 %v10594_v53  ;;  %v10635_v53 = vld [vmem:[%s13995_s3 + $0x600] sm:$0xff]  }
 0x178   :  { %9669 = vmatpush3.bf16.msra.mxu1 %v10593_v57  ;;  %v10638_v57 = vld [vmem:[%s13995_s3 + $0x878] sm:$0xff]  }
 0x179   :  { %9670 = vmatprep.subr.bf16.mxu1 %v10596_v60  ;;  %v10637_v60 = vld [vmem:[%s13995_s3 + $0x680] sm:$0xff]  }
 0x17a   :  { %9649 = vmatpush3.bf16.msra.mxu0 %v10595_v55  ;;  %v10640_v55 = vld [vmem:[%s13995_s3 + $0x8f8] sm:$0xff]  }
 0x17b   :  { %9650 = vmatprep.subr.bf16.mxu0 %v10598_v1  ;;  %v10639_v1 = vld [vmem:[%s13995_s3 + $0x838] sm:$0xff]  }
 0x17c   :  { %9671 = vmatpush3.bf16.msra.mxu1 %v10597_v2  ;;  %v10642_v2 = vld [vmem:[%s13995_s3 + $0x870] sm:$0xff]  }
 0x17d   :  { %9672 = vmatprep.subr.bf16.mxu1 %v10600_v9  ;;  %v10641_v9 = vld [vmem:[%s13995_s3 + $0x8b8] sm:$0xff]  }
 0x17e   :  { %9651 = vmatpush3.bf16.msra.mxu0 %v10599_v10  ;;  %v10644_v10 = vld [vmem:[%s13995_s3 + $0x8f0] sm:$0xff]  }
 0x17f   :  { %9652 = vmatprep.subr.bf16.mxu0 %v10602_v11  ;;  %v10643_v11 = vld [vmem:[%s13995_s3 + $0x830] sm:$0xff]  }
 0x180   :  { %9673 = vmatpush3.bf16.msra.mxu1 %v10601_v59  ;;  %v10646_v59 = vld [vmem:[%s13995_s3 + $0x868] sm:$0xff]  }
 0x181   :  { %9674 = vmatprep.subr.bf16.mxu1 %v10604_v62  ;;  %v10650_v62 = vld [vmem:[%s13995_s3 + $0x860] sm:$0xff]  }
 0x182   :  { %9653 = vmatpush3.bf16.msra.mxu0 %v10603_v41  ;;  %v10652_v41 = vld [vmem:[%s13995_s3 + $0x8e0] sm:$0xff]  }
 0x183   :  { %9682 = vmatprep.subr.bf16.mxu0 %v10606_v54  ;;  %v10651_v54 = vld [vmem:[%s13995_s3 + $0x820] sm:$0xff]  }
 0x184   :  { %9675 = vmatpush3.bf16.msra.mxu1 %v10605_v5  ;;  %v10654_v5 = vld [vmem:[%s13995_s3 + $0x858] sm:$0xff]  }
 0x185   :  { %2988 = vmatmul.mubr.bf16.vlgmr.msra.gmra.mxu0 %v11223_v28  ;;  %9704 = vmatprep.subr.bf16.mxu1 %v10608_v18  ;;  %v10653_v18 = vld [vmem:[%s13995_s3 + $0x8a0] sm:$0xff]  }
 0x186   :  { %9683 = vmatpush3.bf16.msra.mxu0 %v10607_v19  ;;  %3389 = vmatprep.mubr.bf16.mxu0 %v11329_v32  ;;  %v10616_v32 = vld [vmem:[%s13995_s3 + $0x6e8] sm:$0xff]   ;;  %v10656_v19 = vld [vmem:[%s13995_s3 + $0x8d8] sm:$0xff]  }
 0x187   :  { %3028 = vmatmul.mubr.bf16.vlgmr.msra.gmra.mxu1 %v11243_v42  ;;  %9684 = vmatprep.subr.bf16.mxu0 %v10610_v22  ;;  %v10655_v22 = vld [vmem:[%s13995_s3 + $0x818] sm:$0xff]  }
 0x188   :  { %9705 = vmatpush3.bf16.msra.mxu1 %v10609_v24  ;;  %3429 = vmatprep.mubr.bf16.mxu1 %v11340_v16  ;;  %v10617_v16 = vld [vmem:[%s13995_s3 + $0x6a8] sm:$0xff]   ;;  %v10658_v24 = vld [vmem:[%s13995_s3 + $0x850] sm:$0xff]  }
 0x189   :  { %9706 = vmatprep.subr.bf16.mxu1 %v10612_v6  ;;  %v10657_v6 = vld [vmem:[%s13995_s3 + $0x898] sm:$0xff]  }
 0x18a   :  { %9685 = vmatpush3.bf16.msra.mxu0 %v10611_v26  ;;  %v10660_v26 = vld [vmem:[%s13995_s3 + $0x8d0] sm:$0xff]  }
 0x18b   :  { %9686 = vmatprep.subr.bf16.mxu0 %v10614_v30  ;;  %v10659_v30 = vld [vmem:[%s13995_s3 + $0x810] sm:$0xff]  }
 0x18c   :  { %9707 = vmatpush3.bf16.msra.mxu1 %v10613_v63  ;;  %v10662_v63 = vld [vmem:[%s13995_s3 + $0x848] sm:$0xff]  }
 0x18d   :  { %9708 = vmatprep.subr.bf16.mxu1 %v10616_v32  ;;  %v10661_v32 = vld [vmem:[%s13995_s3 + $0x890] sm:$0xff]  }
 0x18e   :  { %9687 = vmatpush3.bf16.msra.mxu0 %v10615_v29  ;;  %v10664_v29 = vld [vmem:[%s13995_s3 + $0x8c8] sm:$0xff]  }
 0x18f   :  { %9688 = vmatprep.subr.bf16.mxu0 %v10618_v27  ;;  %v10663_v27 = vld [vmem:[%s13995_s3 + $0x808] sm:$0xff]  }
 0x190   :  { %9709 = vmatpush3.bf16.msra.mxu1 %v10617_v16  ;;  %v10666_v16 = vld [vmem:[%s13995_s3 + $0x840] sm:$0xff]  }
 0x191   :  { %9710 = vmatprep.subr.bf16.mxu1 %v10620_v35  ;;  %v10665_v35 = vld [vmem:[%s13995_s3 + $0x888] sm:$0xff]  }
 0x192   :  { %9689 = vmatpush3.bf16.msra.mxu0 %v10619_v37  ;;  %v10668_v37 = vld [vmem:[%s13995_s3 + $0x8c0] sm:$0xff]  }
 0x193   :  { %9690 = vmatprep.subr.bf16.mxu0 %v10622_v56  ;;  %v10667_v56 = vld [vmem:[%s13995_s3 + $0x800] sm:$0xff]  }
 0x194   :  { %9711 = vmatpush3.bf16.msra.mxu1 %v10621_v4  ;;  %v10670_v4 = vld [vmem:[%s13995_s3 + $0x278] sm:$0xff]  }
 0x195   :  { %9712 = vmatprep.subr.bf16.mxu1 %v10624_v15  ;;  %v10669_v15 = vld [vmem:[%s13995_s3 + $0x880] sm:$0xff]  }
 0x196   :  { %9691 = vmatpush3.bf16.msra.mxu0 %v10623_v20  ;;  %v10672_v20 = vld [vmem:[%s13995_s3 + $0x2f8] sm:$0xff]  }
 0x197   :  { %9692 = vmatprep.subr.bf16.mxu0 %v10626_v21  ;;  %v10671_v21 = vld [vmem:[%s13995_s3 + $0x238] sm:$0xff]  }
 0x198   :  { %9713 = vmatpush3.bf16.msra.mxu1 %v10625_v38  ;;  %v10674_v38 = vld [vmem:[%s13995_s3 + $0x270] sm:$0xff]  }
 0x199   :  { %9714 = vmatprep.subr.bf16.mxu1 %v10628_v39  ;;  %v10673_v39 = vld [vmem:[%s13995_s3 + $0x2b8] sm:$0xff]  }
 0x19a   :  { %9693 = vmatpush3.bf16.msra.mxu0 %v10627_v43 }
 0x19b   :  { %9694 = vmatprep.subr.bf16.mxu0 %v10630_v45  ;;  %v10676_v45 = vld [vmem:[%s13995_s3 + $0x2f0] sm:$0xff]  }
 0x19c   :  { %9715 = vmatpush3.bf16.msra.mxu1 %v10629_v46  ;;  %v10675_v46 = vld [vmem:[%s13995_s3 + $0x230] sm:$0xff]  }
 0x19d   :  { %9716 = vmatprep.subr.bf16.mxu1 %v10632_v47 }
 0x19e   :  { %9695 = vmatpush3.bf16.msra.mxu0 %v10631_v17 }
 0x19f   :  { %9696 = vmatprep.subr.bf16.mxu0 %v10634_v49 }
 0x1a0   :  { %9717 = vmatpush3.bf16.msra.mxu1 %v10633_v50 }
 0x1a1   :  { %9718 = vmatprep.subr.bf16.mxu1 %v10636_v51 }
 0x1a2   :  { %9697 = vmatpush3.bf16.msra.mxu0 %v10635_v53 }
 0x1a3   :  { %9726 = vmatprep.subr.bf16.mxu0 %v10638_v57  ;;  %v10679_v57 = vld [vmem:[%s13995_s3 + $0x228] sm:$0xff]  }
 0x1a4   :  { %9719 = vmatpush3.bf16.msra.mxu1 %v10637_v60 }
 0x1a5   :  { %3390 = vmatmul.mubr.bf16.vlgmr.msra.gmra.mxu0 %v11380_v52  ;;  %9748 = vmatprep.subr.bf16.mxu1 %v10640_v55  ;;  %v10645_v52 = vld [vmem:[%s13995_s3 + $0x8b0] sm:$0xff]   ;;  %v10682_v55 = vld [vmem:[%s13995_s3 + $0x260] sm:$0xff]  }
 0x1a6   :  { %9727 = vmatpush3.bf16.msra.mxu0 %v10639_v1  ;;  %3661 = vmatprep.mubr.bf16.mxu0 %v11220_v36  ;;  %v10648_v36 = vld [vmem:[%s13995_s3 + $0x8e8] sm:$0xff]  }
 0x1a7   :  { %3430 = vmatmul.mubr.bf16.vlgmr.msra.gmra.mxu1 %v11397_v61  ;;  %9728 = vmatprep.subr.bf16.mxu0 %v10642_v2  ;;  %v10647_v61 = vld [vmem:[%s13995_s3 + $0x828] sm:$0xff]  }
 0x1a8   :  { %9749 = vmatpush3.bf16.msra.mxu1 %v10641_v9  ;;  %3701 = vmatprep.mubr.bf16.mxu1 %v11239_v40  ;;  %v10649_v40 = vld [vmem:[%s13995_s3 + $0x8a8] sm:$0xff]  }
 0x1a9   :  { %9750 = vmatprep.subr.bf16.mxu1 %v10644_v10  ;;  %v10681_v2 = vld [vmem:[%s13995_s3 + $0x2a8] sm:$0xff]   ;;  %v10684_v10 = vld [vmem:[%s13995_s3 + $0x2e0] sm:$0xff]  }
 0x1aa   :  { %9729 = vmatpush3.bf16.msra.mxu0 %v10643_v11  ;;  %v10683_v11 = vld [vmem:[%s13995_s3 + $0x220] sm:$0xff]  }
 0x1ab   :  { %9730 = vmatprep.subr.bf16.mxu0 %v10646_v59  ;;  %v10686_v59 = vld [vmem:[%s13995_s3 + $0x258] sm:$0xff]  }
 0x1ac   :  { %9751 = vmatpush3.bf16.msra.mxu1 %v10645_v52  ;;  %v10685_v52 = vld [vmem:[%s13995_s3 + $0x2a0] sm:$0xff]  }
 0x1ad   :  { %9752 = vmatprep.subr.bf16.mxu1 %v10648_v36  ;;  %v10688_v36 = vld [vmem:[%s13995_s3 + $0x2d8] sm:$0xff]  }
 0x1ae   :  { %9731 = vmatpush3.bf16.msra.mxu0 %v10647_v61  ;;  %v10687_v61 = vld [vmem:[%s13995_s3 + $0x218] sm:$0xff]  }
 0x1af   :  { %9732 = vmatprep.subr.bf16.mxu0 %v10650_v62  ;;  %v10690_v62 = vld [vmem:[%s13995_s3 + $0x250] sm:$0xff]  }
 0x1b0   :  { %9753 = vmatpush3.bf16.msra.mxu1 %v10649_v40  ;;  %v10689_v40 = vld [vmem:[%s13995_s3 + $0x298] sm:$0xff]  }
 0x1b1   :  { %9754 = vmatprep.subr.bf16.mxu1 %v10652_v41  ;;  %v10692_v41 = vld [vmem:[%s13995_s3 + $0x2d0] sm:$0xff]  }
 0x1b2   :  { %9733 = vmatpush3.bf16.msra.mxu0 %v10651_v54  ;;  %v10691_v54 = vld [vmem:[%s13995_s3 + $0x210] sm:$0xff]  }
 0x1b3   :  { %9734 = vmatprep.subr.bf16.mxu0 %v10654_v5  ;;  %v10694_v5 = vld [vmem:[%s13995_s3 + $0x248] sm:$0xff]  }
 0x1b4   :  { %9755 = vmatpush3.bf16.msra.mxu1 %v10653_v18  ;;  %v10693_v18 = vld [vmem:[%s13995_s3 + $0x290] sm:$0xff]  }
 0x1b5   :  { %9756 = vmatprep.subr.bf16.mxu1 %v10656_v19  ;;  %v10696_v19 = vld [vmem:[%s13995_s3 + $0x2c8] sm:$0xff]  }
 0x1b6   :  { %9735 = vmatpush3.bf16.msra.mxu0 %v10655_v22  ;;  %v10695_v22 = vld [vmem:[%s13995_s3 + $0x208] sm:$0xff]  }
 0x1b7   :  { %9736 = vmatprep.subr.bf16.mxu0 %v10658_v24  ;;  %v10698_v24 = vld [vmem:[%s13995_s3 + $0x240] sm:$0xff]  }
 0x1b8   :  { %9757 = vmatpush3.bf16.msra.mxu1 %v10657_v6  ;;  %v10697_v6 = vld [vmem:[%s13995_s3 + $0x288] sm:$0xff]  }
 0x1b9   :  { %9758 = vmatprep.subr.bf16.mxu1 %v10660_v26  ;;  %v10700_v26 = vld [vmem:[%s13995_s3 + $0x2c0] sm:$0xff]  }
 0x1ba   :  { %9737 = vmatpush3.bf16.msra.mxu0 %v10659_v30  ;;  %v10699_v30 = vld [vmem:[%s13995_s3 + $0x200] sm:$0xff]  }
 0x1bb   :  { %9738 = vmatprep.subr.bf16.mxu0 %v10662_v63  ;;  %v10702_v63 = vld [vmem:[%s13995_s3 + $0x78] sm:$0xff]  }
 0x1bc   :  { %9759 = vmatpush3.bf16.msra.mxu1 %v10661_v32  ;;  %v10701_v32 = vld [vmem:[%s13995_s3 + $0x280] sm:$0xff]  }
 0x1bd   :  { %9760 = vmatprep.subr.bf16.mxu1 %v10664_v29  ;;  %v10704_v29 = vld [vmem:[%s13995_s3 + $0xf8] sm:$0xff]  }
 0x1be   :  { %9739 = vmatpush3.bf16.msra.mxu0 %v10663_v27  ;;  %v10703_v27 = vld [vmem:[%s13995_s3 + $0x38] sm:$0xff]  }
 0x1bf   :  { %9740 = vmatprep.subr.bf16.mxu0 %v10666_v16  ;;  %v4142_v16 = vrot.slane %v4128_v33, %v11043_v23 }
 0x1c0   :  { %9761 = vmatpush3.bf16.msra.mxu1 %v10665_v35  ;;  %v10706_v35 = vld [vmem:[%s13995_s3 + $0x70] sm:$0xff]  }
 0x1c1   :  { %9762 = vmatprep.subr.bf16.mxu1 %v10668_v37  ;;  %v10705_v37 = vld [vmem:[%s13995_s3 + $0xb8] sm:$0xff]   ;;  %v4144_v33 = vcombine.high %v4142_v16, %v4142_v16 }
 0x1c2   :  { %9741 = vmatpush3.bf16.msra.mxu0 %v10667_v56 }
 0x1c3   :  { %9770 = vmatprep.subr.bf16.mxu0 %v10670_v4  ;;  %v10708_v4 = vld [vmem:[%s13995_s3 + $0xf0] sm:$0xff]  }
 0x1c4   :  { %9763 = vmatpush3.bf16.msra.mxu1 %v10669_v15  ;;  %v10707_v15 = vld [vmem:[%s13995_s3 + $0x30] sm:$0xff]  }
 0x1c5   :  { %3662 = vmatmul.mubr.bf16.vlgmr.msra.gmra.mxu0 %v11223_v28  ;;  %v9478_v43 = vpop.f32.mrf.mxu0  ;;  %9792 = vmatprep.subr.bf16.mxu1 %v10672_v20  ;;  %v10678_v28 = vld [vmem:[%s13995_s3 + $0x268] sm:$0xff]  }
 0x1c6   :  { %9771 = vmatpush3.bf16.msra.mxu0 %v10671_v21  ;;  %3998 = vmatprep.mubr.bf16.mxu0 %v11493_v44  ;;  %v10677_v44 = vld [vmem:[%s13995_s3 + $0x2b0] sm:$0xff]  }
 0x1c7   :  { %3702 = vmatmul.mubr.bf16.vlgmr.msra.gmra.mxu1 %v11243_v42  ;;  %v9479_v47 = vpop.f32.mrf.mxu0  ;;  %v9500_v17 = vpop.f32.mrf.mxu1  ;;  %9772 = vmatprep.subr.bf16.mxu0 %v10674_v38  ;;  %v10680_v42 = vld [vmem:[%s13995_s3 + $0x2e8] sm:$0xff]   ;;  %v10709_v38 = vld [vmem:[%s13995_s3 + $0xb0] sm:$0xff]  }
 0x1c8   :  { %9793 = vmatpush3.bf16.msra.mxu1 %v10673_v39  ;;  %4038 = vmatprep.mubr.bf16.mxu1 %v11511_v48  ;;  %v9480_v51 = vadd.f32 %v9479_v47, %v9478_v43  ;;  %v10711_v47 = vld [vmem:[%s13995_s3 + $0x28] sm:$0xff]  }
 0x1c9   :  { %v9481_v49 = vpop.f32.mrf.mxu0  ;;  %v9501_v50 = vpop.f32.mrf.mxu1  ;;  %9794 = vmatprep.subr.bf16.mxu1 %v10676_v45  ;;  %v10712_v45 = vld [vmem:[%s13995_s3 + $0xe8] sm:$0xff]  }
 0x1ca   :  { %v9502_v53 = vadd.f32 %v9501_v50, %v9500_v17  ;;  %9773 = vmatpush3.bf16.msra.mxu0 %v10675_v46  ;;  %v10713_v50 = vld [vmem:[%s13995_s3 + $0xa8] sm:$0xff]  }
 0x1cb   :  { %v9482_v60 = vpop.f32.mrf.mxu0  ;;  %v9503_v48 = vpop.f32.mrf.mxu1  ;;  %9774 = vmatprep.subr.bf16.mxu0 %v10678_v28 }
 0x1cc   :  { %v11940_v1 = vadd.f32 %v9502_v53, %v9480_v51  ;;  %9795 = vmatpush3.bf16.msra.mxu1 %v10677_v44  ;;  %v10714_v44 = vld [vmem:[%s13995_s3 + $0x60] sm:$0xff]   ;;  %v10720_v48 = vld [vmem:[%s13995_s3 + $0xd8] sm:$0xff]  }
 0x1cd   :  { %v9504_v9 = vpop.f32.mrf.mxu1  ;;  %9796 = vmatprep.subr.bf16.mxu1 %v10680_v42  ;;  %v10716_v51 = vld [vmem:[%s13995_s3 + $0xe0] sm:$0xff]  }
 0x1ce   :  { %9775 = vmatpush3.bf16.msra.mxu0 %v10679_v57  ;;  %v10715_v53 = vld [vmem:[%s13995_s3 + $0x20] sm:$0xff]   ;;  %v10718_v57 = vld [vmem:[%s13995_s3 + $0x58] sm:$0xff]  }
 0x1cf   :  { %9776 = vmatprep.subr.bf16.mxu0 %v10682_v55  ;;  %v10717_v60 = vld [vmem:[%s13995_s3 + $0xa0] sm:$0xff]   ;;  %v10719_v55 = vld [vmem:[%s13995_s3 + $0x18] sm:$0xff]  }
 0x1d0   :  { %9797 = vmatpush3.bf16.msra.mxu1 %v10681_v2  ;;  %v10722_v2 = vld [vmem:[%s13995_s3 + $0x50] sm:$0xff]   ;;  %v10721_v9 = vld [vmem:[%s13995_s3 + $0x98] sm:$0xff]  }
 0x1d1   :  { %9798 = vmatprep.subr.bf16.mxu1 %v10684_v10  ;;  %v10724_v10 = vld [vmem:[%s13995_s3 + $0xd0] sm:$0xff]  }
 0x1d2   :  { %9777 = vmatpush3.bf16.msra.mxu0 %v10683_v11  ;;  %v10723_v11 = vld [vmem:[%s13995_s3 + $0x10] sm:$0xff]  }
 0x1d3   :  { %9778 = vmatprep.subr.bf16.mxu0 %v10686_v59  ;;  %v10726_v59 = vld [vmem:[%s13995_s3 + $0x48] sm:$0xff]  }
 0x1d4   :  { %9799 = vmatpush3.bf16.msra.mxu1 %v10685_v52  ;;  %v10725_v52 = vld [vmem:[%s13995_s3 + $0x90] sm:$0xff]  }
 0x1d5   :  { %9800 = vmatprep.subr.bf16.mxu1 %v10688_v36  ;;  %v10728_v36 = vld [vmem:[%s13995_s3 + $0xc8] sm:$0xff]  }
 0x1d6   :  { %9779 = vmatpush3.bf16.msra.mxu0 %v10687_v61  ;;  %v10727_v61 = vld [vmem:[%s13995_s3 + $0x8] sm:$0xff]  }
 0x1d7   :  { %9780 = vmatprep.subr.bf16.mxu0 %v10690_v62  ;;  %v10730_v62 = vld [vmem:[%s13995_s3 + $0x40] sm:$0xff]  }
 0x1d8   :  { %9801 = vmatpush3.bf16.msra.mxu1 %v10689_v40  ;;  %v10729_v40 = vld [vmem:[%s13995_s3 + $0x88] sm:$0xff]  }
 0x1d9   :  { %9802 = vmatprep.subr.bf16.mxu1 %v10692_v41  ;;  %v10790_v41 = vmov 1983009808  }
 0x1da   :  { %9781 = vmatpush3.bf16.msra.mxu0 %v10691_v54  ;;  %v4425_v54 = vunpack.c.l.s4 %v10790_v41 }
 0x1db   :  { %9782 = vmatprep.subr.bf16.mxu0 %v10694_v5  ;;  %v10732_v5 = vld [vmem:[%s13995_s3 + $0xc0] sm:$0xff]  }
 0x1dc   :  { %9803 = vmatpush3.bf16.msra.mxu1 %v10693_v18  ;;  %v10731_v18 = vld [vmem:[%s13995_s3] sm:$0xff]  }
 0x1dd   :  { %9804 = vmatprep.subr.bf16.mxu1 %v10696_v19  ;;  %v10733_v19 = vld [vmem:[%s13995_s3 + $0x80] sm:$0xff]  }
 0x1de   :  { %9783 = vmatpush3.bf16.msra.mxu0 %v10695_v22  ;;  %v4426_v22 = vunpack.c.0.s8 %v4425_v54 }
 0x1df   :  { %9784 = vmatprep.subr.bf16.mxu0 %v10698_v24  ;;  %v4135_v24 = vrot.slane %v4127_v34, %v11043_v23 }
 0x1e0   :  { %9805 = vmatpush3.bf16.msra.mxu1 %v10697_v6  ;;  %v12109_v6 = vsub.s32 %v4426_v22, %v11021_v7 }
 0x1e1   :  { %9806 = vmatprep.subr.bf16.mxu1 %v10700_v26 }
 0x1e2   :  { %9785 = vmatpush3.bf16.msra.mxu0 %v10699_v30  ;;  %v4143_v30 = vcombine.high %v4135_v24, %v4135_v24 }
 0x1e3   :  { %9814 = vmatprep.subr.bf16.mxu0 %v10702_v63  ;;  %v4423_v63 = vcombine.high %v11940_v1, %v11940_v1 }
 0x1e4   :  { %9807 = vmatpush3.bf16.msra.mxu1 %v10701_v32 }
 0x1e5   :  { %v9522_v56 = vpop.f32.mrf.mxu0  ;;  %3999 = vmatmul.mubr.bf16.vlgmr.msra.gmra.mxu0 %v11597_v31  ;;  %9836 = vmatprep.subr.bf16.mxu1 %v10704_v29  ;;  %v10710_v31 = vld [vmem:[%s13995_s3 + $0x68] sm:$0xff]   ;;  %v4437_v7 = vrot.slane %v4423_v63, %v12109_v6 }
 0x1e6   :  { %9815 = vmatpush3.bf16.msra.mxu0 %v10703_v27  ;;  %4373 = vmatprep.mubr.bf16.mxu0 %v4142_v16  ;;  %v4430_v16 = vrot.slane %v11940_v1, %v12109_v6 }
 0x1e7   :  { %v9523_v20 = vpop.f32.mrf.mxu0  ;;  %v9544_v21 = vpop.f32.mrf.mxu1  ;;  %4039 = vmatmul.mubr.bf16.vlgmr.msra.gmra.mxu1 %v11614_v58  ;;  %9816 = vmatprep.subr.bf16.mxu0 %v10706_v35 }
 0x1e8   :  { %9837 = vmatpush3.bf16.msra.mxu1 %v10705_v37  ;;  %4413 = vmatprep.mubr.bf16.mxu1 %v4144_v33  ;;  %v9524_v46 = vadd.f32 %v9523_v20, %v9522_v56 }
 0x1e9   :  { %v9525_v39 = vpop.f32.mrf.mxu0  ;;  %v9545_v43 = vpop.f32.mrf.mxu1  ;;  %9838 = vmatprep.subr.bf16.mxu1 %v10708_v4  ;;  %v4438_v4 = vcombine.high %v4430_v16, %v4430_v16 }
 0x1ea   :  { %v9546_v58 = vadd.f32 %v9545_v43, %v9544_v21  ;;  %9817 = vmatpush3.bf16.msra.mxu0 %v10707_v15  ;;  %v4439_v21 = vcombine.high %v4437_v7, %v4437_v7  ;;  %v4485_v39 = vrot.slane %v4430_v16, %v11030_v12 }
 0x1eb   :  { %v9526_v17 = vpop.f32.mrf.mxu0  ;;  %v9547_v28 = vpop.f32.mrf.mxu1  ;;  %9818 = vmatprep.subr.bf16.mxu0 %v10710_v31  ;;  %v4489_v43 = vrot.slane %v4438_v4, %v11030_v12 }
 0x1ec   :  { %v2046_v49 = vadd.f32 %v9546_v58, %v9524_v46  ;;  %9839 = vmatpush3.bf16.msra.mxu1 %v10709_v38  ;;  %v4497_v17 = vrot.slane %v4439_v21, %v11030_v12 }
 0x1ed   :  { %v9548_v42 = vpop.f32.mrf.mxu1  ;;  %9840 = vmatprep.subr.bf16.mxu1 %v10712_v45  ;;  %v4493_v45 = vrot.slane %v4437_v7, %v11030_v12 }
 0x1ee   :  { %9819 = vmatpush3.bf16.msra.mxu0 %v10711_v47 }
 0x1ef   :  { %9820 = vmatprep.subr.bf16.mxu0 %v10714_v44 }
 0x1f0   :  { %9841 = vmatpush3.bf16.msra.mxu1 %v10713_v50 }
 0x1f1   :  { %9842 = vmatprep.subr.bf16.mxu1 %v10716_v51 }
 0x1f2   :  { %9821 = vmatpush3.bf16.msra.mxu0 %v10715_v53 }
 0x1f3   :  { %9822 = vmatprep.subr.bf16.mxu0 %v10718_v57 }
 0x1f4   :  { %9843 = vmatpush3.bf16.msra.mxu1 %v10717_v60 }
 0x1f5   :  { %9844 = vmatprep.subr.bf16.mxu1 %v10720_v48 }
 0x1f6   :  { %9823 = vmatpush3.bf16.msra.mxu0 %v10719_v55 }
 0x1f7   :  { %9824 = vmatprep.subr.bf16.mxu0 %v10722_v2 }
 0x1f8   :  { %9845 = vmatpush3.bf16.msra.mxu1 %v10721_v9 }
 0x1f9   :  { %9846 = vmatprep.subr.bf16.mxu1 %v10724_v10 }
 0x1fa   :  { %9825 = vmatpush3.bf16.msra.mxu0 %v10723_v11 }
 0x1fb   :  { %9826 = vmatprep.subr.bf16.mxu0 %v10726_v59 }
 0x1fc   :  { %9847 = vmatpush3.bf16.msra.mxu1 %v10725_v52 }
 0x1fd   :  { %9848 = vmatprep.subr.bf16.mxu1 %v10728_v36 }
 0x1fe   :  { %9827 = vmatpush3.bf16.msra.mxu0 %v10727_v61 }
 0x1ff   :  { %9828 = vmatprep.subr.bf16.mxu0 %v10730_v62 }
 0x200   :  { %9849 = vmatpush3.bf16.msra.mxu1 %v10729_v40 }
 0x201   :  { %9850 = vmatprep.subr.bf16.mxu1 %v10732_v5 }
 0x202   :  { %9829 = vmatpush3.bf16.msra.mxu0 %v10731_v18 }
 0x204   :  { %9851 = vmatpush3.bf16.msra.mxu1 %v10733_v19 }
 0x205   :  { %v9566_v26 = vpop.f32.mrf.mxu0  ;;  %4374 = vmatmul.mubr.bf16.vlgmr.msra.gmra.mxu0 %v4135_v24 }
 0x207   :  { %v9567_v32 = vpop.f32.mrf.mxu0  ;;  %v9588_v29 = vpop.f32.mrf.mxu1  ;;  %4414 = vmatmul.mubr.bf16.vlgmr.msra.gmra.mxu1 %v4143_v30 }
 0x208   :  { %v9568_v27 = vadd.f32 %v9567_v32, %v9566_v26 }
 0x209   :  { %v9569_v25 = vpop.f32.mrf.mxu0  ;;  %v9589_v23 = vpop.f32.mrf.mxu1 }
 0x20a   :  { %v2278_v0 = vadd.f32 %v9568_v27, %v2046_v49  ;;  %v9590_v34 = vadd.f32 %v9589_v23, %v9588_v29 }
 0x20b   :  { %v9570_v35 = vpop.f32.mrf.mxu0  ;;  %v9591_v37 = vpop.f32.mrf.mxu1 }
 0x20c   :  { %v2318_v56 = vadd.f32 %v9590_v34, %v2278_v0 }
 0x20d   :  { %v9592_v33 = vpop.f32.mrf.mxu1 }
 0x20e   :  { %v4445_v15 = vcombine.high %v2318_v56, %v2318_v56  ;;  %v4452_v20 = vrot.slane %v2318_v56, %v12109_v6 }
 0x210   :  { %v4459_v31 = vrot.slane %v4445_v15, %v12109_v6  ;;  %v4460_v38 = vcombine.high %v4452_v20, %v4452_v20  ;;  %v4465_v1 = vrot.slane %v4452_v20, %v11024_v8  ;;  %v4505_v28 = vrot.slane %v4452_v20, %v11030_v12 }
 0x212   :  { %v4461_v46 = vcombine.high %v4459_v31, %v4459_v31  ;;  %v4469_v58 = vrot.slane %v4460_v38, %v11024_v8  ;;  %v4473_v47 = vrot.slane %v4459_v31, %v11024_v8  ;;  %v4509_v44 = vrot.slane %v4460_v38, %v11030_v12 }
 0x213   :  { %v4522_v49 = vsel %vm705_vm1, %v4430_v16, %v4465_v1  ;;  %v4513_v42 = vrot.slane %v4459_v31, %v11030_v12 }
 0x214   :  { %v4477_v50 = vrot.slane %v4461_v46, %v11024_v8  ;;  %v4523_v51 = vsel %vm705_vm1, %v4438_v4, %v4469_v58  ;;  %v4524_v53 = vsel %vm705_vm1, %v4437_v7, %v4473_v47  ;;  %v4517_v57 = vrot.slane %v4461_v46, %v11030_v12 }
 0x215   :  { %v4527_v60 = vsel %vm4526_vm4, %v4522_v49, %v4485_v39  ;;  %v4528_v48 = vsel %vm4526_vm4, %v4523_v51, %v4489_v43  ;;  %v4529_v55 = vsel %vm4526_vm4, %v4524_v53, %v4493_v45  ;;  %v10734_v51 = vld [vmem:[%s13997_s6 + $0x48] sm:$0xff]   ;;  %v10735_v53 = vld [vmem:[%s13997_s6 + $0x40] sm:$0xff]  }
 0x216   :  { %v4525_v2 = vsel %vm705_vm1, %v4439_v21, %v4477_v50  ;;  %v12138_v9 = vsel %vm4531_vm5, %v4527_v60, %v4505_v28  ;;  %v12141_v10 = vsel %vm4531_vm5, %v4528_v48, %v4509_v44  ;;  %v12144_v11 = vsel %vm4531_vm5, %v4529_v55, %v4513_v42  ;;  %10074 = vmatprep.subr.bf16.mxu0 %v10734_v51 }
 0x217   :  { %v4530_v59 = vsel %vm4526_vm4, %v4525_v2, %v4497_v17  ;;  %10075 = vmatpush3.bf16.msra.mxu0 %v10734_v51 }
 0x218   :  { %v12148_v52 = vsel %vm4531_vm5, %v4530_v59, %v4517_v57  ;;  %10076 = vmatprep.subr.bf16.mxu0 %v10735_v53 }
 0x21b   :  { %10077 = vmatpush3.bf16.msra.mxu0 %v10735_v53 }
 0x225   :  { %v9610_v36 = vpop.f32.mrf.mxu0 }
 0x227   :  { %v9611_v61 = vpop.f32.mrf.mxu0  ;;  %v9632_v62 = vpop.f32.mrf.mxu1 }
 0x228   :  { %v9612_v54 = vadd.f32 %v9611_v61, %v9610_v36 }
 0x229   :  { %v9613_v40 = vpop.f32.mrf.mxu0  ;;  %v9633_v41 = vpop.f32.mrf.mxu1 }
 0x22a   :  { %v9634_v5 = vadd.f32 %v9633_v41, %v9632_v62  ;;  %v12161_v62 = vld [vmem:[%s13997_s6 + $0x58] sm:$0xff]   ;;  %v10739_v41 = vld [vmem:[%s13997_s6 + $0x30] sm:$0xff]  }
 0x22b   :  { %v9614_v18 = vpop.f32.mrf.mxu0  ;;  %v9635_v19 = vpop.f32.mrf.mxu1  ;;  %v10737_v40 = vld [vmem:[%s13997_s6 + $0x38] sm:$0xff]   ;;  %10090 = vmatprep.subr.bf16.mxu0 %v12161_v62 }
 0x22c   :  { %v2758_v22 = vadd.f32 %v9634_v5, %v9612_v54  ;;  %10082 = vmatprep.subr.bf16.mxu1 %v10737_v40  ;;  %v12173_v54 = vld [vmem:[%s13997_s6 + $0x18] sm:$0xff]  }
 0x22d   :  { %v9636_v24 = vpop.f32.mrf.mxu1  ;;  %10083 = vmatpush3.bf16.msra.mxu1 %v10737_v40 }
 0x22e   :  { %10084 = vmatprep.subr.bf16.mxu1 %v10739_v41 }
 0x231   :  { %10085 = vmatpush3.bf16.msra.mxu1 %v10739_v41 }
 0x232   :  { %10098 = vmatprep.subr.bf16.mxu1 %v12173_v54 }
 0x245   :  { %v9654_v26 = vpop.f32.mrf.mxu0 }
 0x247   :  { %v9655_v30 = vpop.f32.mrf.mxu0  ;;  %v9676_v63 = vpop.f32.mrf.mxu1 }
 0x248   :  { %v9656_v32 = vadd.f32 %v9655_v30, %v9654_v26 }
 0x249   :  { %v9657_v29 = vpop.f32.mrf.mxu0  ;;  %v9677_v27 = vpop.f32.mrf.mxu1 }
 0x24a   :  { %v2990_v16 = vadd.f32 %v9656_v32, %v2758_v22  ;;  %v9678_v25 = vadd.f32 %v9677_v27, %v9676_v63 }
 0x24b   :  { %v9658_v23 = vpop.f32.mrf.mxu0  ;;  %v9679_v0 = vpop.f32.mrf.mxu1 }
 0x24c   :  { %v12150_v34 = vadd.f32 %v9678_v25, %v2990_v16 }
 0x24d   :  { %v9680_v7 = vpop.f32.mrf.mxu1 }
 0x24e   :  { %v4537_v26 = vcombine.high %v12150_v34, %v12150_v34  ;;  %v4544_v16 = vrot.slane %v12150_v34, %v12109_v6 }
 0x250   :  { %v4551_v0 = vrot.slane %v4537_v26, %v12109_v6  ;;  %v4599_v34 = vrot.slane %v4544_v16, %v11030_v12 }
 0x265   :  { %v9698_v35 = vpop.f32.mrf.mxu0 }
 0x267   :  { %v9699_v37 = vpop.f32.mrf.mxu0  ;;  %v9720_v56 = vpop.f32.mrf.mxu1 }
 0x268   :  { %v9700_v4 = vadd.f32 %v9699_v37, %v9698_v35 }
 0x269   :  { %v9701_v33 = vpop.f32.mrf.mxu0  ;;  %v9721_v15 = vpop.f32.mrf.mxu1 }
 0x26a   :  { %v9722_v20 = vadd.f32 %v9721_v15, %v9720_v56  ;;  %v4553_v33 = vcombine.high %v4551_v0, %v4551_v0 }
 0x26b   :  { %v9702_v21 = vpop.f32.mrf.mxu0  ;;  %v9723_v31 = vpop.f32.mrf.mxu1 }
 0x26c   :  { %v3432_v38 = vadd.f32 %v9722_v20, %v9700_v4  ;;  %v4552_v4 = vcombine.high %v4544_v16, %v4544_v16 }
 0x26d   :  { %v9724_v1 = vpop.f32.mrf.mxu1 }
 0x26e   :  { %v4603_v1 = vrot.slane %v4552_v4, %v11030_v12 }
 0x285   :  { %v9742_v39 = vpop.f32.mrf.mxu0 }
 0x287   :  { %v9743_v43 = vpop.f32.mrf.mxu0  ;;  %v9764_v45 = vpop.f32.mrf.mxu1 }
 0x288   :  { %v9744_v46 = vadd.f32 %v9743_v43, %v9742_v39  ;;  %v4607_v39 = vrot.slane %v4551_v0, %v11030_v12  ;;  %v4611_v43 = vrot.slane %v4553_v33, %v11030_v12 }
 0x289   :  { %v9745_v58 = vpop.f32.mrf.mxu0  ;;  %v9765_v47 = vpop.f32.mrf.mxu1 }
 0x28a   :  { %v3664_v17 = vadd.f32 %v9744_v46, %v3432_v38  ;;  %v9766_v28 = vadd.f32 %v9765_v47, %v9764_v45 }
 0x28b   :  { %v9746_v44 = vpop.f32.mrf.mxu0  ;;  %v9767_v49 = vpop.f32.mrf.mxu1 }
 0x28c   :  { %v3704_v50 = vadd.f32 %v9766_v28, %v3664_v17 }
 0x28d   :  { %v9768_v42 = vpop.f32.mrf.mxu1 }
 0x2a5   :  { %v9786_v57 = vpop.f32.mrf.mxu0 }
 0x2a7   :  { %v9787_v60 = vpop.f32.mrf.mxu0  ;;  %v9808_v48 = vpop.f32.mrf.mxu1 }
 0x2a8   :  { %v9788_v19 = vadd.f32 %v9787_v60, %v9786_v57 }
 0x2a9   :  { %v9789_v55 = vpop.f32.mrf.mxu0  ;;  %v9809_v2 = vpop.f32.mrf.mxu1 }
 0x2aa   :  { %v9810_v5 = vadd.f32 %v9809_v2, %v9808_v48 }
 0x2ab   :  { %v9790_v59 = vpop.f32.mrf.mxu0  ;;  %v9811_v36 = vpop.f32.mrf.mxu1 }
 0x2ac   :  { %v4041_v30 = vadd.f32 %v9810_v5, %v9788_v19 }
 0x2ad   :  { %v9812_v61 = vpop.f32.mrf.mxu1 }
 0x2ae   :  { %v4046_v7 = vadd.f32 %v4041_v30, %v3704_v50 }
 0x2c5   :  { %v9830_v18 = vpop.f32.mrf.mxu0 }
 0x2c7   :  { %v9831_v22 = vpop.f32.mrf.mxu0  ;;  %v9852_v24 = vpop.f32.mrf.mxu1 }
 0x2c8   :  { %v9832_v29 = vadd.f32 %v9831_v22, %v9830_v18 }
 0x2c9   :  { %v9833_v63 = vpop.f32.mrf.mxu0  ;;  %v9853_v32 = vpop.f32.mrf.mxu1 }
 0x2ca   :  { %v9854_v27 = vadd.f32 %v9853_v32, %v9852_v24 }
 0x2cb   :  { %v9834_v25 = vpop.f32.mrf.mxu0  ;;  %v9855_v23 = vpop.f32.mrf.mxu1 }
 0x2cc   :  { %v4416_v35 = vadd.f32 %v9854_v27, %v9832_v29 }
 0x2cd   :  { %v9856_v37 = vpop.f32.mrf.mxu1 }
 0x2ce   :  { %v4421_v56 = vadd.f32 %v4416_v35, %v4046_v7 }
 0x2d0   :  { %v4559_v15 = vcombine.high %v4421_v56, %v4421_v56  ;;  %v4566_v20 = vrot.slane %v4421_v56, %v12109_v6 }
 0x2d2   :  { %v4573_v21 = vrot.slane %v4559_v15, %v12109_v6  ;;  %v4574_v31 = vcombine.high %v4566_v20, %v4566_v20  ;;  %v4579_v38 = vrot.slane %v4566_v20, %v11024_v8  ;;  %v4619_v47 = vrot.slane %v4566_v20, %v11030_v12 }
 0x2d4   :  { %v4575_v45 = vcombine.high %v4573_v21, %v4573_v21  ;;  %v4583_v46 = vrot.slane %v4574_v31, %v11024_v8  ;;  %v4587_v58 = vrot.slane %v4573_v21, %v11024_v8  ;;  %v4623_v17 = vrot.slane %v4574_v31, %v11030_v12 }
 0x2d5   :  { %v4636_v28 = vsel %vm705_vm1, %v4544_v16, %v4579_v38  ;;  %v4627_v49 = vrot.slane %v4573_v21, %v11030_v12 }
 0x2d6   :  { %v4591_v44 = vrot.slane %v4575_v45, %v11024_v8  ;;  %v4637_v50 = vsel %vm705_vm1, %v4552_v4, %v4583_v46  ;;  %v4638_v42 = vsel %vm705_vm1, %v4551_v0, %v4587_v58  ;;  %v4631_v51 = vrot.slane %v4575_v45, %v11030_v12 }
 0x2d7   :  { %v4640_v53 = vsel %vm4526_vm4, %v4636_v28, %v4599_v34  ;;  %v4641_v57 = vsel %vm4526_vm4, %v4637_v50, %v4603_v1  ;;  %v4642_v60 = vsel %vm4526_vm4, %v4638_v42, %v4607_v39 }
 0x2d8   :  { %v4639_v48 = vsel %vm705_vm1, %v4553_v33, %v4591_v44  ;;  %v4644_v55 = vsel %vm4531_vm5, %v4640_v53, %v4619_v47  ;;  %v4645_v2 = vsel %vm4531_vm5, %v4641_v57, %v4623_v17  ;;  %v4646_v59 = vsel %vm4531_vm5, %v4642_v60, %v4627_v49 }
 0x2d9   :  { %v4643_v36 = vsel %vm4526_vm4, %v4639_v48, %v4611_v43  ;;  %v4656_v61 = vcombine.low %v12138_v9, %v4644_v55  ;;  %v4657_v40 = vcombine.low %v12141_v10, %v4645_v2  ;;  %v4658_v41 = vcombine.low %v12144_v11, %v4646_v59 }
 0x2da   :  { %v4647_v5 = vsel %vm4531_vm5, %v4643_v36, %v4631_v51  ;;  %v9211_v36 = vld [vmem:[%s13998_s4] ss:$0 sm:$0xff] }
 0x2db   :  { %v4659_v18 = vcombine.low %v12148_v52, %v4647_v5  ;;  %v4665_v19 = vsel %vm4664_vm6, %v4656_v61, 0.0  ;;  %v4666_v22 = vsel %vm4664_vm6, %v4657_v40, 0.0  ;;  %v4668_v26 = vsel %vm4664_vm6, %v4658_v41, 0.0  ;;  %v9212_v40 = vld [vmem:[%s13999_s5] ss:$0 sm:$0xff] }
 0x2dc   :  { %v4667_v24 = vadd.f32 %v4666_v22, %v4665_v19  ;;  %v4885_v61 = vrot.slane %v10788_v3, 1 }
 0x2dd   :  { %v4670_v63 = vsel %vm4664_vm6, %v4659_v18, 0.0 }
 0x2de   :  { %v4669_v30 = vadd.f32 %v4668_v26, %v4667_v24 }
 0x2e0   :  { %v4671_v32 = vadd.f32 %v4670_v63, %v4669_v30  ;;  %v4766_v30 = vcombine.high %v9212_v40, %v9212_v40 }
 0x2e2   :  { %v4672_v29 = vrot.slane %v4671_v32, 4 }
 0x2e4   :  { %v4673_v27 = vadd.f32 %v4672_v29, %v4671_v32  ;;  %v12237_v32 = vsel %vm12231_vm8, %v4885_v61, 0 }
 0x2e6   :  { %v4674_v16 = vrot.slane %v4673_v27, 2 }
 0x2e8   :  { %v4675_v25 = vadd.f32 %v4674_v16, %v4673_v27 }
 0x2ea   :  { %v4676_v23 = vrot.slane %v4675_v25, 1 }
 0x2ec   :  { %v4677_v0 = vadd.f32 %v4676_v23, %v4675_v25 }
 0x2ee   :  { %v4679_v7 = vmul.f32 0.03125, %v4677_v0 }
 0x2f0   :  { %v4681_v35 = vcombine.high %v4679_v7, %v4679_v7  ;;  %v4683_v37 = vsub.f32 %v12138_v9, %v4679_v7  ;;  %v4685_v56 = vsub.f32 %v12141_v10, %v4679_v7  ;;  %v4687_v4 = vsub.f32 %v12144_v11, %v4679_v7 }
 0x2f1   :  { %v4689_v33 = vsub.f32 %v12148_v52, %v4679_v7 }
 0x2f2   :  { %v4684_v15 = vsub.f32 %v4644_v55, %v4681_v35  ;;  %v4686_v20 = vsub.f32 %v4645_v2, %v4681_v35  ;;  %v4688_v21 = vsub.f32 %v4646_v59, %v4681_v35  ;;  %v4690_v31 = vsub.f32 %v4647_v5, %v4681_v35 }
 0x2f3   :  { %v4691_v38 = vmul.f32 %v4683_v37, %v4683_v37  ;;  %v4693_v34 = vmul.f32 %v4685_v56, %v4685_v56  ;;  %v4695_v1 = vmul.f32 %v4687_v4, %v4687_v4  ;;  %v4697_v39 = vmul.f32 %v4689_v33, %v4689_v33 }
 0x2f4   :  { %v4692_v43 = vmul.f32 %v4684_v15, %v4684_v15  ;;  %v4694_v45 = vmul.f32 %v4686_v20, %v4686_v20  ;;  %v4696_v46 = vmul.f32 %v4688_v21, %v4688_v21  ;;  %v4698_v58 = vmul.f32 %v4690_v31, %v4690_v31 }
 0x2f5   :  { %v4749_v5 = vcombine.high %v9211_v36, %v9211_v36 }
 0x2f6   :  { %v4707_v47 = vcombine.low %v4691_v38, %v4692_v43  ;;  %v4708_v9 = vcombine.low %v4693_v34, %v4694_v45  ;;  %v4709_v17 = vcombine.low %v4695_v1, %v4696_v46  ;;  %v4710_v10 = vcombine.low %v4697_v39, %v4698_v58 }
 0x2f8   :  { %v4715_v11 = vsel %vm4664_vm6, %v4707_v47, 0.0  ;;  %v4716_v52 = vsel %vm4664_vm6, %v4708_v9, 0.0  ;;  %v4718_v44 = vsel %vm4664_vm6, %v4709_v17, 0.0  ;;  %v4720_v50 = vsel %vm4664_vm6, %v4710_v10, 0.0 }
 0x2f9   :  { %v4717_v28 = vadd.f32 %v4716_v52, %v4715_v11 }
 0x2fb   :  { %v4719_v49 = vadd.f32 %v4718_v44, %v4717_v28 }
 0x2fd   :  { %v4721_v42 = vadd.f32 %v4720_v50, %v4719_v49 }
 0x2ff   :  { %v4722_v51 = vrot.slane %v4721_v42, 4 }
 0x301   :  { %v4723_v53 = vadd.f32 %v4722_v51, %v4721_v42 }
 0x303   :  { %v4724_v57 = vrot.slane %v4723_v53, 2 }
 0x305   :  { %v4725_v60 = vadd.f32 %v4724_v57, %v4723_v53 }
 0x307   :  { %v4726_v48 = vrot.slane %v4725_v60, 1 }
 0x309   :  { %v4727_v55 = vadd.f32 %v4726_v48, %v4725_v60 }
 0x30b   :  { %v4728_v2 = vmul.f32 0.03125, %v4727_v55 }
 0x30d   :  { %v4729_v59 = vadd.f32 1e-05, %v4728_v2 }
 0x30f   :  { %10752 = vrsqrt.f32 %v4729_v59 }
 0x31c   :  { %v10753_v41 = vpop.eup %10752 }
 0x31d   :  { %v4732_v18 = vcombine.high %v10753_v41, %v10753_v41  ;;  %v4734_v19 = vmul.f32 %v10753_v41, %v4683_v37  ;;  %v4736_v22 = vmul.f32 %v10753_v41, %v4685_v56  ;;  %v4738_v24 = vmul.f32 %v10753_v41, %v4687_v4 }
 0x31e   :  { %v4740_v63 = vmul.f32 %v10753_v41, %v4689_v33 }
 0x31f   :  { %v4735_v29 = vmul.f32 %v4732_v18, %v4684_v15  ;;  %v4737_v27 = vmul.f32 %v4732_v18, %v4686_v20  ;;  %v4739_v16 = vmul.f32 %v4732_v18, %v4688_v21  ;;  %v4741_v25 = vmul.f32 %v4732_v18, %v4690_v31 }
 0x320   :  { %v4751_v23 = vmul.f32 %v9211_v36, %v4734_v19  ;;  %v4753_v0 = vmul.f32 %v9211_v36, %v4736_v22  ;;  %v4755_v7 = vmul.f32 %v9211_v36, %v4738_v24  ;;  %v4757_v35 = vmul.f32 %v9211_v36, %v4740_v63 }
 0x321   :  { %v4756_v37 = vmul.f32 %v4749_v5, %v4739_v16  ;;  %v4752_v56 = vmul.f32 %v4749_v5, %v4735_v29  ;;  %v4754_v4 = vmul.f32 %v4749_v5, %v4737_v27  ;;  %v4758_v38 = vmul.f32 %v4749_v5, %v4741_v25 }
 0x322   :  { %v4768_v34 = vadd.f32 %v9212_v40, %v4751_v23  ;;  %v4770_v1 = vadd.f32 %v9212_v40, %v4753_v0  ;;  %v4772_v39 = vadd.f32 %v9212_v40, %v4755_v7  ;;  %v4774_v33 = vadd.f32 %v9212_v40, %v4757_v35 }
 0x323   :  { %v4769_v43 = vadd.f32 %v4766_v30, %v4752_v56  ;;  %v4771_v45 = vadd.f32 %v4766_v30, %v4754_v4  ;;  %v4773_v46 = vadd.f32 %v4766_v30, %v4756_v37  ;;  %v4775_v58 = vadd.f32 %v4766_v30, %v4758_v38 }
 0x324   :  { %vm4776_vm9 = vcmp.ge.f32.partialorder %v4768_v34, 0.0  ;;  %vm4778_vm10 = vcmp.ge.f32.partialorder %v4770_v1, 0.0  ;;  %v4784_v15 = vmul.f32 0.01, %v4768_v34  ;;  %v4786_v20 = vmul.f32 0.01, %v4770_v1 }
 0x325   :  { %vm4777_vm11 = vcmp.ge.f32.partialorder %v4769_v43, 0.0  ;;  %vm4779_vm12 = vcmp.ge.f32.partialorder %v4771_v45, 0.0  ;;  %v4785_v21 = vmul.f32 0.01, %v4769_v43  ;;  %v4787_v31 = vmul.f32 0.01, %v4771_v45 }
 0x326   :  { %v4792_v47 = vsel %vm4776_vm9, %v4768_v34, %v4784_v15  ;;  %v12239_v9 = vsel %vm4778_vm10, %v4770_v1, %v4786_v20  ;;  %vm4780_vm13 = vcmp.ge.f32.partialorder %v4772_v39, 0.0  ;;  %vm4781_vm14 = vcmp.ge.f32.partialorder %v4773_v46, 0.0 }
 0x327   :  { %v12241_v17 = vsel %vm4777_vm11, %v4769_v43, %v4785_v21  ;;  %v4795_v10 = vsel %vm4779_vm12, %v4771_v45, %v4787_v31  ;;  %v4800_v11 = vpack.c.bf16 %v4792_v47, %v4792_v47  ;;  %v4802_v52 = vpack.c.bf16 %v12239_v9, %v12239_v9 }
 0x328   :  { %v4801_v28 = vpack.c.bf16 %v12241_v17, %v12241_v17  ;;  %v12247_v44 = vpack.c.bf16 %v4795_v10, %v4795_v10  ;;  %v9217_v49 = vpack.c.bf16 %v12241_v17, %v4792_v47  ;;  %v9218_v50 = vpack.c.bf16 %v4795_v10, %v12239_v9 }
 0x329   :  { %v4809_v42 = vshrl.u32 %v4800_v11, 16  ;;  %v4811_v51 = vshll.u32 %v4800_v11, 16  ;;  %vm4782_vm15 = vcmp.ge.f32.partialorder %v4774_v33, 0.0  ;;  %vm4783_vm0 = vcmp.ge.f32.partialorder %v4775_v58, 0.0 }
 0x32a   :  { %v4910_v53 = vrot.slane %v9217_v49, %v12109_v6  ;;  %v4917_v57 = vrot.slane %v9218_v50, %v12109_v6  ;;  %v4788_v60 = vmul.f32 0.01, %v4772_v39  ;;  %v4789_v48 = vmul.f32 0.01, %v4773_v46 }
 0x32b   :  { %v4813_v55 = vrot.slane %v4811_v51, 1  ;;  %v4790_v2 = vmul.f32 0.01, %v4774_v33  ;;  %v4791_v59 = vmul.f32 0.01, %v4775_v58  ;;  %v4816_v36 = vshrl.u32 %v4801_v28, 16 }
 0x32c   :  { %v12253_v61 = vcombine.low %v4910_v53, %v4917_v57  ;;  %v4796_v40 = vsel %vm4780_vm13, %v4772_v39, %v4788_v60  ;;  %v12257_v41 = vsel %vm4781_vm14, %v4773_v46, %v4789_v48  ;;  %v4818_v5 = vshll.u32 %v4801_v28, 16  ;;  %v10740_v53 = vld [vmem:[%s13997_s6 + $0x78] sm:$0xff]  }
 0x32d   :  { %v12259_v18 = vsel %vm4782_vm15, %v4774_v33, %v4790_v2  ;;  %v4799_v19 = vsel %vm4783_vm0, %v4775_v58, %v4791_v59  ;;  %v4804_v22 = vpack.c.bf16 %v4796_v40, %v4796_v40  ;;  %v4805_v24 = vpack.c.bf16 %v12257_v41, %v12257_v41  ;;  %v10738_v33 = vld [vmem:[%s13997_s6 + $0x50] sm:$0xff]  }
 0x32e   :  { %10078 = vmatprep.mubr.msk.bf16.mxu0 %vm4664_vm6, %v12253_v61  ;;  %v4806_v30 = vpack.c.bf16 %v12259_v18, %v12259_v18  ;;  %v4807_v63 = vpack.c.bf16 %v4799_v19, %v4799_v19  ;;  %v9219_v29 = vpack.c.bf16 %v12257_v41, %v4796_v40  ;;  %v9220_v27 = vpack.c.bf16 %v4799_v19, %v12259_v18 }
 0x32f   :  { %v4837_v16 = vshrl.u32 %v4804_v22, 16  ;;  %v4839_v25 = vshll.u32 %v4804_v22, 16  ;;  %v4814_v23 = vor.u32 %v4813_v55, %v4809_v42  ;;  %v4820_v0 = vrot.slane %v4818_v5, 1 }
 0x330   :  { %v4927_v7 = vrot.slane %v9219_v29, %v12109_v6  ;;  %v4934_v35 = vrot.slane %v9220_v27, %v12109_v6  ;;  %v4823_v37 = vshrl.u32 %v4802_v52, 16  ;;  %v4825_v56 = vshll.u32 %v4802_v52, 16 }
 0x331   :  { %v4841_v4 = vrot.slane %v4839_v25, 1  ;;  %v4821_v38 = vor.u32 %v4820_v0, %v4816_v36  ;;  %v4830_v34 = vshrl.u32 %v12247_v44, 16  ;;  %v4832_v1 = vshll.u32 %v12247_v44, 16 }
 0x332   :  { %v12273_v39 = vcombine.low %v4927_v7, %v4934_v35  ;;  %v4827_v43 = vrot.slane %v4825_v56, 1  ;;  %v4875_v45 = vsel %vm12231_vm8, %v4814_v23, 0  ;;  %v4844_v46 = vshrl.u32 %v4805_v24, 16  ;;  %v10744_v56 = vld [vmem:[%s13997_s6 + $0x88] sm:$0xff]  }
 0x333   :  { %v4834_v58 = vrot.slane %v4832_v1, 1  ;;  %v4876_v15 = vsel %vm12231_vm8, %v4821_v38, 0  ;;  %v4842_v20 = vor.u32 %v4841_v4, %v4837_v16  ;;  %v4846_v21 = vshll.u32 %v4805_v24, 16 }
 0x334   :  { %10079 = vmatmul.mubr.msk.bf16.vlgmr.msra.gmra.mxu0 %vm4664_vm6, %v12273_v39  ;;  %v4828_v31 = vor.u32 %v4827_v43, %v4823_v37  ;;  %v5021_v47 = vcombine.low %v4875_v45, %v4876_v15  ;;  %v4851_v10 = vshrl.u32 %v4806_v30, 16  ;;  %v4853_v11 = vshll.u32 %v4806_v30, 16 }
 0x335   :  { %10091 = vmatpush3.bf16.msra.mxu0 %v12161_v62  ;;  %10094 = vmatprep.mubr.msk.bf16.mxu0 %vm4664_vm6, %v12253_v61  ;;  %v4835_v52 = vor.u32 %v4834_v58, %v4830_v34  ;;  %v4848_v28 = vrot.slane %v4846_v21, 1  ;;  %v4858_v49 = vshrl.u32 %v4807_v63, 16  ;;  %v4860_v50 = vshll.u32 %v4807_v63, 16  ;;  %v10751_v21 = vld [vmem:[%s13997_s6 + $0x20] sm:$0xff]  }
 0x336   :  { %10092 = vmatprep.subr.bf16.mxu0 %v10738_v33  ;;  %v4877_v42 = vsel %vm12231_vm8, %v4828_v31, 0  ;;  %v5029_v51 = vrot.slane %v5021_v47, %v12109_v6  ;;  %v4855_v57 = vrot.slane %v4853_v11, 1  ;;  %v4879_v62 = vsel %vm12231_vm8, %v4842_v20, 0  ;;  %v10750_v20 = vld [vmem:[%s13997_s6] sm:$0xff]   ;;  %v9291_v31 = vld [vmem:[%s14000_s9 + $0x30] sm:$0xff] }
 0x337   :  { %v4878_v60 = vsel %vm12231_vm8, %v4835_v52, 0  ;;  %v4849_v48 = vor.u32 %v4848_v28, %v4844_v46  ;;  %v4862_v55 = vrot.slane %v4860_v50, 1  ;;  %v9249_v2 = vpack.c.bf16 %v12239_v9, %v12241_v17  ;;  %v9289_v11 = vld [vmem:[%s14000_s9 + $0x20] sm:$0xff] }
 0x338   :  { %v5022_v59 = vcombine.low %v4877_v42, %v4878_v60  ;;  %v4856_v36 = vor.u32 %v4855_v57, %v4851_v10  ;;  %v5194_v40 = vcombine.low %v12247_v44, %v10788_v3  ;;  %v9250_v5 = vpack.c.bf16 %v12259_v18, %v12257_v41  ;;  %v10742_v41 = vld [vmem:[%s13997_s6 + $0x70] sm:$0xff]   ;;  %v9290_v10 = vld [vmem:[%s14000_s9 + $0x28] sm:$0xff] }
 0x339   :  { %10093 = vmatpush3.bf16.msra.mxu0 %v10738_v33  ;;  %v4863_v19 = vor.u32 %v4862_v55, %v4858_v49  ;;  %v4880_v22 = vsel %vm12231_vm8, %v4849_v48, 0  ;;  %v5201_v24 = vrot.slane %v9249_v2, %v12109_v6  ;;  %v5211_v30 = vcombine.low %v4807_v63, %v10788_v3  ;;  %v10743_v33 = vld [vmem:[%s13997_s6 + $0x10] sm:$0xff]  }
 0x33a   :  { %v5036_v29 = vrot.slane %v5022_v59, %v12109_v6  ;;  %10106 = vmatprep.subr.bf16.mxu0 %v10740_v53  ;;  %v4881_v9 = vsel %vm12231_vm8, %v4856_v36, 0  ;;  %v5038_v17 = vcombine.low %v4879_v62, %v4880_v22  ;;  %v5208_v44 = vrot.slane %v5194_v40, %v12109_v6 }
 0x33b   :  { %v4882_v18 = vsel %vm12231_vm8, %v4863_v19, 0  ;;  %v5218_v27 = vrot.slane %v9250_v5, %v12109_v6  ;;  %v5225_v3 = vrot.slane %v5211_v30, %v12109_v6  ;;  %v5562_v63 = vcombine.low %v4876_v15, %v4877_v42  ;;  %v10748_v15 = vld [vmem:[%s13997_s6 + $0x8] sm:$0xff]  }
 0x33c   :  { %v5037_v16 = vcombine.low %v5029_v51, %v5036_v29  ;;  %10095 = vmatmul.mubr.msk.bf16.vlgmr.msra.gmra.mxu0 %vm4664_vm6, %v12273_v39  ;;  %v5039_v25 = vcombine.low %v4881_v9, %v4882_v18  ;;  %v5046_v23 = vrot.slane %v5038_v17, %v12109_v6  ;;  %v5209_v0 = vcombine.low %v5201_v24, %v5208_v44 }
 0x33d   :  { %10107 = vmatpush3.bf16.msra.mxu0 %v10740_v53  ;;  %10110 = vmatprep.mubr.msk.bf16.mxu0 %vm4664_vm6, %v12253_v61  ;;  %v5226_v7 = vcombine.low %v5218_v27, %v5225_v3  ;;  %v5563_v26 = vcombine.low %v4878_v60, %v12237_v32  ;;  %v5570_v35 = vrot.slane %v5562_v63, %v12109_v6  ;;  %v14005_v47 = vmov 0.0  }
 0x33e   :  { %10086 = vmatprep.mubr.msk.bf16.mxu1 %vm4664_vm6, %v5037_v16  ;;  %v5053_v37 = vrot.slane %v5039_v25, %v12109_v6  ;;  %10108 = vmatprep.subr.bf16.mxu0 %v10742_v41  ;;  %v5580_v4 = vcombine.low %v4882_v18, %v12237_v32  ;;  %v5579_v38 = vcombine.low %v4880_v22, %v4881_v9  ;;  %v10746_v32 = vld [vmem:[%s13997_s6 + $0x80] sm:$0xff]   ;;  %vm6018_vm8 = vcmask 1046528  }
 0x33f   :  { %v5577_v34 = vrot.slane %v5563_v26, %v12109_v6 }
 0x340   :  { %v5054_v1 = vcombine.low %v5046_v23, %v5053_v37  ;;  %v5587_v43 = vrot.slane %v5579_v38, %v12109_v6  ;;  %v5594_v45 = vrot.slane %v5580_v4, %v12109_v6  ;;  %v10745_v6 = vld [vmem:[%s13997_s6 + $0x68] sm:$0xff]  }
 0x341   :  { %10109 = vmatpush3.bf16.msra.mxu0 %v10742_v41  ;;  %v5578_v46 = vcombine.low %v5570_v35, %v5577_v34 }
 0x342   :  { %10087 = vmatmul.mubr.msk.bf16.vlgmr.msra.gmra.mxu1 %vm4664_vm6, %v5054_v1  ;;  %10122 = vmatprep.subr.bf16.mxu0 %v10744_v56  ;;  %v5595_v58 = vcombine.low %v5587_v43, %v5594_v45 }
 0x343   :  { %10099 = vmatpush3.bf16.msra.mxu1 %v12173_v54  ;;  %10102 = vmatprep.mubr.msk.bf16.mxu1 %vm4664_vm6, %v5209_v0  ;;  %v10747_v54 = vld [vmem:[%s13997_s6 + $0x60] sm:$0xff]  }
 0x344   :  { %10100 = vmatprep.subr.bf16.mxu1 %v10743_v33  ;;  %10111 = vmatmul.mubr.msk.bf16.vlgmr.msra.gmra.mxu0 %vm4664_vm6, %v12273_v39 }
 0x345   :  { %10123 = vmatpush3.bf16.msra.mxu0 %v10744_v56  ;;  %10126 = vmatprep.mubr.msk.bf16.mxu0 %vm4664_vm6, %v12253_v61  ;;  %v10749_v61 = vld [vmem:[%s13997_s6 + $0x28] sm:$0xff]  }
 0x346   :  { %10124 = vmatprep.subr.bf16.mxu0 %v10746_v32 }
 0x347   :  { %10101 = vmatpush3.bf16.msra.mxu1 %v10743_v33 }
 0x348   :  { %10114 = vmatprep.subr.bf16.mxu1 %v10745_v6 }
 0x349   :  { %10125 = vmatpush3.bf16.msra.mxu0 %v10746_v32 }
 0x34a   :  { %10103 = vmatmul.mubr.msk.bf16.vlgmr.msra.gmra.mxu1 %vm4664_vm6, %v5226_v7  ;;  %10138 = vmatprep.subr.bf16.mxu0 %v10748_v15 }
 0x34b   :  { %10115 = vmatpush3.bf16.msra.mxu1 %v10745_v6  ;;  %10118 = vmatprep.mubr.msk.bf16.mxu1 %vm4664_vm6, %v5037_v16 }
 0x34c   :  { %10116 = vmatprep.subr.bf16.mxu1 %v10747_v54  ;;  %10127 = vmatmul.mubr.msk.bf16.vlgmr.msra.gmra.mxu0 %vm4664_vm6, %v12273_v39  ;;  %v9292_v39 = vld [vmem:[%s14000_s9 + $0x38] sm:$0xff] }
 0x34d   :  { %10139 = vmatpush3.bf16.msra.mxu0 %v10748_v15  ;;  %10142 = vmatprep.mubr.msk.bf16.mxu0 %vm4664_vm6, %v5578_v46 }
 0x34e   :  { %10140 = vmatprep.subr.bf16.mxu0 %v10750_v20 }
 0x34f   :  { %10117 = vmatpush3.bf16.msra.mxu1 %v10747_v54 }
 0x350   :  { %10130 = vmatprep.subr.bf16.mxu1 %v10749_v61 }
 0x351   :  { %10141 = vmatpush3.bf16.msra.mxu0 %v10750_v20 }
 0x352   :  { %10119 = vmatmul.mubr.msk.bf16.vlgmr.msra.gmra.mxu1 %vm4664_vm6, %v5054_v1  ;;  %10146 = vmatprep.subr.mxu0 %v9292_v39 }
 0x353   :  { %10131 = vmatpush3.bf16.msra.mxu1 %v10749_v61  ;;  %10134 = vmatprep.mubr.msk.bf16.mxu1 %vm4664_vm6, %v5209_v0 }
 0x354   :  { %10132 = vmatprep.subr.bf16.mxu1 %v10751_v21  ;;  %10143 = vmatmul.mubr.msk.bf16.vlgmr.msra.gmra.mxu0 %vm4664_vm6, %v5595_v58 }
 0x355   :  { %10154 = vmatprep.mubr.f32.mxu0 %v14005_v47  ;;  %10147 = vmatpush3.msra.mxu0 %v9292_v39 }
 0x356   :  { %10148 = vmatprep.subr.mxu0 %v9291_v31 }
 0x357   :  { %10133 = vmatpush3.bf16.msra.mxu1 %v10751_v21  ;;  %10149 = vmatpush3.msra.mxu0 %v9291_v31 }
 0x358   :  { %10434 = vmatprep.subr.mxu1 %v9292_v39  ;;  %10150 = vmatprep.subr.mxu0 %v9290_v10 }
 0x359   :  { %10151 = vmatpush3.msra.mxu0 %v9290_v10 }
 0x35a   :  { %10135 = vmatmul.mubr.msk.bf16.vlgmr.msra.gmra.mxu1 %vm4664_vm6, %v5226_v7  ;;  %10152 = vmatprep.subr.mxu0 %v9289_v11 }
 0x35b   :  { %10438 = vmatpush3.msra.mxu1 %v9292_v39  ;;  %10153 = vmatpush3.msra.mxu0 %v9289_v11 }
 0x35c   :  { %10435 = vmatprep.subr.mxu1 %v9291_v31 }
 0x35d   :  { %10439 = vmatpush3.msra.mxu1 %v9291_v31 }
 0x35e   :  { %10436 = vmatprep.subr.mxu1 %v9290_v10 }
 0x35f   :  { %10440 = vmatpush3.msra.mxu1 %v9290_v10 }
 0x360   :  { %10437 = vmatprep.subr.mxu1 %v9289_v11 }
 0x361   :  { %10441 = vmatpush3.msra.mxu1 %v9289_v11 }
 0x3f4   :  { %v12387_v52 = vpop.f32.mrf.mxu0 }
 0x3f5   :  { %v12429_v41 = vcombine.high %v12387_v52, %v12387_v52  ;;  %v5746_v3 = vrot.slane %v12387_v52, %v11030_v12  ;;  %v5826_v63 = vrot.slane %v12387_v52, %v11033_v13  ;;  %v5906_v23 = vrot.slane %v12387_v52, %v11036_v14 }
 0x3f6   :  { %v12389_v28 = vpop.f32.mrf.mxu0 }
 0x3f7   :  { %v12441_v16 = vcombine.high %v12389_v28, %v12389_v28  ;;  %v5750_v37 = vrot.slane %v12429_v41, %v11030_v12  ;;  %v5830_v56 = vrot.slane %v12429_v41, %v11033_v13  ;;  %v5910_v4 = vrot.slane %v12429_v41, %v11036_v14 }
 0x3f8   :  { %v12391_v49 = vpop.f32.mrf.mxu0  ;;  %v5730_v34 = vrot.slane %v12389_v28, %v11030_v12  ;;  %v5810_v1 = vrot.slane %v12389_v28, %v11033_v13 }
 0x3f9   :  { %v12470_v33 = vcombine.high %v12391_v49, %v12391_v49  ;;  %v5734_v45 = vrot.slane %v12441_v16, %v11030_v12  ;;  %v5814_v39 = vrot.slane %v12441_v16, %v11033_v13  ;;  %v5754_v10 = vrot.slane %v12391_v49, %v11030_v12 }
 0x3fa   :  { %v12393_v50 = vpop.f32.mrf.mxu0 }
 0x3fb   :  { %v12500_v11 = vcombine.high %v12393_v50, %v12393_v50 }
 0x3fc   :  { %v10096_v42 = vpop.f32.mrf.mxu0 }
 0x3fe   :  { %v5168_v51 = vpop.f32.mrf.mxu0 }
 0x400   :  { %v12395_v53 = vpop.f32.mrf.mxu0 }
 0x402   :  { %v10088_v57 = vpop.f32.mrf.mxu1  ;;  %v5171_v62 = vpop.f32.mrf.mxu0 }
 0x403   :  { %v12403_v59 = vadd.f32 %v10096_v42, %v10088_v57  ;;  %v5758_v42 = vrot.slane %v12470_v33, %v11030_v12 }
 0x404   :  { %v5107_v60 = vpop.f32.mrf.mxu1  ;;  %v12397_v48 = vpop.f32.mrf.mxu0 }
 0x405   :  { %v12411_v19 = vcombine.high %v12403_v59, %v12403_v59  ;;  %v5706_v24 = vrot.slane %v12403_v59, %v11024_v8  ;;  %v12423_v17 = vadd.f32 %v5168_v51, %v5107_v60  ;;  %v5786_v43 = vrot.slane %v12403_v59, %v11030_v12 }
 0x406   :  { %v12399_v55 = vpop.f32.mrf.mxu1  ;;  %v12401_v2 = vpop.f32.mrf.mxu0  ;;  %v5822_v60 = vrot.slane %v12500_v11, %v11033_v13 }
 0x407   :  { %v5710_v9 = vrot.slane %v12411_v19, %v11024_v8  ;;  %v5971_v18 = vsel %vm705_vm1, %v12387_v52, %v5706_v24  ;;  %v12451_v7 = vcombine.high %v12423_v17, %v12423_v17  ;;  %v5690_v58 = vrot.slane %v12423_v17, %v11024_v8 }
 0x408   :  { %v5110_v36 = vpop.f32.mrf.mxu1  ;;  %v12407_v5 = vpop.f32.mrf.mxu0  ;;  %v5979_v38 = vsel %vm4526_vm4, %v5971_v18, %v5746_v3  ;;  %v5790_v54 = vrot.slane %v12411_v19, %v11030_v12  ;;  %v12541_v57 = vadd.f32 %v12395_v53, %v12399_v55  ;;  %v5770_v31 = vrot.slane %v12423_v17, %v11030_v12 }
 0x409   :  { %v5972_v0 = vsel %vm705_vm1, %v12429_v41, %v5710_v9  ;;  %v12453_v26 = vadd.f32 %v5171_v62, %v5110_v36  ;;  %v5987_v20 = vsel %vm4531_vm5, %v5979_v38, %v5786_v43  ;;  %v5694_v61 = vrot.slane %v12451_v7, %v11024_v8 }
 0x40a   :  { %v12405_v40 = vpop.f32.mrf.mxu1  ;;  %v12419_v29 = vpop.f32.mrf.mxu0  ;;  %v5980_v32 = vsel %vm4526_vm4, %v5972_v0, %v5750_v37  ;;  %v5996_v36 = vsel %vm5991_vm2, %v5987_v20, %v5826_v63  ;;  %v5967_v24 = vsel %vm705_vm1, %v12389_v28, %v5690_v58  ;;  %v5738_v0 = vrot.slane %v12393_v50, %v11030_v12 }
 0x40b   :  { %v12490_v21 = vcombine.high %v12453_v26, %v12453_v26  ;;  %v5988_v62 = vsel %vm4531_vm5, %v5980_v32, %v5790_v54  ;;  %v5698_v9 = vrot.slane %v12453_v26, %v11024_v8  ;;  %v5866_v37 = vrot.slane %v12403_v59, %v11033_v13 }
 0x40c   :  { %v12413_v22 = vpop.f32.mrf.mxu1  ;;  %v12443_v25 = vpop.f32.mrf.mxu0  ;;  %v5968_v38 = vsel %vm705_vm1, %v12441_v16, %v5694_v61  ;;  %v5742_v43 = vrot.slane %v12500_v11, %v11030_v12  ;;  %v5818_v32 = vrot.slane %v12393_v50, %v11033_v13  ;;  %v5898_v58 = vrot.slane %v12393_v50, %v11036_v14 }
 0x40d   :  { %v5702_v63 = vrot.slane %v12490_v21, %v11024_v8  ;;  %v5997_v54 = vsel %vm5991_vm2, %v5988_v62, %v5830_v56  ;;  %v5870_v20 = vrot.slane %v12411_v19, %v11033_v13  ;;  %v6005_v47 = vsel %vm6000_vm3, %v5996_v36, %v5866_v37 }
 0x40e   :  { %v12417_v30 = vpop.f32.mrf.mxu1  ;;  %v5472_v6 = vpop.f32.mrf.mxu0  ;;  %v5975_v61 = vsel %vm4526_vm4, %v5967_v24, %v5730_v34  ;;  %v5976_v46 = vsel %vm4526_vm4, %v5968_v38, %v5734_v45  ;;  %v5969_v56 = vsel %vm705_vm1, %v12393_v50, %v5698_v9  ;;  %v5902_v34 = vrot.slane %v12500_v11, %v11036_v14 }
 0x40f   :  { %v6006_v36 = vsel %vm6000_vm3, %v5997_v54, %v5870_v20  ;;  %v5774_v53 = vrot.slane %v12451_v7, %v11030_v12  ;;  %v5970_v55 = vsel %vm705_vm1, %v12500_v11, %v5702_v63  ;;  %v5946_v24 = vrot.slane %v12403_v59, %v11036_v14 }
 0x410   :  { %v12425_v44 = vpop.f32.mrf.mxu1  ;;  %v12516_v18 = vpop.f32.mrf.mxu0  ;;  %v5950_v45 = vrot.slane %v12411_v19, %v11036_v14  ;;  %v6014_v9 = vsel %vm6009_vm7, %v6005_v47, %v5906_v23  ;;  %v5983_v37 = vsel %vm4531_vm5, %v5975_v61, %v5770_v31  ;;  %v5850_v38 = vrot.slane %v12423_v17, %v11033_v13 }
 0x411   :  { %v5984_v54 = vsel %vm4531_vm5, %v5976_v46, %v5774_v53  ;;  %v12571_v63 = vcombine.high %v12541_v57, %v12541_v57  ;;  %v5977_v59 = vsel %vm4526_vm4, %v5969_v56, %v5738_v0  ;;  %v6015_v52 = vsel %vm6009_vm7, %v6006_v36, %v5910_v4 }
 0x412   :  { %v12433_v27 = vpop.f32.mrf.mxu1  ;;  %v5475_v62 = vpop.f32.mrf.mxu0  ;;  %v5714_v47 = vrot.slane %v12541_v57, %v11024_v8  ;;  %v5778_v19 = vrot.slane %v12453_v26, %v11030_v12  ;;  %v5978_v23 = vsel %vm4526_vm4, %v5970_v55, %v5742_v43  ;;  %v12584_v20 = vsel %vm6018_vm8, %v6014_v9, %v5946_v24 }
 0x413   :  { %v5992_v41 = vsel %vm5991_vm2, %v5983_v37, %v5810_v1  ;;  %v5782_v4 = vrot.slane %v12490_v21, %v11030_v12  ;;  %v5854_v61 = vrot.slane %v12451_v7, %v11033_v13  ;;  %v5930_v43 = vrot.slane %v12423_v17, %v11036_v14 }
 0x414   :  { %v12455_v35 = vpop.f32.mrf.mxu1  ;;  %v10144_v46 = vpop.f32.mrf.mxu0  ;;  %v5993_v56 = vsel %vm5991_vm2, %v5984_v54, %v5814_v39  ;;  %v5985_v36 = vsel %vm4531_vm5, %v5977_v59, %v5778_v19  ;;  %v5934_v53 = vrot.slane %v12451_v7, %v11036_v14  ;;  %v5718_v1 = vrot.slane %v12571_v63, %v11024_v8 }
 0x415   :  { %v5473_v0 = vadd.f32 %v5472_v6, %v12455_v35  ;;  %v5986_v55 = vsel %vm4531_vm5, %v5978_v23, %v5782_v4  ;;  %v12605_v35 = vsel %vm6018_vm8, %v6015_v52, %v5950_v45  ;;  %v12609_v6 = vsel %vm4664_vm6, %v12584_v20, 0.0 }
 0x416   :  { %v12481_v15 = vpop.f32.mrf.mxu1  ;;  %v12612_v39 = vsel %vm6000_vm3, %v5992_v41, %v5850_v38  ;;  %v5973_v9 = vsel %vm705_vm1, %v12391_v49, %v5714_v47  ;;  %v5648_v37 = vpop.f32.mrf.mxu0  ;;  %v12617_v59 = vsel %vm6000_vm3, %v5993_v56, %v5854_v61  ;;  %v5994_v19 = vsel %vm5991_vm2, %v5985_v36, %v5818_v32 }
 0x417   :  { %v12622_v45 = vadd.f32 %v12397_v48, %v12405_v40  ;;  %v5858_v38 = vrot.slane %v12453_v26, %v11033_v13  ;;  %v5995_v23 = vsel %vm5991_vm2, %v5986_v55, %v5822_v60  ;;  %v12631_v47 = vadd.f32 %v12401_v2, %v12413_v22 }
 0x418   :  { %v12518_v3 = vpop.f32.mrf.mxu1  ;;  %v5974_v32 = vsel %vm705_vm1, %v12470_v33, %v5718_v1  ;;  %v5981_v48 = vsel %vm4526_vm4, %v5973_v9, %v5754_v10  ;;  %v5862_v40 = vrot.slane %v12490_v21, %v11033_v13  ;;  %v5481_v60 = vadd.f32 %v12443_v25, %v12433_v27  ;;  %v10145_v1 = vpop.f32.mrf.mxu0 }
 0x419   :  { %v5794_v2 = vrot.slane %v12541_v57, %v11030_v12  ;;  %v5874_v10 = vrot.slane %v12541_v57, %v11033_v13  ;;  %v5476_v27 = vadd.f32 %v5475_v62, %v12518_v3  ;;  %v5982_v61 = vsel %vm4526_vm4, %v5974_v32, %v5758_v42 }
 0x41a   :  { %v10136_v51 = vpop.f32.mrf.mxu1  ;;  %v6004_v4 = vsel %vm6000_vm3, %v5995_v23, %v5862_v40  ;;  %v5938_v36 = vrot.slane %v12453_v26, %v11036_v14  ;;  %v5942_v42 = vrot.slane %v12490_v21, %v11036_v14  ;;  %v12685_v50 = vcombine.high %v12631_v47, %v12631_v47 }
 0x41b   :  { %v5555_v25 = vadd.f32 %v10136_v51, %v5481_v60  ;;  %v5989_v56 = vsel %vm4531_vm5, %v5981_v48, %v5794_v2  ;;  %v6090_v51 = vrot.slane %v12631_v47, %v11030_v12  ;;  %v6013_v26 = vsel %vm6009_vm7, %v6004_v4, %v5902_v34 }
 0x41c   :  { %v5538_v31 = vpop.f32.mrf.mxu1  ;;  %v12694_v9 = vcombine.high %v12622_v45, %v12622_v45  ;;  %v14011_v34 = vrot.slane %v12391_v49, %v11033_v13  ;;  %v12715_v32 = vsel %vm6018_vm8, %v6013_v26, %v5942_v42  ;;  %v6106_v48 = vrot.slane %v12622_v45, %v11030_v12 }
 0x41d   :  { %v5553_v24 = vadd.f32 %v5538_v31, %v5473_v0  ;;  %v12635_v31 = vadd.f32 %v12407_v5, %v12417_v30  ;;  %v6003_v5 = vsel %vm6000_vm3, %v5994_v19, %v5858_v38  ;;  %v5798_v0 = vrot.slane %v12571_v63, %v11030_v12 }
 0x41e   :  { %v10137_v54 = vpop.f32.mrf.mxu1  ;;  %v6012_v3 = vsel %vm6009_vm7, %v6003_v5, %v5898_v58  ;;  %v12696_v21 = vadd.f32 %v10144_v46, %v5555_v25  ;;  %v12710_v38 = vadd.f32 %v12419_v29, %v12425_v44  ;;  %v5651_v46 = vpop.f32.mrf.mxu0  ;;  %v6186_v2 = vrot.slane %v12622_v45, %v11033_v13 }
 0x41f   :  { %v12624_v52 = vadd.f32 %v5648_v37, %v5553_v24  ;;  %v12690_v24 = vsel %vm4531_vm5, %v5982_v61, %v5798_v0  ;;  %v12703_v37 = vsel %vm5991_vm2, %v5989_v56, %v14011_v34  ;;  %v12706_v19 = vsel %vm6018_vm8, %v6012_v3, %v5938_v36 }
 0x420   :  { %v5541_v41 = vpop.f32.mrf.mxu1  ;;  %v6094_v29 = vrot.slane %v12685_v50, %v11030_v12  ;;  %v5484_v44 = vadd.f32 %v12516_v18, %v12481_v15  ;;  %v6250_v4 = vrot.slane %v12631_v47, %v11036_v14  ;;  %v12740_v25 = vcombine.high %v12635_v31, %v12635_v31 }
 0x421   :  { %v12652_v22 = vcombine.high %v12624_v52, %v12624_v52  ;;  %v6050_v30 = vrot.slane %v12624_v52, %v11024_v8  ;;  %v5554_v55 = vadd.f32 %v5541_v41, %v5476_v27  ;;  %v6130_v23 = vrot.slane %v12624_v52, %v11030_v12 }
 0x422   :  { %v6170_v41 = vrot.slane %v12631_v47, %v11033_v13  ;;  %v6066_v27 = vrot.slane %v12696_v21, %v11024_v8  ;;  %v12744_v15 = vcombine.high %v12710_v38, %v12710_v38  ;;  %v5556_v0 = vadd.f32 %v10137_v54, %v5484_v44 }
 0x423   :  { %v6054_v62 = vrot.slane %v12652_v22, %v11024_v8  ;;  %v6327_v58 = vsel %vm705_vm1, %v12631_v47, %v6050_v30  ;;  %v12721_v60 = vadd.f32 %v5651_v46, %v5554_v55  ;;  %v6110_v30 = vrot.slane %v12694_v9, %v11030_v12 }
 0x424   :  { %v6335_v11 = vsel %vm4526_vm4, %v6327_v58, %v6090_v51  ;;  %v12749_v61 = vcombine.high %v12696_v21, %v12696_v21  ;;  %v6134_v47 = vrot.slane %v12652_v22, %v11030_v12  ;;  %v6174_v3 = vrot.slane %v12685_v50, %v11033_v13 }
 0x425   :  { %v6328_v40 = vsel %vm705_vm1, %v12685_v50, %v6054_v62  ;;  %v6343_v5 = vsel %vm4531_vm5, %v6335_v11, %v6130_v23  ;;  %v12756_v36 = vcombine.high %v12721_v60, %v12721_v60  ;;  %v6254_v51 = vrot.slane %v12685_v50, %v11036_v14 }
 0x426   :  { %v6336_v18 = vsel %vm4526_vm4, %v6328_v40, %v6094_v29  ;;  %v6351_v56 = vsel %vm5991_vm2, %v6343_v5, %v6170_v41  ;;  %v6098_v54 = vrot.slane %v12710_v38, %v11030_v12  ;;  %v6210_v62 = vrot.slane %v12624_v52, %v11033_v13 }
 0x427   :  { %v6331_v55 = vsel %vm705_vm1, %v12622_v45, %v6066_v27  ;;  %v6344_v42 = vsel %vm4531_vm5, %v6336_v18, %v6134_v47  ;;  %v6058_v26 = vrot.slane %v12721_v60, %v11024_v8  ;;  %v6062_v58 = vrot.slane %v12756_v36, %v11024_v8 }
 0x428   :  { %v6102_v50 = vrot.slane %v12744_v15, %v11030_v12  ;;  %v6178_v11 = vrot.slane %v12710_v38, %v11033_v13  ;;  %v6258_v34 = vrot.slane %v12710_v38, %v11036_v14  ;;  %v6359_v23 = vsel %vm6000_vm3, %v6351_v56, %v6210_v62 }
 0x429   :  { %v6182_v46 = vrot.slane %v12744_v15, %v11033_v13  ;;  %v6070_v40 = vrot.slane %v12749_v61, %v11024_v8  ;;  %v12784_v29 = vadd.f32 %v10145_v1, %v5556_v0  ;;  %v14012_v44 = vrot.slane %v12389_v28, %v11036_v14 }
 0x42a   :  { %v6339_v41 = vsel %vm4526_vm4, %v6331_v55, %v6106_v48  ;;  %v6352_v27 = vsel %vm5991_vm2, %v6344_v42, %v6174_v3  ;;  %v6138_v18 = vrot.slane %v12721_v60, %v11030_v12  ;;  %v6329_v47 = vsel %vm705_vm1, %v12710_v38, %v6058_v26  ;;  %v12821_v42 = vld [vmem:[%s14000_s9 + $0x58] sm:$0xff] }
 0x42b   :  { %v6010_v5 = vsel %vm6009_vm7, %v12612_v39, %v14012_v44  ;;  %v6214_v1 = vrot.slane %v12652_v22, %v11033_v13  ;;  %v6367_v0 = vsel %vm6009_vm7, %v6359_v23, %v6250_v4  ;;  %v6330_v28 = vsel %vm705_vm1, %v12744_v15, %v6062_v58  ;;  %10210 = vmatprep.subr.mxu1 %v12821_v42 }
 0x42c   :  { %v6337_v39 = vsel %vm4526_vm4, %v6329_v47, %v6098_v54  ;;  %v6290_v48 = vrot.slane %v12624_v52, %v11036_v14  ;;  %v6142_v56 = vrot.slane %v12756_v36, %v11030_v12  ;;  %v6338_v3 = vsel %vm4526_vm4, %v6330_v28, %v6102_v50 }
 0x42d   :  { %v6345_v38 = vsel %vm4531_vm5, %v6337_v39, %v6138_v18  ;;  %v6146_v62 = vrot.slane %v12696_v21, %v11030_v12  ;;  %v6360_v4 = vsel %vm6000_vm3, %v6352_v27, %v6214_v1  ;;  %v14013_v54 = vrot.slane %v12441_v16, %v11036_v14 }
 0x42e   :  { %v6353_v55 = vsel %vm5991_vm2, %v6345_v38, %v6178_v11  ;;  %v12824_v26 = vsel %vm6018_vm8, %v6367_v0, %v6290_v48  ;;  %v6218_v58 = vrot.slane %v12721_v60, %v11033_v13  ;;  %v6346_v50 = vsel %vm4531_vm5, %v6338_v3, %v6142_v56 }
 0x42f   :  { %v6011_v52 = vsel %vm6009_vm7, %v12617_v59, %v14013_v54  ;;  %v12833_v16 = vsel %vm6018_vm8, %v6010_v5, %v5930_v43  ;;  %v6332_v59 = vsel %vm705_vm1, %v12694_v9, %v6070_v40  ;;  %v6347_v11 = vsel %vm4531_vm5, %v6339_v41, %v6146_v62 }
 0x430   :  { %v6294_v23 = vrot.slane %v12652_v22, %v11036_v14  ;;  %v12843_v44 = vcombine.high %v12784_v29, %v12784_v29  ;;  %v6074_v17 = vrot.slane %v12784_v29, %v11024_v8  ;;  %v6361_v43 = vsel %vm6000_vm3, %v6353_v55, %v6218_v58  ;;  %v12858_v22 = vld [vmem:[%s14000_s9 + $0x18] sm:$0xff] }
 0x431   :  { %v12852_v5 = vsel %vm6018_vm8, %v6011_v52, %v5934_v53  ;;  %v6368_v40 = vsel %vm6009_vm7, %v6360_v4, %v6254_v51  ;;  %v6150_v41 = vrot.slane %v12749_v61, %v11030_v12  ;;  %v6354_v27 = vsel %vm5991_vm2, %v6346_v50, %v6182_v46  ;;  %10178 = vmatprep.subr.mxu0 %v12858_v22 }
 0x432   :  { %v6383_v18 = vsel %vm4664_vm6, %v12833_v16, 0.0  ;;  %v6384_v7 = vsel %vm4664_vm6, %v12824_v26, 0.0  ;;  %v6340_v53 = vsel %vm4526_vm4, %v6332_v59, %v6110_v30  ;;  %v6222_v51 = vrot.slane %v12756_v36, %v11033_v13 }
 0x433   :  { %v12875_v47 = vsel %vm6018_vm8, %v6368_v40, %v6294_v23  ;;  %v6385_v46 = vadd.f32 %v6384_v7, %v6383_v18  ;;  %v6355_v1 = vsel %vm5991_vm2, %v6347_v11, %v6186_v2  ;;  %v6078_v0 = vrot.slane %v12843_v44, %v11024_v8 }
 0x434   :  { %v6369_v28 = vsel %vm6009_vm7, %v6361_v43, %v6258_v34  ;;  %v6386_v30 = vsel %vm4664_vm6, %v12852_v5, 0.0  ;;  %v6333_v39 = vsel %vm705_vm1, %v12635_v31, %v6074_v17  ;;  %v6298_v48 = vrot.slane %v12721_v60, %v11036_v14 }
 0x435   :  { %v6362_v56 = vsel %vm6000_vm3, %v6354_v27, %v6222_v51  ;;  %v6387_v3 = vadd.f32 %v6386_v30, %v6385_v46  ;;  %v6114_v2 = vrot.slane %v12635_v31, %v11030_v12  ;;  %v6262_v8 = vrot.slane %v12744_v15, %v11036_v14 }
 0x436   :  { %v6226_v34 = vrot.slane %v12696_v21, %v11033_v13  ;;  %v6388_v38 = vsel %vm4664_vm6, %v12875_v47, 0.0  ;;  %v6390_v62 = vsel %vm4664_vm6, %v12706_v19, 0.0  ;;  %v6348_v60 = vsel %vm4531_vm5, %v6340_v53, %v6150_v41 }
 0x437   :  { %v12903_v4 = vsel %vm6018_vm8, %v6369_v28, %v6298_v48  ;;  %v6389_v55 = vadd.f32 %v6388_v38, %v6387_v3  ;;  %v6190_v54 = vrot.slane %v12694_v9, %v11033_v13  ;;  %v6341_v52 = vsel %vm4526_vm4, %v6333_v39, %v6114_v2 }
 0x438   :  { %v6363_v15 = vsel %vm6000_vm3, %v6355_v1, %v6226_v34  ;;  %v6370_v58 = vsel %vm6009_vm7, %v6362_v56, %v6262_v8  ;;  %v6154_v50 = vrot.slane %v12784_v29, %v11030_v12  ;;  %v6334_v59 = vsel %vm705_vm1, %v12740_v25, %v6078_v0 }
 0x439   :  { %v6302_v11 = vrot.slane %v12756_v36, %v11036_v14  ;;  %v6391_v23 = vadd.f32 %v6390_v62, %v6389_v55  ;;  %v6266_v17 = vrot.slane %v12622_v45, %v11036_v14  ;;  %v6118_v43 = vrot.slane %v12740_v25, %v11030_v12 }
 0x43a   :  { %v6356_v40 = vsel %vm5991_vm2, %v6348_v60, %v6190_v54  ;;  %v6392_v41 = vsel %vm4664_vm6, %v12903_v4, 0.0  ;;  %v6230_v27 = vrot.slane %v12749_v61, %v11033_v13  ;;  %v6349_v18 = vsel %vm4531_vm5, %v6341_v52, %v6154_v50 }
 0x43b   :  { %v12927_v7 = vsel %vm6018_vm8, %v6370_v58, %v6302_v11  ;;  %v6393_v36 = vadd.f32 %v6392_v41, %v6391_v23  ;;  %v6394_v45 = vsel %vm4664_vm6, %v12715_v32, 0.0  ;;  %v6194_v53 = vrot.slane %v12635_v31, %v11033_v13 }
 0x43c   :  { %v6371_v51 = vsel %vm6009_vm7, %v6363_v15, %v6266_v17  ;;  %v6342_v46 = vsel %vm4526_vm4, %v6334_v59, %v6118_v43  ;;  %v6306_v1 = vrot.slane %v12696_v21, %v11036_v14  ;;  %v6364_v0 = vsel %vm6000_vm3, %v6356_v40, %v6230_v27 }
 0x43d   :  { %v6158_v28 = vrot.slane %v12843_v44, %v11030_v12  ;;  %v6395_v30 = vadd.f32 %v6394_v45, %v6393_v36  ;;  %v6007_v39 = vsel %vm6000_vm3, %v12703_v37, %v5874_v10  ;;  %v6270_v48 = vrot.slane %v12694_v9, %v11036_v14 }
 0x43e   :  { %v6357_v56 = vsel %vm5991_vm2, %v6349_v18, %v6194_v53  ;;  %v6396_v21 = vsel %vm4664_vm6, %v12927_v7, 0.0  ;;  %v12951_v3 = vsel %vm6018_vm8, %v6371_v51, %v6306_v1  ;;  %v6234_v12 = vrot.slane %v12784_v29, %v11033_v13 }
 0x43f   :  { %v6350_v2 = vsel %vm4531_vm5, %v6342_v46, %v6158_v28  ;;  %v6397_v8 = vadd.f32 %v6396_v21, %v6395_v30  ;;  %v5954_v10 = vrot.slane %v12541_v57, %v11036_v14  ;;  %v14014_v9 = vrot.slane %v12470_v33, %v11033_v13 }
 0x440   :  { %v6198_v34 = vrot.slane %v12740_v25, %v11033_v13  ;;  %v6372_v38 = vsel %vm6009_vm7, %v6364_v0, %v6270_v48  ;;  %v5878_v62 = vrot.slane %v12571_v63, %v11033_v13  ;;  %v6310_v60 = vrot.slane %v12749_v61, %v11036_v14 }
 0x441   :  { %v5999_v37 = vsel %vm5991_vm2, %v12690_v24, %v14014_v9  ;;  %v6365_v55 = vsel %vm6000_vm3, %v6357_v56, %v6234_v12  ;;  %v6399_v57 = vadd.f32 %v12609_v6, %v6397_v8  ;;  %v14015_v54 = vrot.slane %v12391_v49, %v11036_v14 }
 0x442   :  { %v6274_v15 = vrot.slane %v12635_v31, %v11036_v14  ;;  %v6400_v52 = vsel %vm4664_vm6, %v12951_v3, 0.0  ;;  %v6358_v58 = vsel %vm5991_vm2, %v6350_v2, %v6198_v34  ;;  %v6008_v50 = vsel %vm6000_vm3, %v5999_v37, %v5878_v62 }
 0x443   :  { %v6016_v24 = vsel %vm6009_vm7, %v6007_v39, %v14015_v54  ;;  %v12983_v61 = vsel %vm6018_vm8, %v6372_v38, %v6310_v60  ;;  %v6238_v6 = vrot.slane %v12843_v44, %v11033_v13  ;;  %v6401_v59 = vadd.f32 %v6400_v52, %v6399_v57 }
 0x444   :  { %v5918_v49 = vrot.slane %v12470_v33, %v11036_v14  ;;  %v6402_v31 = vsel %vm4664_vm6, %v12605_v35, 0.0  ;;  %v6373_v11 = vsel %vm6009_vm7, %v6365_v55, %v6274_v15  ;;  %v12993_v23 = vsel %vm6018_vm8, %v6016_v24, %v5954_v10 }
 0x445   :  { %v6314_v17 = vrot.slane %v12784_v29, %v11036_v14  ;;  %v6366_v43 = vsel %vm6000_vm3, %v6358_v58, %v6238_v6  ;;  %v6403_v40 = vadd.f32 %v6402_v31, %v6401_v59  ;;  %v6278_v41 = vrot.slane %v12740_v25, %v11036_v14 }
 0x446   :  { %v6017_v13 = vsel %vm6009_vm7, %v6008_v50, %v5918_v49  ;;  %v6404_v33 = vsel %vm4664_vm6, %v12983_v61, 0.0  ;;  %v5958_v27 = vrot.slane %v12571_v63, %v11036_v14  ;;  %v6406_v29 = vsel %vm4664_vm6, %v12993_v23, 0.0 }
 0x447   :  { %v6381_v18 = vsel %vm6018_vm8, %v6373_v11, %v6314_v17  ;;  %v6405_v36 = vadd.f32 %v6404_v33, %v6403_v40  ;;  %v6374_v45 = vsel %vm6009_vm7, %v6366_v43, %v6278_v41  ;;  %v6318_v51 = vrot.slane %v12843_v44, %v11036_v14 }
 0x448   :  { %v6026_v53 = vsel %vm6018_vm8, %v6017_v13, %v5958_v27  ;;  %v6408_v46 = vsel %vm4664_vm6, %v6381_v18, 0.0 }
 0x449   :  { %v6407_v25 = vadd.f32 %v6406_v29, %v6405_v36  ;;  %v6382_v1 = vsel %vm6018_vm8, %v6374_v45, %v6318_v51  ;;  %v6410_v63 = vsel %vm4664_vm6, %v6026_v53, 0.0 }
 0x44a   :  { %v6412_v30 = vsel %vm4664_vm6, %v6382_v1, 0.0 }
 0x44b   :  { %v6409_v0 = vadd.f32 %v6408_v46, %v6407_v25 }
 0x44d   :  { %v6411_v28 = vadd.f32 %v6410_v63, %v6409_v0 }
 0x44f   :  { %v6413_v39 = vadd.f32 %v6412_v30, %v6411_v28 }
 0x451   :  { %v6414_v48 = vrot.slane %v6413_v39, 4 }
 0x453   :  { %v6415_v56 = vadd.f32 %v6414_v48, %v6413_v39 }
 0x455   :  { %v6416_v21 = vrot.slane %v6415_v56, 2 }
 0x457   :  { %v6417_v12 = vadd.f32 %v6416_v21, %v6415_v56 }
 0x459   :  { %v6418_v2 = vrot.slane %v6417_v12, 1 }
 0x45b   :  { %v6419_v8 = vadd.f32 %v6418_v2, %v6417_v12 }
 0x45d   :  { %v6421_v10 = vmul.f32 0.0078125, %v6419_v8 }
 0x45f   :  { %v13017_v14 = vsub.f32 %v12833_v16, %v6421_v10  ;;  %v13020_v44 = vsub.f32 %v12824_v26, %v6421_v10  ;;  %v13023_v9 = vsub.f32 %v12852_v5, %v6421_v10  ;;  %v13026_v37 = vsub.f32 %v12875_v47, %v6421_v10 }
 0x460   :  { %v13033_v62 = vsub.f32 %v12706_v19, %v6421_v10  ;;  %v13038_v26 = vsub.f32 %v12903_v4, %v6421_v10  ;;  %v13045_v57 = vsub.f32 %v12715_v32, %v6421_v10  ;;  %v13051_v4 = vsub.f32 %v12927_v7, %v6421_v10 }
 0x461   :  { %v6438_v34 = vmul.f32 %v13017_v14, %v13017_v14  ;;  %v6439_v38 = vmul.f32 %v13020_v44, %v13020_v44  ;;  %v6440_v16 = vmul.f32 %v13023_v9, %v13023_v9  ;;  %v6441_v5 = vmul.f32 %v13026_v37, %v13026_v37 }
 0x462   :  { %v6442_v19 = vmul.f32 %v13033_v62, %v13033_v62  ;;  %v6443_v15 = vmul.f32 %v13038_v26, %v13038_v26  ;;  %v6430_v50 = vsub.f32 %v12584_v20, %v6421_v10  ;;  %v6444_v32 = vmul.f32 %v13045_v57, %v13045_v57 }
 0x463   :  { %v6454_v47 = vsel %vm4664_vm6, %v6438_v34, 0.0  ;;  %v6455_v60 = vsel %vm4664_vm6, %v6439_v38, 0.0  ;;  %v6457_v54 = vsel %vm4664_vm6, %v6440_v16, 0.0  ;;  %v6459_v52 = vsel %vm4664_vm6, %v6441_v5, 0.0 }
 0x464   :  { %v6456_v55 = vadd.f32 %v6455_v60, %v6454_v47  ;;  %v6461_v6 = vsel %vm4664_vm6, %v6442_v19, 0.0  ;;  %v6431_v49 = vsub.f32 %v12951_v3, %v6421_v10  ;;  %v6445_v7 = vmul.f32 %v13051_v4, %v13051_v4 }
 0x465   :  { %v6463_v31 = vsel %vm4664_vm6, %v6443_v15, 0.0  ;;  %v13065_v17 = vsub.f32 %v12605_v35, %v6421_v10  ;;  %v6446_v43 = vmul.f32 %v6430_v50, %v6430_v50  ;;  %v6465_v20 = vsel %vm4664_vm6, %v6444_v32, 0.0  ;;  %v13106_v15 = vld [vmem:[%s14001_s7] ss:$0 sm:$0xff] }
 0x466   :  { %v6458_v24 = vadd.f32 %v6457_v54, %v6456_v55  ;;  %v13069_v13 = vsub.f32 %v12983_v61, %v6421_v10  ;;  %v6447_v41 = vmul.f32 %v6431_v49, %v6431_v49  ;;  %v6467_v33 = vsel %vm4664_vm6, %v6445_v7, 0.0 }
 0x467   :  { %v13073_v27 = vsub.f32 %v12993_v23, %v6421_v10  ;;  %v6448_v36 = vmul.f32 %v13065_v17, %v13065_v17  ;;  %v6469_v35 = vsel %vm4664_vm6, %v6446_v43, 0.0  ;;  %v13078_v45 = vsub.f32 %v6381_v18, %v6421_v10 }
 0x468   :  { %v6460_v58 = vadd.f32 %v6459_v52, %v6458_v24  ;;  %v6449_v51 = vmul.f32 %v13069_v13, %v13069_v13  ;;  %v6471_v61 = vsel %vm4664_vm6, %v6447_v41, 0.0  ;;  %v13083_v46 = vsub.f32 %v6026_v53, %v6421_v10 }
 0x469   :  { %v6450_v23 = vmul.f32 %v13073_v27, %v13073_v27  ;;  %v6473_v0 = vsel %vm4664_vm6, %v6448_v36, 0.0  ;;  %v13088_v28 = vsub.f32 %v6382_v1, %v6421_v10  ;;  %v6451_v18 = vmul.f32 %v13078_v45, %v13078_v45 }
 0x46a   :  { %v6462_v59 = vadd.f32 %v6461_v6, %v6460_v58  ;;  %v6475_v30 = vsel %vm4664_vm6, %v6449_v51, 0.0  ;;  %v6452_v48 = vmul.f32 %v13083_v46, %v13083_v46 }
 0x46b   :  { %v6477_v53 = vsel %vm4664_vm6, %v6450_v23, 0.0  ;;  %v6453_v21 = vmul.f32 %v13088_v28, %v13088_v28  ;;  %v6479_v12 = vsel %vm4664_vm6, %v6451_v18, 0.0 }
 0x46c   :  { %v6464_v11 = vadd.f32 %v6463_v31, %v6462_v59  ;;  %v6481_v1 = vsel %vm4664_vm6, %v6452_v48, 0.0  ;;  %v13119_v59 = vld [vmem:[%s14002_s8] ss:$0 sm:$0xff]  ;;  %v9325_v48 = vld [vmem:[%s14000_s9 + $0x50] sm:$0xff] }
 0x46d   :  { %v6483_v10 = vsel %vm4664_vm6, %v6453_v21, 0.0  ;;  %v6666_v21 = vld [vmem:[%s14000_s9 + $0x10] sm:$0xff] }
 0x46e   :  { %v6466_v40 = vadd.f32 %v6465_v20, %v6464_v11 }
 0x470   :  { %v6468_v3 = vadd.f32 %v6467_v33, %v6466_v40 }
 0x472   :  { %v6470_v29 = vadd.f32 %v6469_v35, %v6468_v3 }
 0x474   :  { %v6472_v25 = vadd.f32 %v6471_v61, %v6470_v29 }
 0x476   :  { %v6474_v63 = vadd.f32 %v6473_v0, %v6472_v25 }
 0x478   :  { %v6476_v39 = vadd.f32 %v6475_v30, %v6474_v63 }
 0x47a   :  { %v6478_v56 = vadd.f32 %v6477_v53, %v6476_v39 }
 0x47c   :  { %v6480_v2 = vadd.f32 %v6479_v12, %v6478_v56  ;;  %v14016_v12 = vmov 0.0  }
 0x47e   :  { %v6482_v8 = vadd.f32 %v6481_v1, %v6480_v2 }
 0x480   :  { %v6484_v34 = vadd.f32 %v6483_v10, %v6482_v8 }
 0x482   :  { %v6485_v38 = vrot.slane %v6484_v34, 4 }
 0x484   :  { %v6486_v16 = vadd.f32 %v6485_v38, %v6484_v34 }
 0x486   :  { %v6487_v5 = vrot.slane %v6486_v16, 2 }
 0x488   :  { %v6488_v47 = vadd.f32 %v6487_v5, %v6486_v16 }
 0x48a   :  { %v6489_v60 = vrot.slane %v6488_v47, 1 }
 0x48c   :  { %v6490_v55 = vadd.f32 %v6489_v60, %v6488_v47  ;;  %v9324_v47 = vld [vmem:[%s14000_s9 + $0x48] sm:$0xff] }
 0x48e   :  { %v6491_v19 = vmul.f32 0.0078125, %v6490_v55 }
 0x490   :  { %v6492_v54 = vadd.f32 1e-05, %v6491_v19  ;;  %v6664_v19 = vld [vmem:[%s14000_s9] sm:$0xff] }
 0x492   :  { %10754 = vrsqrt.f32 %v6492_v54 }
 0x49f   :  { %v13101_v24 = vpop.eup %10754 }
 0x4a0   :  { %v6494_v52 = vmul.f32 %v13101_v24, %v13017_v14  ;;  %v6499_v58 = vmul.f32 %v13101_v24, %v13038_v26  ;;  %v6495_v32 = vmul.f32 %v13101_v24, %v13020_v44  ;;  %v6500_v6 = vmul.f32 %v13101_v24, %v13045_v57 }
 0x4a1   :  { %v6496_v7 = vmul.f32 %v13101_v24, %v13023_v9  ;;  %v6497_v14 = vmul.f32 %v13101_v24, %v13026_v37  ;;  %v6502_v31 = vmul.f32 %v13101_v24, %v6430_v50  ;;  %v6503_v26 = vmul.f32 %v13101_v24, %v6431_v49 }
 0x4a2   :  { %v6517_v44 = vmul.f32 %v13106_v15, %v6494_v52  ;;  %v6522_v11 = vmul.f32 %v13106_v15, %v6499_v58  ;;  %v6518_v57 = vmul.f32 %v13106_v15, %v6495_v32  ;;  %v6523_v43 = vmul.f32 %v13106_v15, %v6500_v6 }
 0x4a3   :  { %v6519_v20 = vmul.f32 %v13106_v15, %v6496_v7  ;;  %v6520_v40 = vmul.f32 %v13106_v15, %v6497_v14  ;;  %v6525_v9 = vmul.f32 %v13106_v15, %v6502_v31  ;;  %v6526_v37 = vmul.f32 %v13106_v15, %v6503_v26  ;;  %v9323_v7 = vld [vmem:[%s14000_s9 + $0x40] sm:$0xff] }
 0x4a4   :  { %v6540_v50 = vadd.f32 %v13119_v59, %v6517_v44  ;;  %v6545_v49 = vadd.f32 %v13119_v59, %v6522_v11  ;;  %v6541_v41 = vadd.f32 %v13119_v59, %v6518_v57  ;;  %v6546_v33 = vadd.f32 %v13119_v59, %v6523_v43 }
 0x4a5   :  { %v6542_v3 = vadd.f32 %v13119_v59, %v6519_v20  ;;  %v6543_v36 = vadd.f32 %v13119_v59, %v6520_v40  ;;  %v6548_v35 = vadd.f32 %v13119_v59, %v6525_v9  ;;  %v6549_v29 = vadd.f32 %v13119_v59, %v6526_v37  ;;  %v9346_v20 = vld [vmem:[%s14000_s9 + $0x78] sm:$0xff] }
 0x4a6   :  { %vm6556_vm4 = vcmp.ge.f32.partialorder %v6540_v50, 0.0  ;;  %v6572_v51 = vmul.f32 0.01, %v6540_v50  ;;  %vm6561_vm5 = vcmp.ge.f32.partialorder %v6545_v49, 0.0  ;;  %v6577_v61 = vmul.f32 0.01, %v6545_v49 }
 0x4a7   :  { %vm6557_vm9 = vcmp.ge.f32.partialorder %v6541_v41, 0.0  ;;  %v6573_v25 = vmul.f32 0.01, %v6541_v41  ;;  %vm6562_vm10 = vcmp.ge.f32.partialorder %v6546_v33, 0.0  ;;  %v6578_v23 = vmul.f32 0.01, %v6546_v33 }
 0x4a8   :  { %v13143_v0 = vsel %vm6556_vm4, %v6540_v50, %v6572_v51  ;;  %v13145_v63 = vsel %vm6561_vm5, %v6545_v49, %v6577_v61  ;;  %vm6558_vm11 = vcmp.ge.f32.partialorder %v6542_v3, 0.0  ;;  %v6574_v18 = vmul.f32 0.01, %v6542_v3  ;;  %v9366_v50 = vld [vmem:[%s14000_s9 + $0x98] sm:$0xff] }
 0x4a9   :  { %10155 = vmatmul.mubr.msk.f32.vlgmr.msra.gmra.mxu0 %vm4664_vm6, %v13143_v0  ;;  %10163 = vmatprep.mubr.msk.f32.mxu1 %vm4664_vm6, %v13145_v63  ;;  %v13151_v30 = vsel %vm6557_vm9, %v6541_v41, %v6573_v25  ;;  %v13153_v39 = vsel %vm6562_vm10, %v6546_v33, %v6578_v23  ;;  %vm6559_vm12 = vcmp.ge.f32.partialorder %v6543_v36, 0.0  ;;  %v6575_v56 = vmul.f32 0.01, %v6543_v36  ;;  %v9345_v23 = vld [vmem:[%s14000_s9 + $0x70] sm:$0xff] }
 0x4aa   :  { %10157 = vmatprep.mubr.msk.f32.mxu0 %vm4664_vm6, %v13151_v30  ;;  %10164 = vmatmul.mubr.msk.f32.vlgmr.msra.gmra.mxu1 %vm4664_vm6, %v13153_v39  ;;  %v13162_v53 = vsel %vm6558_vm11, %v6542_v3, %v6574_v18  ;;  %vm6564_vm13 = vcmp.ge.f32.partialorder %v6548_v35, 0.0  ;;  %v6580_v2 = vmul.f32 0.01, %v6548_v35  ;;  %vm6565_vm14 = vcmp.ge.f32.partialorder %v6549_v29, 0.0 }
 0x4ab   :  { %10211 = vmatpush3.msra.mxu1 %v12821_v42  ;;  %10166 = vmatprep.mubr.f32.mxu1 %v14016_v12  ;;  %v6581_v1 = vmul.f32 0.01, %v6549_v29  ;;  %v6498_v8 = vmul.f32 %v13101_v24, %v13033_v62  ;;  %v13171_v10 = vsel %vm6559_vm12, %v6543_v36, %v6575_v56  ;;  %v6504_v34 = vmul.f32 %v13101_v24, %v13065_v17 }
 0x4ac   :  { %10179 = vmatpush3.msra.mxu0 %v12858_v22  ;;  %10212 = vmatprep.subr.mxu1 %v9325_v48  ;;  %v6505_v38 = vmul.f32 %v13101_v24, %v13069_v13  ;;  %v6619_v42 = vrot.slane %v14016_v12, 7  ;;  %v13181_v16 = vsel %vm6564_vm13, %v6548_v35, %v6580_v2  ;;  %v6665_v22 = vld [vmem:[%s14000_s9 + $0x8] sm:$0xff]  ;;  %v6506_v60 = vmul.f32 %v13101_v24, %v13073_v27 }
 0x4ad   :  { %10158 = vmatmul.mubr.msk.f32.gmra.mxu0 %vm4664_vm6, %v13162_v53  ;;  %v13183_v5 = vsel %vm6565_vm14, %v6549_v29, %v6581_v1  ;;  %10180 = vmatprep.subr.mxu0 %v6666_v21  ;;  %v6521_v62 = vmul.f32 %v13106_v15, %v6498_v8  ;;  %v6527_v17 = vmul.f32 %v13106_v15, %v6504_v34  ;;  %v6620_v44 = vrot.slane %v13143_v0, 7 }
 0x4ae   :  { %10160 = vmatprep.mubr.msk.f32.mxu0 %vm4664_vm6, %v13171_v10  ;;  %10167 = vmatmul.mubr.msk.f32.gmra.mxu1 %vm4664_vm6, %v13181_v16  ;;  %v6528_v13 = vmul.f32 %v13106_v15, %v6505_v38  ;;  %v6507_v54 = vmul.f32 %v13101_v24, %v13078_v45  ;;  %v6508_v52 = vmul.f32 %v13101_v24, %v13083_v46  ;;  %v13213_v32 = vsel %vm705_vm1, 0.0, %v6619_v42  ;;  %v9344_v38 = vld [vmem:[%s14000_s9 + $0x68] sm:$0xff] }
 0x4af   :  { %10169 = vmatprep.mubr.msk.f32.mxu1 %vm4664_vm6, %v13183_v5  ;;  %10181 = vmatpush3.msra.mxu0 %v6666_v21  ;;  %v6544_v55 = vadd.f32 %v13119_v59, %v6521_v62  ;;  %v6550_v27 = vadd.f32 %v13119_v59, %v6527_v17  ;;  %v6529_v6 = vmul.f32 %v13106_v15, %v6506_v60  ;;  %v6621_v9 = vrot.slane %v13151_v30, 7  ;;  %v9365_v60 = vld [vmem:[%s14000_s9 + $0x90] sm:$0xff] }
 0x4b0   :  { %10213 = vmatpush3.msra.mxu1 %v9325_v48  ;;  %10182 = vmatprep.subr.mxu0 %v6665_v22  ;;  %v6551_v58 = vadd.f32 %v13119_v59, %v6528_v13  ;;  %v6530_v46 = vmul.f32 %v13106_v15, %v6507_v54  ;;  %v6531_v14 = vmul.f32 %v13106_v15, %v6508_v52  ;;  %v13248_v3 = vsel %vm705_vm1, 0.0, %v6620_v44 }
 0x4b1   :  { %vm6560_vm15 = vcmp.ge.f32.partialorder %v6544_v55, 0.0  ;;  %v6576_v45 = vmul.f32 0.01, %v6544_v55  ;;  %10183 = vmatpush3.msra.mxu0 %v6665_v22  ;;  %10214 = vmatprep.subr.mxu1 %v9324_v47  ;;  %vm6566_vm0 = vcmp.ge.f32.partialorder %v6550_v27, 0.0  ;;  %v6582_v31 = vmul.f32 0.01, %v6550_v27 }
 0x4b2   :  { %vm6567_vm2 = vcmp.ge.f32.partialorder %v6551_v58, 0.0  ;;  %v6583_v26 = vmul.f32 0.01, %v6551_v58  ;;  %10184 = vmatprep.subr.mxu0 %v6664_v19  ;;  %10215 = vmatpush3.msra.mxu1 %v9324_v47  ;;  %v6552_v57 = vadd.f32 %v13119_v59, %v6529_v6  ;;  %v6553_v43 = vadd.f32 %v13119_v59, %v6530_v46 }
 0x4b3   :  { %v13222_v11 = vsel %vm6560_vm15, %v6544_v55, %v6576_v45  ;;  %10185 = vmatpush3.msra.mxu0 %v6664_v19  ;;  %10216 = vmatprep.subr.mxu1 %v9323_v7  ;;  %v13231_v40 = vsel %vm6566_vm0, %v6550_v27, %v6582_v31  ;;  %v6554_v37 = vadd.f32 %v13119_v59, %v6531_v14  ;;  %v6622_v36 = vrot.slane %v13162_v53, 7  ;;  %v9343_v45 = vld [vmem:[%s14000_s9 + $0x60] sm:$0xff] }
 0x4b4   :  { %10161 = vmatmul.mubr.msk.f32.gmra.mxu0 %vm4664_vm6, %v13222_v11  ;;  %10217 = vmatpush3.msra.mxu1 %v9323_v7  ;;  %v13241_v49 = vsel %vm6567_vm2, %v6551_v58, %v6583_v26  ;;  %vm6568_vm3 = vcmp.ge.f32.partialorder %v6552_v57, 0.0  ;;  %v6584_v41 = vmul.f32 0.01, %v6552_v57  ;;  %v6585_v33 = vmul.f32 0.01, %v6553_v43  ;;  %v9364_v58 = vld [vmem:[%s14000_s9 + $0x88] sm:$0xff] }
 0x4b5   :  { %10170 = vmatmul.mubr.msk.f32.gmra.mxu1 %vm4664_vm6, %v13231_v40  ;;  %10186 = vmatprep.mubr.msk.f32.mxu0 %vm4664_vm6, %v13213_v32  ;;  %vm6569_vm7 = vcmp.ge.f32.partialorder %v6553_v43, 0.0  ;;  %v7038_v35 = vrot.slane %v14016_v12, 1  ;;  %v13257_v51 = vsel %vm705_vm1, 0.0, %v6621_v9  ;;  %v6586_v61 = vmul.f32 0.01, %v6554_v37  ;;  %v9363_v26 = vld [vmem:[%s14000_s9 + $0x80] sm:$0xff] }
 0x4b6   :  { %10172 = vmatprep.mubr.msk.f32.mxu1 %vm4664_vm6, %v13241_v49  ;;  %10242 = vmatprep.subr.mxu0 %v9346_v20  ;;  %v13254_v29 = vsel %vm6568_vm3, %v6552_v57, %v6584_v41  ;;  %v6623_v25 = vrot.slane %v13171_v10, 7  ;;  %v13267_v18 = vsel %vm6569_vm7, %v6553_v43, %v6585_v33  ;;  %vm6570_vm4 = vcmp.ge.f32.partialorder %v6554_v37, 0.0  ;;  %v9386_v41 = vld [vmem:[%s14000_s9 + $0xb8] sm:$0xff] }
 0x4b7   :  { %10274 = vmatprep.subr.mxu1 %v9366_v50  ;;  %v13272_v48 = vsel %vm705_vm1, 0.0, %v6622_v36  ;;  %v6624_v56 = vrot.slane %v13222_v11, 7  ;;  %v13276_v21 = vsel %vm6018_vm8, %v7038_v35, 0.0  ;;  %v7039_v2 = vrot.slane %v13143_v0, 1  ;;  %v13386_v36 = vld [vmem:[%s14000_s9 + $0xd8] sm:$0xff] }
 0x4b8   :  { %10187 = vmatmul.mubr.msk.f32.vlgmr.msra.gmra.mxu0 %vm4664_vm6, %v13248_v3  ;;  %v13281_v1 = vsel %vm6570_vm4, %v6554_v37, %v6586_v61  ;;  %v13284_v8 = vsel %vm705_vm1, 0.0, %v6623_v25  ;;  %v6625_v34 = vrot.slane %v13145_v63, 7  ;;  %v7040_v42 = vrot.slane %v13151_v30, 1 }
 0x4b9   :  { %10173 = vmatmul.mubr.msk.f32.gmra.mxu1 %vm4664_vm6, %v13254_v29  ;;  %10189 = vmatprep.mubr.msk.f32.mxu0 %vm4664_vm6, %v13257_v51  ;;  %v13298_v62 = vsel %vm705_vm1, 0.0, %v6624_v56  ;;  %v6626_v22 = vrot.slane %v13153_v39, 7  ;;  %v13307_v13 = vsel %vm6018_vm8, %v7039_v2, 0.0  ;;  %v7041_v47 = vrot.slane %v13162_v53, 1 }
 0x4ba   :  { %10175 = vmatprep.mubr.msk.f32.mxu1 %vm4664_vm6, %v13267_v18  ;;  %10243 = vmatpush3.msra.mxu0 %v9346_v20  ;;  %v13304_v17 = vsel %vm705_vm1, 0.0, %v6625_v34  ;;  %v13318_v55 = vsel %vm6018_vm8, %v7040_v42, 0.0  ;;  %v7042_v19 = vrot.slane %v13171_v10, 1  ;;  %v6509_v54 = vmul.f32 %v13101_v24, %v13088_v28 }
 0x4bb   :  { %10244 = vmatprep.subr.mxu0 %v9345_v23  ;;  %v13326_v52 = vsel %vm705_vm1, 0.0, %v6626_v22  ;;  %v6627_v27 = vrot.slane %v13181_v16, 7  ;;  %v13335_v6 = vsel %vm6018_vm8, %v7041_v47, 0.0  ;;  %v6628_v7 = vrot.slane %v13183_v5, 7 }
 0x4bc   :  { %10190 = vmatmul.mubr.msk.f32.gmra.mxu0 %vm4664_vm6, %v13272_v48  ;;  %v7043_v28 = vrot.slane %v13222_v11, 1  ;;  %v6532_v46 = vmul.f32 %v13106_v15, %v6509_v54  ;;  %v13346_v14 = vsel %vm6018_vm8, %v7042_v19, 0.0  ;;  %v7044_v31 = vrot.slane %v13145_v63, 1 }
 0x4bd   :  { %10176 = vmatmul.mubr.msk.f32.gmra.mxu1 %vm4664_vm6, %v13281_v1  ;;  %10192 = vmatprep.mubr.msk.f32.mxu0 %vm4664_vm6, %v13284_v8  ;;  %v13360_v57 = vsel %vm705_vm1, 0.0, %v6627_v27  ;;  %v6629_v43 = vrot.slane %v13231_v40, 7  ;;  %v13366_v20 = vsel %vm705_vm1, 0.0, %v6628_v7  ;;  %v6630_v37 = vrot.slane %v13241_v49, 7 }
 0x4be   :  { %10218 = vmatprep.mubr.msk.f32.mxu1 %vm4664_vm6, %v13276_v21  ;;  %10245 = vmatpush3.msra.mxu0 %v9345_v23  ;;  %v13357_v44 = vadd.f32 %v13119_v59, %v6532_v46  ;;  %v13369_v9 = vsel %vm6018_vm8, %v7043_v28, 0.0  ;;  %v13381_v33 = vsel %vm6018_vm8, %v7044_v31, 0.0  ;;  %v6631_v61 = vrot.slane %v13254_v29, 7 }
 0x4bf   :  { %10246 = vmatprep.subr.mxu0 %v9344_v38  ;;  %v13391_v35 = vsel %vm705_vm1, 0.0, %v6629_v43  ;;  %v6632_v25 = vrot.slane %v13267_v18, 7  ;;  %v13398_v23 = vsel %vm705_vm1, 0.0, %v6630_v37  ;;  %v7046_v2 = vrot.slane %v13181_v16, 1 }
 0x4c0   :  { %10193 = vmatmul.mubr.msk.f32.gmra.mxu0 %vm4664_vm6, %v13298_v62  ;;  %v6501_v34 = vmul.f32 %v13101_v24, %v13051_v4  ;;  %v13415_v42 = vsel %vm705_vm1, 0.0, %v6631_v61  ;;  %v6633_v22 = vrot.slane %v13281_v1, 7  ;;  %v7048_v47 = vrot.slane %v13231_v40, 1  ;;  %v9405_v61 = vld [vmem:[%s14000_s9 + $0xd0] sm:$0xff] }
 0x4c1   :  { %10195 = vmatprep.mubr.msk.f32.mxu0 %vm4664_vm6, %v13304_v17  ;;  %10219 = vmatmul.mubr.msk.f32.vlgmr.msra.gmra.mxu1 %vm4664_vm6, %v13307_v13  ;;  %v13421_v4 = vsel %vm705_vm1, 0.0, %v6632_v25  ;;  %v13424_v24 = vsel %vm6018_vm8, %v7046_v2, 0.0  ;;  %v7049_v54 = vrot.slane %v13241_v49, 1  ;;  %v9404_v25 = vld [vmem:[%s14000_s9 + $0xc8] sm:$0xff]  ;;  %v9383_v2 = vld [vmem:[%s14000_s9 + $0xa0] sm:$0xff]  ;;  %vm6571_vm9 = vcmp.ge.f32.partialorder %v13357_v44, 0.0 }
 0x4c2   :  { %10221 = vmatprep.mubr.msk.f32.mxu1 %vm4664_vm6, %v13318_v55  ;;  %10275 = vmatpush3.msra.mxu1 %v9366_v50  ;;  %v7045_v50 = vrot.slane %v13153_v39, 1  ;;  %v13439_v27 = vsel %vm705_vm1, 0.0, %v6633_v22 }
 0x4c3   :  { %10276 = vmatprep.subr.mxu1 %v9365_v60  ;;  %10247 = vmatpush3.msra.mxu0 %v9344_v38  ;;  %v7047_v38 = vrot.slane %v13183_v5, 1  ;;  %v13453_v28 = vsel %vm6018_vm8, %v7049_v54, 0.0  ;;  %v9443_v54 = vld [vmem:[%s14000_s9 + $0x110] sm:$0xff] }
 0x4c4   :  { %10196 = vmatmul.mubr.msk.f32.gmra.mxu0 %vm4664_vm6, %v13326_v52  ;;  %10277 = vmatpush3.msra.mxu1 %v9365_v60  ;;  %v13401_v56 = vsel %vm6018_vm8, %v7045_v50, 0.0  ;;  %v6524_v60 = vmul.f32 %v13106_v15, %v6501_v34  ;;  %v13444_v15 = vsel %vm6018_vm8, %v7048_v47, 0.0  ;;  %v9384_v50 = vld [vmem:[%s14000_s9 + $0xa8] sm:$0xff]  ;;  %v6587_v34 = vmul.f32 0.01, %v13357_v44 }
 0x4c5   :  { %10222 = vmatmul.mubr.msk.f32.gmra.mxu1 %vm4664_vm6, %v13335_v6  ;;  %10198 = vmatprep.mubr.msk.f32.mxu0 %vm4664_vm6, %v13213_v32  ;;  %v13433_v19 = vsel %vm6018_vm8, %v7047_v38, 0.0  ;;  %v9444_v38 = vld [vmem:[%s14000_s9 + $0x118] sm:$0xff] }
 0x4c6   :  { %10224 = vmatprep.mubr.msk.f32.mxu1 %vm4664_vm6, %v13346_v14  ;;  %10278 = vmatprep.subr.mxu1 %v9364_v58  ;;  %v6547_v7 = vadd.f32 %v13119_v59, %v6524_v60  ;;  %v7052_v59 = vrot.slane %v13281_v1, 1  ;;  %v13544_v22 = vsel %vm6571_vm9, %v13357_v44, %v6587_v34 }
 0x4c7   :  { %10279 = vmatpush3.msra.mxu1 %v9364_v58  ;;  %10248 = vmatprep.subr.mxu0 %v9343_v45  ;;  %v7050_v58 = vrot.slane %v13254_v29, 1  ;;  %v7297_v47 = vrot.slane %v13544_v22, 7 }
 0x4c8   :  { %10199 = vmatmul.mubr.msk.f32.gmra.mxu0 %vm4664_vm6, %v13360_v57  ;;  %10280 = vmatprep.subr.mxu1 %v9363_v26  ;;  %v6579_v31 = vmul.f32 0.01, %v6547_v7  ;;  %vm6563_vm5 = vcmp.ge.f32.partialorder %v6547_v7, 0.0  ;;  %v13479_v43 = vsel %vm6018_vm8, %v7052_v59, 0.0 }
 0x4c9   :  { %10201 = vmatprep.mubr.msk.f32.mxu0 %vm4664_vm6, %v13366_v20  ;;  %10225 = vmatmul.mubr.msk.f32.gmra.mxu1 %vm4664_vm6, %v13369_v9  ;;  %v13461_v46 = vsel %vm6018_vm8, %v7050_v58, 0.0  ;;  %v13562_v44 = vsel %vm705_vm1, 0.0, %v7297_v47  ;;  %v9442_v58 = vld [vmem:[%s14000_s9 + $0x108] sm:$0xff] }
 0x4ca   :  { %10227 = vmatprep.mubr.msk.f32.mxu1 %vm4664_vm6, %v13381_v33  ;;  %10249 = vmatpush3.msra.mxu0 %v9343_v45  ;;  %v7051_v45 = vrot.slane %v13267_v18, 1  ;;  %v13481_v37 = vsel %vm6563_vm5, %v6547_v7, %v6579_v31  ;;  %v9423_v7 = vld [vmem:[%s14000_s9 + $0xe0] sm:$0xff] }
 0x4cb   :  { %10281 = vmatpush3.msra.mxu1 %v9363_v26  ;;  %10306 = vmatprep.subr.mxu0 %v9386_v41  ;;  %v7644_v60 = vrot.slane %v13481_v37, 1 }
 0x4cc   :  { %10202 = vmatmul.mubr.msk.f32.gmra.mxu0 %vm4664_vm6, %v13391_v35  ;;  %10338 = vmatprep.subr.mxu1 %v13386_v36  ;;  %v13472_v26 = vsel %vm6018_vm8, %v7051_v45, 0.0 }
 0x4cd   :  { %10204 = vmatprep.mubr.msk.f32.mxu0 %vm4664_vm6, %v13398_v23  ;;  %10228 = vmatmul.mubr.msk.f32.gmra.mxu1 %vm4664_vm6, %v13401_v56 }
 0x4ce   :  { %10230 = vmatprep.mubr.msk.f32.mxu1 %vm4664_vm6, %v13276_v21 }
 0x4d0   :  { %10205 = vmatmul.mubr.msk.f32.gmra.mxu0 %vm4664_vm6, %v13415_v42 }
 0x4d1   :  { %10207 = vmatprep.mubr.msk.f32.mxu0 %vm4664_vm6, %v13421_v4  ;;  %10231 = vmatmul.mubr.msk.f32.gmra.mxu1 %vm4664_vm6, %v13424_v24 }
 0x4d2   :  { %10233 = vmatprep.mubr.msk.f32.mxu1 %vm4664_vm6, %v13433_v19 }
 0x4d4   :  { %10208 = vmatmul.mubr.msk.f32.gmra.mxu0 %vm4664_vm6, %v13439_v27 }
 0x4d5   :  { %10234 = vmatmul.mubr.msk.f32.gmra.mxu1 %vm4664_vm6, %v13444_v15  ;;  %10250 = vmatprep.mubr.msk.f32.mxu0 %vm4664_vm6, %v13248_v3  ;;  %v9385_v3 = vld [vmem:[%s14000_s9 + $0xb0] sm:$0xff] }
 0x4d6   :  { %10236 = vmatprep.mubr.msk.f32.mxu1 %vm4664_vm6, %v13453_v28 }
 0x4d8   :  { %10251 = vmatmul.mubr.msk.f32.vlgmr.msra.gmra.mxu0 %vm4664_vm6, %v13257_v51 }
 0x4d9   :  { %10237 = vmatmul.mubr.msk.f32.gmra.mxu1 %vm4664_vm6, %v13461_v46  ;;  %10253 = vmatprep.mubr.msk.f32.mxu0 %vm4664_vm6, %v13272_v48 }
 0x4da   :  { %10239 = vmatprep.mubr.msk.f32.mxu1 %vm4664_vm6, %v13472_v26  ;;  %10307 = vmatpush3.msra.mxu0 %v9386_v41  ;;  %v7296_v41 = vrot.slane %v13481_v37, 7 }
 0x4db   :  { %10308 = vmatprep.subr.mxu0 %v9385_v3 }
 0x4dc   :  { %10254 = vmatmul.mubr.msk.f32.gmra.mxu0 %vm4664_vm6, %v13284_v8 }
 0x4dd   :  { %10240 = vmatmul.mubr.msk.f32.gmra.mxu1 %vm4664_vm6, %v13479_v43  ;;  %10256 = vmatprep.mubr.msk.f32.mxu0 %vm4664_vm6, %v13298_v62 }
 0x4de   :  { %10282 = vmatprep.mubr.msk.f32.mxu1 %vm4664_vm6, %v13143_v0  ;;  %10309 = vmatpush3.msra.mxu0 %v9385_v3  ;;  %v13506_v0 = vsel %vm705_vm1, 0.0, %v7296_v41 }
 0x4df   :  { %10310 = vmatprep.subr.mxu0 %v9384_v50 }
 0x4e0   :  { %10257 = vmatmul.mubr.msk.f32.gmra.mxu0 %vm4664_vm6, %v13304_v17 }
 0x4e1   :  { %10259 = vmatprep.mubr.msk.f32.mxu0 %vm4664_vm6, %v13326_v52  ;;  %10283 = vmatmul.mubr.msk.f32.vlgmr.msra.gmra.mxu1 %vm4664_vm6, %v13151_v30 }
 0x4e2   :  { %10285 = vmatprep.mubr.msk.f32.mxu1 %vm4664_vm6, %v13162_v53  ;;  %10339 = vmatpush3.msra.mxu1 %v13386_v36  ;;  %v9403_v36 = vld [vmem:[%s14000_s9 + $0xc0] sm:$0xff] }
 0x4e3   :  { %10340 = vmatprep.subr.mxu1 %v9405_v61  ;;  %10311 = vmatpush3.msra.mxu0 %v9384_v50 }
 0x4e4   :  { %10260 = vmatmul.mubr.msk.f32.gmra.mxu0 %vm4664_vm6, %v13506_v0  ;;  %10341 = vmatpush3.msra.mxu1 %v9405_v61 }
 0x4e5   :  { %10262 = vmatprep.mubr.msk.f32.mxu0 %vm4664_vm6, %v13360_v57  ;;  %10286 = vmatmul.mubr.msk.f32.gmra.mxu1 %vm4664_vm6, %v13171_v10  ;;  %v9426_v57 = vld [vmem:[%s14000_s9 + $0xf8] sm:$0xff] }
 0x4e6   :  { %10288 = vmatprep.mubr.msk.f32.mxu1 %vm4664_vm6, %v13222_v11  ;;  %10342 = vmatprep.subr.mxu1 %v9404_v25 }
 0x4e7   :  { %10343 = vmatpush3.msra.mxu1 %v9404_v25  ;;  %10312 = vmatprep.subr.mxu0 %v9383_v2 }
 0x4e8   :  { %10263 = vmatmul.mubr.msk.f32.gmra.mxu0 %vm4664_vm6, %v13366_v20  ;;  %10344 = vmatprep.subr.mxu1 %v9403_v36 }
 0x4e9   :  { %10265 = vmatprep.mubr.msk.f32.mxu0 %vm4664_vm6, %v13391_v35  ;;  %10289 = vmatmul.mubr.msk.f32.gmra.mxu1 %vm4664_vm6, %v13145_v63 }
 0x4ea   :  { %10291 = vmatprep.mubr.msk.f32.mxu1 %vm4664_vm6, %v13153_v39  ;;  %10313 = vmatpush3.msra.mxu0 %v9383_v2 }
 0x4eb   :  { %10345 = vmatpush3.msra.mxu1 %v9403_v36  ;;  %10370 = vmatprep.subr.mxu0 %v9426_v57 }
 0x4ec   :  { %10266 = vmatmul.mubr.msk.f32.gmra.mxu0 %vm4664_vm6, %v13398_v23  ;;  %10402 = vmatprep.subr.mxu1 %v9444_v38 }
 0x4ed   :  { %10268 = vmatprep.mubr.msk.f32.mxu0 %vm4664_vm6, %v13415_v42  ;;  %10292 = vmatmul.mubr.msk.f32.gmra.mxu1 %vm4664_vm6, %v13481_v37 }
 0x4ee   :  { %10294 = vmatprep.mubr.msk.f32.mxu1 %vm4664_vm6, %v13181_v16  ;;  %v9425_v16 = vld [vmem:[%s14000_s9 + $0xf0] sm:$0xff] }
 0x4f0   :  { %10269 = vmatmul.mubr.msk.f32.gmra.mxu0 %vm4664_vm6, %v13421_v4 }
 0x4f1   :  { %10271 = vmatprep.mubr.msk.f32.mxu0 %vm4664_vm6, %v13439_v27  ;;  %10295 = vmatmul.mubr.msk.f32.gmra.mxu1 %vm4664_vm6, %v13183_v5 }
 0x4f2   :  { %10297 = vmatprep.mubr.msk.f32.mxu1 %vm4664_vm6, %v13231_v40 }
 0x4f4   :  { %10272 = vmatmul.mubr.msk.f32.gmra.mxu0 %vm4664_vm6, %v13562_v44 }
 0x4f5   :  { %10298 = vmatmul.mubr.msk.f32.gmra.mxu1 %vm4664_vm6, %v13241_v49  ;;  %10314 = vmatprep.mubr.msk.f32.mxu0 %vm4664_vm6, %v13307_v13  ;;  %v9424_v13 = vld [vmem:[%s14000_s9 + $0xe8] sm:$0xff] }
 0x4f6   :  { %10300 = vmatprep.mubr.msk.f32.mxu1 %vm4664_vm6, %v13254_v29 }
 0x4f8   :  { %10315 = vmatmul.mubr.msk.f32.vlgmr.msra.gmra.mxu0 %vm4664_vm6, %v13318_v55 }
 0x4f9   :  { %10301 = vmatmul.mubr.msk.f32.gmra.mxu1 %vm4664_vm6, %v13267_v18  ;;  %10317 = vmatprep.mubr.msk.f32.mxu0 %vm4664_vm6, %v13335_v6 }
 0x4fa   :  { %10303 = vmatprep.mubr.msk.f32.mxu1 %vm4664_vm6, %v13281_v1  ;;  %10371 = vmatpush3.msra.mxu0 %v9426_v57 }
 0x4fb   :  { %10372 = vmatprep.subr.mxu0 %v9425_v16 }
 0x4fc   :  { %10318 = vmatmul.mubr.msk.f32.gmra.mxu0 %vm4664_vm6, %v13346_v14 }
 0x4fd   :  { %10304 = vmatmul.mubr.msk.f32.gmra.mxu1 %vm4664_vm6, %v13544_v22  ;;  %10320 = vmatprep.mubr.msk.f32.mxu0 %vm4664_vm6, %v13369_v9 }
 0x4fe   :  { %10346 = vmatprep.mubr.msk.f32.mxu1 %vm4664_vm6, %v13257_v51  ;;  %10373 = vmatpush3.msra.mxu0 %v9425_v16  ;;  %v7648_v51 = vsel %vm6018_vm8, %v7644_v60, 0.0 }
 0x4ff   :  { %10374 = vmatprep.subr.mxu0 %v9424_v13 }
 0x500   :  { %10321 = vmatmul.mubr.msk.f32.gmra.mxu0 %vm4664_vm6, %v13381_v33 }
 0x501   :  { %10323 = vmatprep.mubr.msk.f32.mxu0 %vm4664_vm6, %v13401_v56  ;;  %10347 = vmatmul.mubr.msk.f32.vlgmr.msra.gmra.mxu1 %vm4664_vm6, %v13272_v48  ;;  %v9441_v48 = vld [vmem:[%s14000_s9 + $0x100] sm:$0xff] }
 0x502   :  { %10349 = vmatprep.mubr.msk.f32.mxu1 %vm4664_vm6, %v13284_v8  ;;  %10403 = vmatpush3.msra.mxu1 %v9444_v38  ;;  %v7645_v8 = vrot.slane %v13544_v22, 1 }
 0x503   :  { %10404 = vmatprep.subr.mxu1 %v9443_v54  ;;  %10375 = vmatpush3.msra.mxu0 %v9424_v13 }
 0x504   :  { %10324 = vmatmul.mubr.msk.f32.gmra.mxu0 %vm4664_vm6, %v7648_v51  ;;  %10405 = vmatpush3.msra.mxu1 %v9443_v54 }
 0x505   :  { %10326 = vmatprep.mubr.msk.f32.mxu0 %vm4664_vm6, %v13424_v24  ;;  %10350 = vmatmul.mubr.msk.f32.gmra.mxu1 %vm4664_vm6, %v13298_v62  ;;  %v7649_v62 = vsel %vm6018_vm8, %v7645_v8, 0.0 }
 0x506   :  { %10352 = vmatprep.mubr.msk.f32.mxu1 %vm4664_vm6, %v13304_v17  ;;  %10406 = vmatprep.subr.mxu1 %v9442_v58 }
 0x507   :  { %10407 = vmatpush3.msra.mxu1 %v9442_v58  ;;  %10376 = vmatprep.subr.mxu0 %v9423_v7 }
 0x508   :  { %10327 = vmatmul.mubr.msk.f32.gmra.mxu0 %vm4664_vm6, %v13433_v19  ;;  %10408 = vmatprep.subr.mxu1 %v9441_v48 }
 0x509   :  { %10329 = vmatprep.mubr.msk.f32.mxu0 %vm4664_vm6, %v13444_v15  ;;  %10353 = vmatmul.mubr.msk.f32.gmra.mxu1 %vm4664_vm6, %v13326_v52 }
 0x50a   :  { %10355 = vmatprep.mubr.msk.f32.mxu1 %vm4664_vm6, %v13506_v0  ;;  %10377 = vmatpush3.msra.mxu0 %v9423_v7 }
 0x50b   :  { %10409 = vmatpush3.msra.mxu1 %v9441_v48 }
 0x50c   :  { %10330 = vmatmul.mubr.msk.f32.gmra.mxu0 %vm4664_vm6, %v13453_v28 }
 0x50d   :  { %10332 = vmatprep.mubr.msk.f32.mxu0 %vm4664_vm6, %v13461_v46  ;;  %10356 = vmatmul.mubr.msk.f32.gmra.mxu1 %vm4664_vm6, %v13213_v32 }
 0x50e   :  { %10358 = vmatprep.mubr.msk.f32.mxu1 %vm4664_vm6, %v13366_v20 }
 0x510   :  { %10333 = vmatmul.mubr.msk.f32.gmra.mxu0 %vm4664_vm6, %v13472_v26 }
 0x511   :  { %10335 = vmatprep.mubr.msk.f32.mxu0 %vm4664_vm6, %v13479_v43  ;;  %10359 = vmatmul.mubr.msk.f32.gmra.mxu1 %vm4664_vm6, %v13391_v35 }
 0x512   :  { %10361 = vmatprep.mubr.msk.f32.mxu1 %vm4664_vm6, %v13398_v23 }
 0x514   :  { %10336 = vmatmul.mubr.msk.f32.gmra.mxu0 %vm4664_vm6, %v7649_v62 }
 0x515   :  { %10362 = vmatmul.mubr.msk.f32.gmra.mxu1 %vm4664_vm6, %v13415_v42  ;;  %10378 = vmatprep.mubr.msk.f32.mxu0 %vm4664_vm6, %v13151_v30 }
 0x516   :  { %10364 = vmatprep.mubr.msk.f32.mxu1 %vm4664_vm6, %v13421_v4 }
 0x518   :  { %10379 = vmatmul.mubr.msk.f32.vlgmr.msra.gmra.mxu0 %vm4664_vm6, %v13162_v53 }
 0x519   :  { %10365 = vmatmul.mubr.msk.f32.gmra.mxu1 %vm4664_vm6, %v13439_v27  ;;  %10381 = vmatprep.mubr.msk.f32.mxu0 %vm4664_vm6, %v13171_v10 }
 0x51a   :  { %10367 = vmatprep.mubr.msk.f32.mxu1 %vm4664_vm6, %v13562_v44 }
 0x51c   :  { %10382 = vmatmul.mubr.msk.f32.gmra.mxu0 %vm4664_vm6, %v13222_v11 }
 0x51d   :  { %10368 = vmatmul.mubr.msk.f32.gmra.mxu1 %vm4664_vm6, %v13213_v32  ;;  %10384 = vmatprep.mubr.msk.f32.mxu0 %vm4664_vm6, %v13145_v63 }
 0x51e   :  { %10410 = vmatprep.mubr.msk.f32.mxu1 %vm4664_vm6, %v13318_v55 }
 0x520   :  { %10385 = vmatmul.mubr.msk.f32.gmra.mxu0 %vm4664_vm6, %v13153_v39 }
 0x521   :  { %10387 = vmatprep.mubr.msk.f32.mxu0 %vm4664_vm6, %v13481_v37  ;;  %10411 = vmatmul.mubr.msk.f32.vlgmr.msra.gmra.mxu1 %vm4664_vm6, %v13335_v6 }
 0x522   :  { %10413 = vmatprep.mubr.msk.f32.mxu1 %vm4664_vm6, %v13346_v14 }
 0x524   :  { %10388 = vmatmul.mubr.f32.gmra.mxu0 %v14016_v12 }
 0x525   :  { %10390 = vmatprep.mubr.msk.f32.mxu0 %vm4664_vm6, %v13183_v5  ;;  %10414 = vmatmul.mubr.msk.f32.gmra.mxu1 %vm4664_vm6, %v13369_v9 }
 0x526   :  { %10416 = vmatprep.mubr.msk.f32.mxu1 %vm4664_vm6, %v13381_v33 }
 0x528   :  { %10391 = vmatmul.mubr.msk.f32.gmra.mxu0 %vm4664_vm6, %v13231_v40 }
 0x529   :  { %10393 = vmatprep.mubr.msk.f32.mxu0 %vm4664_vm6, %v13241_v49  ;;  %10417 = vmatmul.mubr.msk.f32.gmra.mxu1 %vm4664_vm6, %v13401_v56 }
 0x52a   :  { %10419 = vmatprep.mubr.msk.f32.mxu1 %vm4664_vm6, %v7648_v51 }
 0x52c   :  { %10394 = vmatmul.mubr.msk.f32.gmra.mxu0 %vm4664_vm6, %v13254_v29 }
 0x52d   :  { %10396 = vmatprep.mubr.msk.f32.mxu0 %vm4664_vm6, %v13267_v18  ;;  %10420 = vmatmul.mubr.msk.f32.gmra.mxu1 %vm4664_vm6, %v13276_v21 }
 0x52e   :  { %10422 = vmatprep.mubr.msk.f32.mxu1 %vm4664_vm6, %v13433_v19 }
 0x530   :  { %10397 = vmatmul.mubr.msk.f32.gmra.mxu0 %vm4664_vm6, %v13281_v1 }
 0x531   :  { %10399 = vmatprep.mubr.msk.f32.mxu0 %vm4664_vm6, %v13544_v22  ;;  %10423 = vmatmul.mubr.msk.f32.gmra.mxu1 %vm4664_vm6, %v13444_v15 }
 0x532   :  { %10425 = vmatprep.mubr.msk.f32.mxu1 %vm4664_vm6, %v13453_v28 }
 0x534   :  { %10400 = vmatmul.mubr.f32.gmra.mxu0 %v14016_v12 }
 0x535   :  { %10426 = vmatmul.mubr.msk.f32.gmra.mxu1 %vm4664_vm6, %v13461_v46 }
 0x536   :  { %10428 = vmatprep.mubr.msk.f32.mxu1 %vm4664_vm6, %v13472_v26 }
 0x539   :  { %10429 = vmatmul.mubr.msk.f32.gmra.mxu1 %vm4664_vm6, %v13479_v43 }
 0x53a   :  { %10431 = vmatprep.mubr.msk.f32.mxu1 %vm4664_vm6, %v7649_v62 }
 0x53d   :  { %10432 = vmatmul.mubr.msk.f32.gmra.mxu1 %vm4664_vm6, %v13276_v21 }
 0x569   :  { %v10156_v63 = vpop.f32.mrf.mxu0 }
 0x56a   :  { %v10165_v30 = vpop.f32.mrf.mxu1 }
 0x56b   :  { %v6769_v39 = vpop.f32.mrf.mxu0 }
 0x56c   :  { %v6799_v53 = vpop.f32.mrf.mxu1 }
 0x56d   :  { %v10159_v10 = vpop.f32.mrf.mxu0 }
 0x56e   :  { %v10168_v12 = vpop.f32.mrf.mxu1 }
 0x56f   :  { %v6779_v5 = vpop.f32.mrf.mxu0 }
 0x570   :  { %v6809_v32 = vpop.f32.mrf.mxu1 }
 0x574   :  { %v10162_v11 = vpop.f32.mrf.mxu0 }
 0x575   :  { %v10171_v40 = vpop.f32.mrf.mxu1 }
 0x576   :  { %v6789_v49 = vpop.f32.mrf.mxu0 }
 0x577   :  { %v6819_v29 = vpop.f32.mrf.mxu1 }
 0x578   :  { %v10188_v18 = vpop.f32.mrf.mxu0 }
 0x579   :  { %v6965_v1 = vadd.f32 %v10188_v18, %v10156_v63  ;;  %v10174_v17 = vpop.f32.mrf.mxu1 }
 0x57a   :  { %v6959_v55 = vpop.f32.mrf.mxu0 }
 0x57b   :  { %v6960_v52 = vadd.f32 %v6959_v55, %v6769_v39  ;;  %v6829_v6 = vpop.f32.mrf.mxu1 }
 0x57c   :  { %v10191_v14 = vpop.f32.mrf.mxu0 }
 0x57d   :  { %v6975_v21 = vadd.f32 %v10191_v14, %v10159_v10  ;;  %v10177_v20 = vpop.f32.mrf.mxu1 }
 0x57e   :  { %v6969_v9 = vpop.f32.mrf.mxu0 }
 0x57f   :  { %v6970_v33 = vadd.f32 %v6969_v9, %v6779_v5  ;;  %v6839_v35 = vpop.f32.mrf.mxu1 }
 0x580   :  { %v10194_v23 = vpop.f32.mrf.mxu0 }
 0x581   :  { %v6985_v56 = vadd.f32 %v10194_v23, %v10162_v11  ;;  %v10220_v42 = vpop.f32.mrf.mxu1 }
 0x582   :  { %v13720_v4 = vadd.f32 %v10220_v42, %v6965_v1  ;;  %v6979_v24 = vpop.f32.mrf.mxu0 }
 0x583   :  { %v6980_v19 = vadd.f32 %v6979_v24, %v6789_v49  ;;  %v7199_v27 = vpop.f32.mrf.mxu1 }
 0x584   :  { %v13722_v15 = vadd.f32 %v7199_v27, %v6960_v52  ;;  %v10197_v28 = vpop.f32.mrf.mxu0 }
 0x585   :  { %v6995_v45 = vadd.f32 %v10197_v28, %v10165_v30  ;;  %v10223_v46 = vpop.f32.mrf.mxu1 }
 0x586   :  { %v13724_v59 = vadd.f32 %v10223_v46, %v6975_v21  ;;  %v6989_v31 = vpop.f32.mrf.mxu0 }
 0x587   :  { %v6990_v3 = vadd.f32 %v6989_v31, %v6799_v53  ;;  %v7209_v26 = vpop.f32.mrf.mxu1 }
 0x588   :  { %v13726_v43 = vadd.f32 %v7209_v26, %v6970_v33  ;;  %v10200_v37 = vpop.f32.mrf.mxu0 }
 0x589   :  { %v7005_v50 = vadd.f32 %v10200_v37, %v10168_v12  ;;  %v10226_v41 = vpop.f32.mrf.mxu1 }
 0x58a   :  { %v13728_v61 = vadd.f32 %v10226_v41, %v6985_v56  ;;  %v6999_v0 = vpop.f32.mrf.mxu0 }
 0x58b   :  { %v7000_v25 = vadd.f32 %v6999_v0, %v6809_v32  ;;  %v7219_v2 = vpop.f32.mrf.mxu1 }
 0x58c   :  { %v13730_v36 = vadd.f32 %v7219_v2, %v6980_v19  ;;  %v10203_v34 = vpop.f32.mrf.mxu0 }
 0x58d   :  { %v7015_v57 = vadd.f32 %v10203_v34, %v10171_v40  ;;  %v10229_v38 = vpop.f32.mrf.mxu1 }
 0x58e   :  { %v13732_v22 = vadd.f32 %v10229_v38, %v6995_v45  ;;  %v7009_v47 = vpop.f32.mrf.mxu0 }
 0x58f   :  { %v7010_v44 = vadd.f32 %v7009_v47, %v6819_v29  ;;  %v7229_v16 = vpop.f32.mrf.mxu1 }
 0x590   :  { %v13734_v13 = vadd.f32 %v7229_v16, %v6990_v3  ;;  %v10206_v60 = vpop.f32.mrf.mxu0 }
 0x591   :  { %v7025_v54 = vadd.f32 %v10206_v60, %v10174_v17  ;;  %v10232_v51 = vpop.f32.mrf.mxu1 }
 0x592   :  { %v13736_v58 = vadd.f32 %v10232_v51, %v7005_v50  ;;  %v7019_v7 = vpop.f32.mrf.mxu0 }
 0x593   :  { %v7020_v48 = vadd.f32 %v7019_v7, %v6829_v6  ;;  %v7239_v8 = vpop.f32.mrf.mxu1 }
 0x594   :  { %v13738_v62 = vadd.f32 %v7239_v8, %v7000_v25  ;;  %v10209_v63 = vpop.f32.mrf.mxu0 }
 0x595   :  { %v7035_v30 = vadd.f32 %v10209_v63, %v10177_v20  ;;  %v10235_v39 = vpop.f32.mrf.mxu1 }
 0x596   :  { %v13740_v53 = vadd.f32 %v10235_v39, %v7015_v57  ;;  %v7029_v10 = vpop.f32.mrf.mxu0 }
 0x597   :  { %v7030_v12 = vadd.f32 %v7029_v10, %v6839_v35  ;;  %v7249_v5 = vpop.f32.mrf.mxu1 }
 0x598   :  { %v13742_v32 = vadd.f32 %v7249_v5, %v7010_v44  ;;  %v13744_v11 = vpop.f32.mrf.mxu0 }
 0x599   :  { %v10238_v40 = vpop.f32.mrf.mxu1 }
 0x59a   :  { %v13746_v49 = vadd.f32 %v10238_v40, %v7025_v54  ;;  %v13748_v29 = vpop.f32.mrf.mxu0 }
 0x59b   :  { %v7259_v18 = vpop.f32.mrf.mxu1 }
 0x59c   :  { %14017 = vst [vmem:[#allocation2_spill] sm:$0xff] %v13746_v49  ;;  %v13750_v1 = vadd.f32 %v7259_v18, %v7020_v48  ;;  %v13752_v17 = vpop.f32.mrf.mxu0 }
 0x59d   :  { %v10241_v55 = vpop.f32.mrf.mxu1 }
 0x59e   :  { %14018 = vst [vmem:[#allocation3_spill] sm:$0xff] %v13750_v1  ;;  %v13754_v52 = vadd.f32 %v10241_v55, %v7035_v30  ;;  %v13756_v6 = vpop.f32.mrf.mxu0 }
 0x59f   :  { %v7269_v14 = vpop.f32.mrf.mxu1 }
 0x5a0   :  { %14019 = vst [vmem:[#allocation4_spill] sm:$0xff] %v13754_v52  ;;  %v13758_v21 = vadd.f32 %v7269_v14, %v7030_v12  ;;  %v13760_v20 = vpop.f32.mrf.mxu0 }
 0x5a1   :  { %v10284_v9 = vpop.f32.mrf.mxu1 }
 0x5a2   :  { %14020 = vst [vmem:[#allocation5_spill] sm:$0xff] %v13758_v21  ;;  %v13762_v33 = vpop.f32.mrf.mxu0 }
 0x5a3   :  { %v7549_v35 = vpop.f32.mrf.mxu1 }
 0x5a4   :  { %v13764_v23 = vpop.f32.mrf.mxu0 }
 0x5a5   :  { %v13766_v56 = vpop.f32.mrf.mxu1 }
 0x5a6   :  { %v13768_v42 = vpop.f32.mrf.mxu0 }
 0x5a7   :  { %v13770_v24 = vpop.f32.mrf.mxu1 }
 0x5a8   :  { %v13772_v19 = vpop.f32.mrf.mxu0 }
 0x5a9   :  { %v13774_v27 = vpop.f32.mrf.mxu1 }
 0x5aa   :  { %v13776_v28 = vpop.f32.mrf.mxu0 }
 0x5ab   :  { %v13778_v45 = vpop.f32.mrf.mxu1 }
 0x5ac   :  { %v13780_v46 = vpop.f32.mrf.mxu0 }
 0x5ad   :  { %v13782_v31 = vpop.f32.mrf.mxu1 }
 0x5ae   :  { %v13784_v3 = vpop.f32.mrf.mxu0 }
 0x5af   :  { %v13786_v26 = vpop.f32.mrf.mxu1 }
 0x5b0   :  { %v13788_v37 = vpop.f32.mrf.mxu0 }
 0x5b1   :  { %14021 = vst [vmem:[#allocation6_spill] sm:$0xff] %v13788_v37  ;;  %v13790_v50 = vpop.f32.mrf.mxu1 }
 0x5b2   :  { %v13792_v41 = vpop.f32.mrf.mxu0 }
 0x5b3   :  { %14022 = vst [vmem:[#allocation7_spill] sm:$0xff] %v13792_v41  ;;  %v13794_v0 = vpop.f32.mrf.mxu1 }
 0x5b4   :  { %v13796_v25 = vpop.f32.mrf.mxu0 }
 0x5b5   :  { %14023 = vst [vmem:[#allocation8_spill] sm:$0xff] %v13796_v25  ;;  %v13798_v2 = vpop.f32.mrf.mxu1 }
 0x5b6   :  { %14024 = vst [vmem:[#allocation9_spill] sm:$0xff] %v13798_v2  ;;  %v13800_v34 = vpop.f32.mrf.mxu0 }
 0x5b7   :  { %14025 = vst [vmem:[#allocation10_spill] sm:$0xff] %v13800_v34  ;;  %v13802_v57 = vpop.f32.mrf.mxu1 }
 0x5b8   :  { %14026 = vst [vmem:[#allocation11_spill] sm:$0xff] %v13802_v57  ;;  %v10316_v38 = vpop.f32.mrf.mxu0 }
 0x5b9   :  { %v13804_v47 = vpop.f32.mrf.mxu1 }
 0x5ba   :  { %14027 = vst [vmem:[#allocation12_spill] sm:$0xff] %v13804_v47  ;;  %v7727_v44 = vpop.f32.mrf.mxu0 }
 0x5bb   :  { %v13806_v16 = vpop.f32.mrf.mxu1 }
 0x5bc   :  { %14028 = vst [vmem:[#allocation13_spill] sm:$0xff] %v13806_v16  ;;  %v10319_v60 = vpop.f32.mrf.mxu0 }
 0x5bd   :  { %v13808_v54 = vpop.f32.mrf.mxu1 }
 0x5be   :  { %14029 = vst [vmem:[#allocation14_spill] sm:$0xff] %v13808_v54  ;;  %v7737_v51 = vpop.f32.mrf.mxu0 }
 0x5bf   :  { %v13810_v7 = vpop.f32.mrf.mxu1 }
 0x5c0   :  { %14030 = vst [vmem:[#allocation15_spill] sm:$0xff] %v13810_v7  ;;  %v10322_v48 = vpop.f32.mrf.mxu0 }
 0x5c1   :  { %v10348_v8 = vpop.f32.mrf.mxu1 }
 0x5c2   :  { %v13812_v63 = vpop.f32.mrf.mxu0 }
 0x5c3   :  { %v7893_v30 = vpop.f32.mrf.mxu1 }
 0x5c4   :  { %v13814_v39 = vpop.f32.mrf.mxu0 }
 0x5c5   :  { %v10351_v10 = vpop.f32.mrf.mxu1 }
 0x5c6   :  { %v13816_v12 = vpop.f32.mrf.mxu0 }
 0x5c7   :  { %v7903_v5 = vpop.f32.mrf.mxu1 }
 0x5c8   :  { %v13818_v40 = vpop.f32.mrf.mxu0 }
 0x5c9   :  { %v10354_v18 = vpop.f32.mrf.mxu1 }
 0x5ca   :  { %v13820_v55 = vpop.f32.mrf.mxu0 }
 0x5cb   :  { %14031 = vst [vmem:[#allocation16_spill] sm:$0xff] %v13820_v55  ;;  %v13822_v14 = vpop.f32.mrf.mxu1 }
 0x5cc   :  { %v13824_v54 = vpop.f32.mrf.mxu0 }
 0x5cd   :  { %14032 = vst [vmem:[#allocation17_spill] sm:$0xff] %v13824_v54  ;;  %v13826_v7 = vpop.f32.mrf.mxu1 }
 0x5ce   :  { %v13828_v34 = vpop.f32.mrf.mxu0 }
 0x5cf   :  { %14033 = vst [vmem:[#allocation18_spill] sm:$0xff] %v13828_v34  ;;  %v13830_v21 = vpop.f32.mrf.mxu1  ;;  %v7459_v34 = vadd.f32 %v13744_v11, %v13720_v4  ;;  %v7460_v4 = vadd.f32 %v13756_v6, %v13726_v43 }
 0x5d0   :  { %v13832_v16 = vpop.f32.mrf.mxu0 }
 0x5d1   :  { %14034 = vst [vmem:[#allocation19_spill] sm:$0xff] %v13832_v16  ;;  %v13834_v25 = vpop.f32.mrf.mxu1  ;;  %v7458_v16 = vadd.f32 %v13748_v29, %v13722_v15  ;;  %v7463_v29 = vadd.f32 %v13760_v20, %v13728_v61 }
 0x5d2   :  { %14035 = vst [vmem:[#allocation20_spill] sm:$0xff] %v13834_v25  ;;  %v13836_v52 = vpop.f32.mrf.mxu0 }
 0x5d3   :  { %14036 = vst [vmem:[#allocation21_spill] sm:$0xff] %v13836_v52  ;;  %v13838_v47 = vpop.f32.mrf.mxu1  ;;  %v7629_v52 = vadd.f32 %v10284_v9, %v7459_v34  ;;  %v7633_v43 = vadd.f32 %v13774_v27, %v7463_v29 }
 0x5d4   :  { %14037 = vst [vmem:[#allocation22_spill] sm:$0xff] %v13838_v47  ;;  %v13840_v41 = vpop.f32.mrf.mxu0 }
 0x5d5   :  { %14038 = vst [vmem:[#allocation23_spill] sm:$0xff] %v13840_v41  ;;  %v13842_v1 = vpop.f32.mrf.mxu1  ;;  %v7461_v41 = vadd.f32 %v13752_v17, %v13724_v59  ;;  %v7630_v59 = vadd.f32 %v13770_v24, %v7460_v4 }
 0x5d6   :  { %14039 = vst [vmem:[#allocation24_spill] sm:$0xff] %v13842_v1  ;;  %v13844_v57 = vpop.f32.mrf.mxu0  ;;  %v7628_v1 = vadd.f32 %v7549_v35, %v7458_v16 }
 0x5d7   :  { %14040 = vst [vmem:[#allocation25_spill] sm:$0xff] %v13844_v57  ;;  %v13846_v54 = vpop.f32.mrf.mxu1  ;;  %v7807_v57 = vadd.f32 %v10316_v38, %v7629_v52  ;;  %v7631_v11 = vadd.f32 %v13766_v56, %v7461_v41  ;;  %v7462_v38 = vadd.f32 %v13762_v33, %v13730_v36  ;;  %v7808_v61 = vadd.f32 %v7737_v51, %v7630_v59 }
 0x5d8   :  { %14041 = vst [vmem:[#allocation26_spill] sm:$0xff] %v13846_v54  ;;  %v10380_v37 = vpop.f32.mrf.mxu0 }
 0x5d9   :  { %v13850_v49 = vpop.f32.mrf.mxu1  ;;  %v7973_v2 = vadd.f32 %v10348_v8, %v7807_v57  ;;  %v7809_v17 = vadd.f32 %v10319_v60, %v7631_v11  ;;  %v7974_v33 = vadd.f32 %v7903_v5, %v7808_v61  ;;  %v7464_v60 = vadd.f32 %v13768_v42, %v13734_v13  ;;  %v14044_v61 = vld [vmem:[#allocation16_spill] sm:$0xff] }
 0x5da   :  { %14042 = vst [vmem:[#allocation27_spill] sm:$0xff] %v13850_v49  ;;  %v8059_v25 = vpop.f32.mrf.mxu0  ;;  %v7806_v49 = vadd.f32 %v7727_v44, %v7628_v1  ;;  %v13874_v1 = vld [vmem:[%s14003_s10] ss:$0 sm:$0xff]  ;;  %v7466_v11 = vadd.f32 %v13776_v28, %v13738_v62 }
 0x5db   :  { %v13854_v47 = vpop.f32.mrf.mxu1  ;;  %v8139_v35 = vadd.f32 %v10380_v37, %v7973_v2  ;;  %v7975_v20 = vadd.f32 %v10351_v10, %v7809_v17  ;;  %v7632_v37 = vadd.f32 %v13778_v45, %v7462_v38  ;;  %v7811_v2 = vadd.f32 %v10322_v48, %v7633_v43  ;;  %v14043_v43 = vld [vmem:[#allocation9_spill] sm:$0xff] }
 0x5dc   :  { %v10383_v55 = vpop.f32.mrf.mxu0  ;;  %v7972_v52 = vadd.f32 %v7893_v30, %v7806_v49  ;;  %v7465_v49 = vadd.f32 %v13764_v23, %v13732_v22  ;;  %v7467_v10 = vadd.f32 %v13772_v19, %v13736_v58  ;;  %v7634_v5 = vadd.f32 %v13786_v26, %v7464_v60 }
 0x5dd   :  { %v13858_v54 = vpop.f32.mrf.mxu1  ;;  %v8141_v27 = vadd.f32 %v10383_v55, %v7975_v20  ;;  %v7810_v51 = vadd.f32 %v13812_v63, %v7632_v37  ;;  %v7977_v8 = vadd.f32 %v10354_v18, %v7811_v2  ;;  %v7469_v17 = vadd.f32 %v13780_v46, %v13740_v53  ;;  %v14045_v46 = vld [vmem:[#allocation20_spill] sm:$0xff]  ;;  %v14048_v2 = vld [vmem:[#allocation11_spill] sm:$0xff] }
 0x5de   :  { %v8069_v15 = vpop.f32.mrf.mxu0  ;;  %v8138_v56 = vadd.f32 %v8059_v25, %v7972_v52  ;;  %v7635_v25 = vadd.f32 %v13782_v31, %v7465_v49  ;;  %v7812_v58 = vadd.f32 %v13816_v12, %v7634_v5  ;;  %v7636_v52 = vadd.f32 %v13794_v0, %v7466_v11  ;;  %v14047_v49 = vld [vmem:[#allocation6_spill] sm:$0xff] }
 0x5df   :  { %v13865_v9 = vpop.f32.mrf.mxu1  ;;  %v8140_v22 = vadd.f32 %v8069_v15, %v7974_v33  ;;  %v7976_v13 = vadd.f32 %v13822_v14, %v7810_v51  ;;  %v7637_v15 = vadd.f32 %v13790_v50, %v7467_v10  ;;  %v7468_v38 = vadd.f32 %v13784_v3, %v13742_v32  ;;  %v14049_v33 = vld [vmem:[#allocation17_spill] sm:$0xff]  ;;  %v14050_v3 = vld [vmem:[#allocation22_spill] sm:$0xff]  ;;  %v14051_v51 = vld [vmem:[#allocation3_spill] sm:$0xff] }
 0x5e0   :  { %v10386_v34 = vpop.f32.mrf.mxu0  ;;  %v7813_v55 = vadd.f32 %v13814_v39, %v7635_v25  ;;  %v7978_v28 = vadd.f32 %v13830_v21, %v7812_v58  ;;  %v7814_v53 = vadd.f32 %v14044_v61, %v7636_v52  ;;  %v14055_v10 = vld [vmem:[#allocation24_spill] sm:$0xff] }
 0x5e1   :  { %v10412_v6 = vpop.f32.mrf.mxu1  ;;  %v8143_v31 = vadd.f32 %v10386_v34, %v7977_v8  ;;  %v7815_v62 = vadd.f32 %v13818_v40, %v7637_v15  ;;  %v14052_v8 = vld [vmem:[#allocation7_spill] sm:$0xff]  ;;  %v14058_v15 = vld [vmem:[#allocation13_spill] sm:$0xff] }
 0x5e2   :  { %v8305_v41 = vadd.f32 %v10412_v6, %v8139_v35  ;;  %v8079_v24 = vpop.f32.mrf.mxu0  ;;  %v7979_v19 = vadd.f32 %v13826_v7, %v7813_v55  ;;  %v7639_v6 = vadd.f32 %v14043_v43, %v7469_v17  ;;  %v14064_v43 = vld [vmem:[#allocation21_spill] sm:$0xff]  ;;  %v14065_v61 = vld [vmem:[#allocation27_spill] sm:$0xff] }
 0x5e3   :  { %v8225_v36 = vpop.f32.mrf.mxu1  ;;  %v8142_v39 = vadd.f32 %v8079_v24, %v7976_v13  ;;  %v7981_v0 = vadd.f32 %v14045_v46, %v7815_v62  ;;  %v14046_v24 = vld [vmem:[#allocation2_spill] sm:$0xff] }
 0x5e4   :  { %v8328_v57 = vadd.f32 %v13874_v1, %v8305_v41  ;;  %v8304_v44 = vadd.f32 %v8225_v36, %v8138_v56  ;;  %v10389_v16 = vpop.f32.mrf.mxu0  ;;  %v7471_v37 = vadd.f32 %v14047_v49, %v14046_v24  ;;  %v7638_v36 = vadd.f32 %v14048_v2, %v7468_v38  ;;  %v14067_v24 = vld [vmem:[#allocation23_spill] sm:$0xff] }
 0x5e5   :  { %v10415_v30 = vpop.f32.mrf.mxu1  ;;  %v8145_v12 = vadd.f32 %v10389_v16, %v7979_v19  ;;  %v7817_v32 = vadd.f32 %v14049_v33, %v7639_v6  ;;  %v14059_v19 = vld [vmem:[#allocation19_spill] sm:$0xff] }
 0x5e6   :  { %10756 = vtanh.f32 %v8328_v57  ;;  %v8327_v23 = vadd.f32 %v13874_v1, %v8304_v44  ;;  %v8307_v45 = vadd.f32 %v10415_v30, %v8141_v27  ;;  %v8089_v48 = vpop.f32.mrf.mxu0  ;;  %v7980_v27 = vadd.f32 %v14050_v3, %v7814_v53 }
 0x5e7   :  { %v8235_v42 = vpop.f32.mrf.mxu1  ;;  %v8144_v40 = vadd.f32 %v8089_v48, %v7978_v28  ;;  %v7470_v30 = vadd.f32 %v14052_v8, %v14051_v51  ;;  %v7983_v5 = vadd.f32 %v14055_v10, %v7817_v32 }
 0x5e8   :  { %10758 = vtanh.f32 %v8327_v23  ;;  %v8330_v63 = vadd.f32 %v13874_v1, %v8307_v45  ;;  %v8306_v18 = vadd.f32 %v8235_v42, %v8140_v22  ;;  %v10392_v4 = vpop.f32.mrf.mxu0  ;;  %v14053_v22 = vld [vmem:[#allocation12_spill] sm:$0xff]  ;;  %v14054_v45 = vld [vmem:[#allocation18_spill] sm:$0xff] }
 0x5e9   :  { %v10418_v26 = vpop.f32.mrf.mxu1  ;;  %v8147_v44 = vadd.f32 %v10392_v4, %v7981_v0  ;;  %v7641_v23 = vadd.f32 %v14053_v22, %v7471_v37  ;;  %v7816_v48 = vadd.f32 %v14054_v45, %v7638_v36  ;;  %v14057_v4 = vld [vmem:[#allocation8_spill] sm:$0xff]  ;;  %v7640_v58 = vadd.f32 %v14058_v15, %v7470_v30 }
 0x5ea   :  { %10760 = vtanh.f32 %v8330_v63  ;;  %v8329_v14 = vadd.f32 %v13874_v1, %v8306_v18  ;;  %v8309_v29 = vadd.f32 %v10418_v26, %v8143_v31  ;;  %v8099_v59 = vpop.f32.mrf.mxu0  ;;  %v14056_v18 = vld [vmem:[#allocation4_spill] sm:$0xff] }
 0x5eb   :  { %v8245_v50 = vpop.f32.mrf.mxu1  ;;  %v8146_v13 = vadd.f32 %v8099_v59, %v7980_v27  ;;  %v7473_v11 = vadd.f32 %v14057_v4, %v14056_v18  ;;  %v7819_v26 = vadd.f32 %v14059_v19, %v7641_v23  ;;  %v7818_v6 = vadd.f32 %v14064_v43, %v7640_v58  ;;  %v14068_v27 = vld [vmem:[#allocation25_spill] sm:$0xff] }
 0x5ec   :  { %10762 = vtanh.f32 %v8329_v14  ;;  %v8332_v7 = vadd.f32 %v13874_v1, %v8309_v29  ;;  %v8308_v35 = vadd.f32 %v8245_v50, %v8142_v39  ;;  %v10395_v34 = vpop.f32.mrf.mxu0  ;;  %v14060_v39 = vld [vmem:[#allocation26_spill] sm:$0xff]  ;;  %v14061_v50 = vld [vmem:[#allocation5_spill] sm:$0xff] }
 0x5ed   :  { %v10421_v20 = vpop.f32.mrf.mxu1  ;;  %v7982_v14 = vadd.f32 %v14060_v39, %v7816_v48  ;;  %v8149_v59 = vadd.f32 %v10395_v34, %v7983_v5  ;;  %v7985_v53 = vadd.f32 %v14065_v61, %v7819_v26  ;;  %v7984_v37 = vadd.f32 %v13854_v47, %v7818_v6 }
 0x5ee   :  { %10764 = vtanh.f32 %v8332_v7  ;;  %v8331_v21 = vadd.f32 %v13874_v1, %v8308_v35  ;;  %v8311_v56 = vadd.f32 %v10421_v20, %v8145_v12  ;;  %v8109_v41 = vpop.f32.mrf.mxu0  ;;  %v14062_v12 = vld [vmem:[#allocation10_spill] sm:$0xff] }
 0x5ef   :  { %v8255_v57 = vpop.f32.mrf.mxu1  ;;  %v7472_v7 = vadd.f32 %v14062_v12, %v14061_v50  ;;  %v14063_v35 = vld [vmem:[#allocation14_spill] sm:$0xff]  ;;  %v8148_v34 = vadd.f32 %v8109_v41, %v7982_v14 }
 0x5f0   :  { %10766 = vtanh.f32 %v8331_v21  ;;  %v8334_v16 = vadd.f32 %v13874_v1, %v8311_v56  ;;  %v8310_v60 = vadd.f32 %v8255_v57, %v8144_v40  ;;  %v10398_v25 = vpop.f32.mrf.mxu0  ;;  %v7643_v38 = vadd.f32 %v14063_v35, %v7473_v11  ;;  %v14066_v21 = vld [vmem:[#allocation15_spill] sm:$0xff] }
 0x5f1   :  { %v10424_v55 = vpop.f32.mrf.mxu1  ;;  %v7642_v56 = vadd.f32 %v14066_v21, %v7472_v7  ;;  %v8151_v33 = vadd.f32 %v10398_v25, %v7985_v53 }
 0x5f2   :  { %10768 = vtanh.f32 %v8334_v16  ;;  %v8333_v42 = vadd.f32 %v13874_v1, %v8310_v60  ;;  %v8313_v31 = vadd.f32 %v10424_v55, %v8147_v44  ;;  %v8119_v29 = vpop.f32.mrf.mxu0  ;;  %v7821_v49 = vadd.f32 %v14067_v24, %v7643_v38 }
 0x5f3   :  { %v10757_v63 = vpop.eup %10756  ;;  %v8265_v17 = vpop.f32.mrf.mxu1  ;;  %v7820_v57 = vadd.f32 %v14068_v27, %v7642_v56  ;;  %v8150_v47 = vadd.f32 %v8119_v29, %v7984_v37 }
 0x5f4   :  { %8360 = vst [vmem:[%s14004_s11 + $0x8] sm:$0xff] %v10757_v63  ;;  %10770 = vtanh.f32 %v8333_v42  ;;  %v8336_v52 = vadd.f32 %v13874_v1, %v8313_v31  ;;  %v8312_v62 = vadd.f32 %v8265_v17, %v8146_v13  ;;  %v10401_v2 = vpop.f32.mrf.mxu0  ;;  %v7987_v44 = vadd.f32 %v13858_v54, %v7821_v49 }
 0x5f5   :  { %v10759_v28 = vpop.eup %10758  ;;  %v10427_v46 = vpop.f32.mrf.mxu1  ;;  %v7986_v8 = vadd.f32 %v13865_v9, %v7820_v57 }
 0x5f6   :  { %8359 = vst [vmem:[%s14004_s11] sm:$0xff] %v10759_v28  ;;  %10772 = vtanh.f32 %v8336_v52  ;;  %v8335_v0 = vadd.f32 %v13874_v1, %v8312_v62  ;;  %v8315_v20 = vadd.f32 %v10427_v46, %v8149_v59  ;;  %v8129_v30 = vpop.f32.mrf.mxu0  ;;  %v8153_v54 = vadd.f32 %v10401_v2, %v7987_v44 }
 0x5f7   :  { %v10761_v40 = vpop.eup %10760  ;;  %v8275_v36 = vpop.f32.mrf.mxu1  ;;  %v8152_v5 = vadd.f32 %v8129_v30, %v7986_v8 }
 0x5f8   :  { %8362 = vst [vmem:[%s14004_s11 + $0x18] sm:$0xff] %v10761_v40  ;;  %10774 = vtanh.f32 %v8335_v0  ;;  %v8338_v41 = vadd.f32 %v13874_v1, %v8315_v20  ;;  %v8314_v32 = vadd.f32 %v8275_v36, %v8148_v34 }
 0x5f9   :  { %v10763_v3 = vpop.eup %10762  ;;  %v10430_v16 = vpop.f32.mrf.mxu1 }
 0x5fa   :  { %8361 = vst [vmem:[%s14004_s11 + $0x10] sm:$0xff] %v10763_v3  ;;  %10776 = vtanh.f32 %v8338_v41  ;;  %v8337_v60 = vadd.f32 %v13874_v1, %v8314_v32  ;;  %v8317_v51 = vadd.f32 %v10430_v16, %v8151_v33 }
 0x5fb   :  { %v10765_v25 = vpop.eup %10764  ;;  %v8285_v22 = vpop.f32.mrf.mxu1 }
 0x5fc   :  { %8364 = vst [vmem:[%s14004_s11 + $0x28] sm:$0xff] %v10765_v25  ;;  %10778 = vtanh.f32 %v8337_v60  ;;  %v8340_v23 = vadd.f32 %v13874_v1, %v8317_v51  ;;  %v8316_v45 = vadd.f32 %v8285_v22, %v8150_v47 }
 0x5fd   :  { %v10767_v48 = vpop.eup %10766  ;;  %v10433_v10 = vpop.f32.mrf.mxu1 }
 0x5fe   :  { %8363 = vst [vmem:[%s14004_s11 + $0x20] sm:$0xff] %v10767_v48  ;;  %10780 = vtanh.f32 %v8340_v23  ;;  %v8339_v9 = vadd.f32 %v13874_v1, %v8316_v45  ;;  %v8319_v55 = vadd.f32 %v10433_v10, %v8153_v54 }
 0x5ff   :  { %v10769_v13 = vpop.eup %10768  ;;  %v8295_v42 = vpop.f32.mrf.mxu1 }
 0x600   :  { %8366 = vst [vmem:[%s14004_s11 + $0x38] sm:$0xff] %v10769_v13  ;;  %10782 = vtanh.f32 %v8339_v9  ;;  %v8342_v31 = vadd.f32 %v13874_v1, %v8319_v55  ;;  %v8318_v63 = vadd.f32 %v8295_v42, %v8152_v5 }
 0x601   :  { %v10771_v18 = vpop.eup %10770 }
 0x602   :  { %8365 = vst [vmem:[%s14004_s11 + $0x30] sm:$0xff] %v10771_v18  ;;  %10784 = vtanh.f32 %v8342_v31  ;;  %v8341_v4 = vadd.f32 %v13874_v1, %v8318_v63 }
 0x603   :  { %v10773_v11 = vpop.eup %10772 }
 0x604   :  { %8368 = vst [vmem:[%s14004_s11 + $0x48] sm:$0xff] %v10773_v11  ;;  %10786 = vtanh.f32 %v8341_v4 }
 0x605   :  { %v10775_v15 = vpop.eup %10774 }
 0x606   :  { %8367 = vst [vmem:[%s14004_s11 + $0x40] sm:$0xff] %v10775_v15 }
 0x607   :  { %v10777_v58 = vpop.eup %10776 }
 0x608   :  { %8370 = vst [vmem:[%s14004_s11 + $0x58] sm:$0xff] %v10777_v58 }
 0x609   :  { %v10779_v19 = vpop.eup %10778 }
 0x60a   :  { %8369 = vst [vmem:[%s14004_s11 + $0x50] sm:$0xff] %v10779_v19 }
 0x60b   :  { %v10781_v1 = vpop.eup %10780 }
 0x60c   :  { %8372 = vst [vmem:[%s14004_s11 + $0x68] sm:$0xff] %v10781_v1 }
 0x60d   :  { %v10783_v26 = vpop.eup %10782 }
 0x60e   :  { %8371 = vst [vmem:[%s14004_s11 + $0x60] sm:$0xff] %v10783_v26 }
 0x60f   :  { %v10785_v39 = vpop.eup %10784 }
 0x610   :  { %8374 = vst [vmem:[%s14004_s11 + $0x78] sm:$0xff] %v10785_v39 }
 0x611   :  { %v10787_v14 = vpop.eup %10786 }
 0x612   :  { %8373 = vst [vmem:[%s14004_s11 + $0x70] sm:$0xff] %v10787_v14 }

</bundles_post_ra>
